<compile_context>
chip_gen: v6e
topology: v6e:2x2x1
jax: 0.10.0
libtpu: 0.0.40
codegen_flags: <defaults>
</compile_context>

<pallas_src>
import functools

import jax
import jax.numpy as jnp
from jax.experimental import pallas as pl
from jax.experimental.pallas import tpu as pltpu  # noqa: F401  (kept for optional CompilerParams tuning)

MATMUL_DTYPE = jnp.float32   # flip to jnp.bfloat16 on v6e / v7x for MXU throughput
LEAKY_SLOPE = 0.2
BN_EPS = 1e-5
NUM_HEAD = 4
HEAD_DIM = 8


# ----------------------------------------------------------------------------
# In-kernel helpers
# ----------------------------------------------------------------------------

def _mm(a, b):
    return jnp.dot(a.astype(MATMUL_DTYPE), b.astype(MATMUL_DTYPE),
                   preferred_element_type=jnp.float32)


def _mm_nt(a, b):
    # a @ b.T without materializing the transpose (contract last dims of both).
    return jax.lax.dot_general(
        a.astype(MATMUL_DTYPE), b.astype(MATMUL_DTYPE),
        dimension_numbers=(((1,), (1,)), ((), ())),
        preferred_element_type=jnp.float32)


def _leaky(y):
    return jnp.where(y >= 0.0, y, LEAKY_SLOPE * y)


def _batchnorm(y, gamma, beta):
    # Training-mode BatchNorm1d: batch statistics, biased variance.
    mean = jnp.mean(y, axis=0, keepdims=True)
    var = jnp.mean((y - mean) ** 2, axis=0, keepdims=True)
    return (y - mean) * jax.lax.rsqrt(var + BN_EPS) * gamma + beta


# ----------------------------------------------------------------------------
# Fused kernel: GCN stack + cls prepend + 4-head self-attention + score
# ----------------------------------------------------------------------------

def _fused_gcn_mha_kernel(
        m_ref, x_ref,
        w0_ref, b0_ref, g0_ref, be0_ref,
        w1_ref, b1_ref, g1_ref, be1_ref,
        w2a_ref, b2a_ref, w2b_ref, b2b_ref,
        wsc_ref, bsc_ref, g2_ref, be2_ref,
        cls_ref,
        wq_ref, bq_ref, wk_ref, bk_ref, wv_ref, bv_ref, wo_ref, bo_ref,
        out_ref, attn_ref, score_ref,
        *, bz, node, roi, num_head, head_dim):
    M = bz * node
    S = node + 1

    # einsum('ijk,ijp->ijp', m, x) only needs the row-sum of m; computed ONCE,
    # reused by all three layers (m is read from HBM exactly once).
    m2 = m_ref[...].reshape(M, node)
    s = jnp.sum(m2, axis=-1, keepdims=True)                 # (M, 1)
    x = x_ref[...].reshape(M, roi)                          # (M, roi)

    # --- GCN layer 0 (residual is the all-zero x_clone -> elided entirely)
    y = _leaky(_mm(x * s, w0_ref[...]) + b0_ref[...])
    y = _batchnorm(y, g0_ref[...], be0_ref[...])            # (M, roi)

    # --- GCN layer 1 (+ residual = previous layer output)
    h = _leaky(_mm(y * s, w1_ref[...]) + b1_ref[...]) + y
    h = _batchnorm(h, g1_ref[...], be1_ref[...])            # (M, roi)

    # --- GCN layer 2: Linear(roi,64)+LReLU -> Linear(64,16)+LReLU
    #                  + shortcut Linear(roi,16)+LReLU on the previous output
    z = _leaky(_mm(h * s, w2a_ref[...]) + b2a_ref[...])
    z = _leaky(_mm(z, w2b_ref[...]) + b2b_ref[...])
    sc = _leaky(_mm(h, wsc_ref[...]) + bsc_ref[...])
    z = _batchnorm(z + sc, g2_ref[...], be2_ref[...])       # (M, 16)

    # --- prepend cls token per batch element (in-kernel, no HBM round-trip)
    cls = cls_ref[...]                                      # (1, 16)
    parts = []
    for b in range(bz):                                     # static unroll
        parts.append(cls)
        parts.append(z[b * node:(b + 1) * node, :])
    xf = jnp.concatenate(parts, axis=0)                     # (bz*S, 16)

    # --- q/k/v projections for ALL batch elements in one matmul each
    q = _mm(xf, wq_ref[...]) + bq_ref[...]                  # (bz*S, H*d)
    k = _mm(xf, wk_ref[...]) + bk_ref[...]
    v = _mm(xf, wv_ref[...]) + bv_ref[...]
    scale = float(head_dim) ** -0.5

    ctx_parts = []
    score_rows = []
    for b in range(bz):                                     # static unroll
        lo_r, hi_r = b * S, (b + 1) * S
        head_ctx = []
        srow = None
        for hh in range(num_head):                          # static unroll
            lo_c, hi_c = hh * head_dim, (hh + 1) * head_dim
            qh = q[lo_r:hi_r, lo_c:hi_c]
            kh = k[lo_r:hi_r, lo_c:hi_c]
            vh = v[lo_r:hi_r, lo_c:hi_c]
            logits = _mm_nt(qh, kh) * scale                 # (S, S)
            logits = logits - jnp.max(logits, axis=-1, keepdims=True)
            e = jnp.exp(logits)
            p = e / jnp.sum(e, axis=-1, keepdims=True)      # exact softmax
            attn_ref[b * num_head + hh] = p.astype(attn_ref.dtype)
            head_ctx.append(_mm(p, vh))                     # (S, head_dim)
            row = p[0:1, 1:]                                # cls-row attention over nodes
            srow = row if srow is None else srow + row
        ctx_parts.append(jnp.concatenate(head_ctx, axis=-1))   # (S, H*d)
        score_rows.append(srow)                                # (1, node)

    # --- single output projection over all batch rows
    ctx = jnp.concatenate(ctx_parts, axis=0)                # (bz*S, H*d)
    o = _mm(ctx, wo_ref[...]) + bo_ref[...]                 # (bz*S, 16)
    out_ref[...] = o.reshape(bz, S, -1).astype(out_ref.dtype)
    score_ref[...] = jnp.concatenate(score_rows, axis=0).astype(score_ref.dtype)


def fused_gcn_mha(params, m, node_feature, *, roi_num,
                  num_head=NUM_HEAD, head_dim=HEAD_DIM):
    bz, node = m.shape[0], m.shape[1]
    S = node + 1
    kernel = functools.partial(_fused_gcn_mha_kernel, bz=bz, node=node, roi=roi_num,
                               num_head=num_head, head_dim=head_dim)
    r = lambda a: a.reshape(1, -1)   # biases / BN params as (1, n) rows

    # No grid -> single invocation, whole arrays live in VMEM, nothing double-buffered.
    out, attn_flat, score = pl.pallas_call(
        kernel,
        out_shape=(
            jax.ShapeDtypeStruct((bz, S, 16), jnp.float32),
            jax.ShapeDtypeStruct((bz * num_head, S, S), jnp.float32),
            jax.ShapeDtypeStruct((bz, node), jnp.float32),
        ),
    )(m, node_feature,
      params['gcn0_w'], r(params['gcn0_b']), r(params['norm0_g']), r(params['norm0_b']),
      params['gcn1_w'], r(params['gcn1_b']), r(params['norm1_g']), r(params['norm1_b']),
      params['gcn2_w1'], r(params['gcn2_b1']), params['gcn2_w2'], r(params['gcn2_b2']),
      params['fc_sc_w'], r(params['fc_sc_b']), r(params['norm2_g']), r(params['norm2_b']),
      params['cls'],
      params['wq'], r(params['bq']), params['wk'], r(params['bk']),
      params['wv'], r(params['bv']), params['wo'], r(params['bo']))

    cor_matrix = attn_flat.reshape(bz, num_head, S, S)
    return out, cor_matrix, score


# ----------------------------------------------------------------------------
# Fused 3-layer classifier head: Linear(16,64)+LReLU -> Linear(64,32)+LReLU -> Linear(32,2)
# ----------------------------------------------------------------------------

def _fcn_head_kernel(x_ref, w1_ref, b1_ref, w2_ref, b2_ref, w3_ref, b3_ref, o_ref):
    y = _leaky(_mm(x_ref[...], w1_ref[...]) + b1_ref[...])
    y = _leaky(_mm(y, w2_ref[...]) + b2_ref[...])
    y = _mm(y, w3_ref[...]) + b3_ref[...]
    o_ref[...] = y.astype(o_ref.dtype)


def fcn_head(x, w1, b1, w2, b2, w3, b3):
    m_rows = x.shape[0]
    d3 = w3.shape[1]
    return pl.pallas_call(
        _fcn_head_kernel,
        out_shape=jax.ShapeDtypeStruct((m_rows, d3), jnp.float32),
    )(x, w1, b1.reshape(1, -1), w2, b2.reshape(1, -1), w3, b3.reshape(1, -1))


# ----------------------------------------------------------------------------
# Parameter init (deterministic, synthetic; right-multiplication (in, out) layout)
# ----------------------------------------------------------------------------

def init_params(key, roi_num, num_head=NUM_HEAD, head_dim=HEAD_DIM):
    ks = iter(jax.random.split(key, 40))

    def w(shape, scale=0.1):
        return jax.random.normal(next(ks), shape, jnp.float32) * scale

    hd = num_head * head_dim
    return {
        'gcn0_w': w((roi_num, roi_num)), 'gcn0_b': w((roi_num,)),
        'gcn1_w': w((roi_num, roi_num)), 'gcn1_b': w((roi_num,)),
        'gcn2_w1': w((roi_num, 64)), 'gcn2_b1': w((64,)),
        'gcn2_w2': w((64, 16)), 'gcn2_b2': w((16,)),
        'fc_sc_w': w((roi_num, 16)), 'fc_sc_b': w((16,)),
        'norm0_g': jnp.ones((roi_num,), jnp.float32), 'norm0_b': jnp.zeros((roi_num,), jnp.float32),
        'norm1_g': jnp.ones((roi_num,), jnp.float32), 'norm1_b': jnp.zeros((roi_num,), jnp.float32),
        'norm2_g': jnp.ones((16,), jnp.float32), 'norm2_b': jnp.zeros((16,), jnp.float32),
        'cls': jnp.zeros((1, 16), jnp.float32),
        'wq': w((16, hd)), 'bq': w((hd,)),
        'wk': w((16, hd)), 'bk': w((hd,)),
        'wv': w((16, hd)), 'bv': w((hd,)),
        'wo': w((hd, 16)), 'bo': w((16,)),
        'fcn_w1': w((16, 64)), 'fcn_b1': w((64,)),
        'fcn_w2': w((64, 32)), 'fcn_b2': w((32,)),
        'fcn_w3': w((32, 2)), 'fcn_b3': w((2,)),
    }


# ----------------------------------------------------------------------------
# Forward pass: 2 pallas_calls + tiny sort/gather glue in plain JAX
# ----------------------------------------------------------------------------

def gcn_predictor_forward(params, m, node_feature, *, roi_num, pool_ratio=0.7,
                          num_gcn_layers=3):
    # The fused kernel implements the reference default 3-layer GCN stack.
    assert num_gcn_layers == 3, "fused kernel hard-codes the 3-layer reference stack"
    bz, node_num = m.shape[0], m.shape[1]

    out, cor_matrix, score = fused_gcn_mha(params, m, node_feature, roi_num=roi_num)
    sc = score                                              # (bz, node_num), pre-sort copy

    # descending sort + top-k gather + softmax pooling (tiny, kept as plain-JAX glue)
    order = jnp.argsort(-score, axis=-1)
    score_sorted = jnp.take_along_axis(score, order, axis=-1)
    l = int(node_num * pool_ratio)
    x_body = out[:, 1:, :]                                  # (bz, node_num, 16)
    weights = jax.nn.softmax(score_sorted[:, :l], axis=-1)  # (bz, l)
    x_p = jnp.take_along_axis(x_body, order[:, :l, None], axis=1)   # (bz, l, 16)
    x_pool = jnp.einsum('bl,bld->bd', weights, x_p)         # (bz, 16)

    y = fcn_head(x_pool, params['fcn_w1'], params['fcn_b1'],
                 params['fcn_w2'], params['fcn_b2'],
                 params['fcn_w3'], params['fcn_b3'])

    return y, jax.nn.sigmoid(sc), cor_matrix


# ----------------------------------------------------------------------------
# Demo
# ----------------------------------------------------------------------------

if __name__ == "__main__":
    bz = 2
    roi = 16          # node_num == roi_num (required by the reshape in the reference model)
    key = jax.random.PRNGKey(0)
    k_m, k_x, k_p = jax.random.split(key, 3)

    m = jax.random.uniform(k_m, (bz, roi, roi), jnp.float32)
    node_feature = jax.random.normal(k_x, (bz, roi, roi), jnp.float32) * 0.1
    params = init_params(k_p, roi_num=roi)

    logits, sc_sigmoid, cor_matrix = gcn_predictor_forward(
        params, m, node_feature, roi_num=roi, pool_ratio=0.7, num_gcn_layers=3)
    jax.block_until_ready((logits, sc_sigmoid, cor_matrix))

    assert logits.shape == (bz, 2)
    assert sc_sigmoid.shape == (bz, roi)
    assert cor_matrix.shape == (bz, NUM_HEAD, roi + 1, roi + 1)
    print("KERNEL_OK")
</pallas_src>

<mosaic_0001>
module attributes {stable_mosaic.version = 11 : i64} {
  func.func @_fused_gcn_mha_kernel(%arg0: memref<2x16x16xf32, #tpu.memory_space<vmem>>, %arg1: memref<2x16x16xf32, #tpu.memory_space<vmem>>, %arg2: memref<16x16xf32, #tpu.memory_space<vmem>>, %arg3: memref<1x16xf32, #tpu.memory_space<vmem>>, %arg4: memref<1x16xf32, #tpu.memory_space<vmem>>, %arg5: memref<1x16xf32, #tpu.memory_space<vmem>>, %arg6: memref<16x16xf32, #tpu.memory_space<vmem>>, %arg7: memref<1x16xf32, #tpu.memory_space<vmem>>, %arg8: memref<1x16xf32, #tpu.memory_space<vmem>>, %arg9: memref<1x16xf32, #tpu.memory_space<vmem>>, %arg10: memref<16x64xf32, #tpu.memory_space<vmem>>, %arg11: memref<1x64xf32, #tpu.memory_space<vmem>>, %arg12: memref<64x16xf32, #tpu.memory_space<vmem>>, %arg13: memref<1x16xf32, #tpu.memory_space<vmem>>, %arg14: memref<16x16xf32, #tpu.memory_space<vmem>>, %arg15: memref<1x16xf32, #tpu.memory_space<vmem>>, %arg16: memref<1x16xf32, #tpu.memory_space<vmem>>, %arg17: memref<1x16xf32, #tpu.memory_space<vmem>>, %arg18: memref<1x16xf32, #tpu.memory_space<vmem>>, %arg19: memref<16x32xf32, #tpu.memory_space<vmem>>, %arg20: memref<1x32xf32, #tpu.memory_space<vmem>>, %arg21: memref<16x32xf32, #tpu.memory_space<vmem>>, %arg22: memref<1x32xf32, #tpu.memory_space<vmem>>, %arg23: memref<16x32xf32, #tpu.memory_space<vmem>>, %arg24: memref<1x32xf32, #tpu.memory_space<vmem>>, %arg25: memref<32x16xf32, #tpu.memory_space<vmem>>, %arg26: memref<1x16xf32, #tpu.memory_space<vmem>>, %arg27: memref<2x17x16xf32, #tpu.memory_space<vmem>>, %arg28: memref<8x17x17xf32, #tpu.memory_space<vmem>>, %arg29: memref<2x16xf32, #tpu.memory_space<vmem>>) attributes {dimension_semantics = [], scalar_prefetch = 0 : i64, scratch_operands = 0 : i64, tpu.core_type = #tpu.core_type<tc>} {
    %c0 = arith.constant 0 : index
    %c0_0 = arith.constant 0 : index
    %c0_1 = arith.constant 0 : index
    %0 = vector.load %arg0[%c0, %c0_0, %c0_1] : memref<2x16x16xf32, #tpu.memory_space<vmem>>, vector<2x16x16xf32>
    %1 = vector.shape_cast %0 : vector<2x16x16xf32> to vector<32x16xf32>
    %cst = arith.constant dense<0.000000e+00> : vector<32xf32>
    %2 = vector.multi_reduction <add>, %1, %cst [1] : vector<32x16xf32> to vector<32xf32>
    %3 = vector.shape_cast %2 : vector<32xf32> to vector<32x1xf32>
    %c0_2 = arith.constant 0 : index
    %c0_3 = arith.constant 0 : index
    %c0_4 = arith.constant 0 : index
    %4 = vector.load %arg1[%c0_2, %c0_3, %c0_4] : memref<2x16x16xf32, #tpu.memory_space<vmem>>, vector<2x16x16xf32>
    %5 = vector.shape_cast %4 : vector<2x16x16xf32> to vector<32x16xf32>
    %6 = vector.broadcast %3 : vector<32x1xf32> to vector<32x16xf32>
    %7 = arith.mulf %5, %6 : vector<32x16xf32>
    %c0_5 = arith.constant 0 : index
    %c0_6 = arith.constant 0 : index
    %8 = vector.load %arg2[%c0_5, %c0_6] : memref<16x16xf32, #tpu.memory_space<vmem>>, vector<16x16xf32>
    %cst_7 = arith.constant dense<0.000000e+00> : vector<32x16xf32>
    %9 = tpu.matmul %7, %8, %cst_7 {dimension_numbers = #tpu.dot_dimension_numbers<[1], [0], [0], [1], [0, 0, 1, 1], [], []>} : vector<32x16xf32>, vector<16x16xf32>, vector<32x16xf32> -> vector<32x16xf32>
    %c0_8 = arith.constant 0 : index
    %c0_9 = arith.constant 0 : index
    %10 = vector.load %arg3[%c0_8, %c0_9] : memref<1x16xf32, #tpu.memory_space<vmem>>, vector<1x16xf32>
    %11 = vector.broadcast %10 : vector<1x16xf32> to vector<32x16xf32>
    %12 = arith.addf %9, %11 : vector<32x16xf32>
    %cst_10 = arith.constant 0.000000e+00 : f32
    %13 = vector.broadcast %cst_10 : f32 to vector<32x16xf32>
    %14 = arith.cmpf oge, %12, %13 : vector<32x16xf32>
    %cst_11 = arith.constant 2.000000e-01 : f32
    %15 = vector.broadcast %cst_11 : f32 to vector<32x16xf32>
    %16 = arith.mulf %15, %12 : vector<32x16xf32>
    %17 = arith.select %14, %12, %16 : vector<32x16xi1>, vector<32x16xf32>
    %c0_12 = arith.constant 0 : index
    %c0_13 = arith.constant 0 : index
    %18 = vector.load %arg4[%c0_12, %c0_13] : memref<1x16xf32, #tpu.memory_space<vmem>>, vector<1x16xf32>
    %c0_14 = arith.constant 0 : index
    %c0_15 = arith.constant 0 : index
    %19 = vector.load %arg5[%c0_14, %c0_15] : memref<1x16xf32, #tpu.memory_space<vmem>>, vector<1x16xf32>
    %cst_16 = arith.constant dense<0.000000e+00> : vector<16xf32>
    %20 = vector.multi_reduction <add>, %17, %cst_16 [0] : vector<32x16xf32> to vector<16xf32>
    %21 = vector.shape_cast %20 : vector<16xf32> to vector<1x16xf32>
    %cst_17 = arith.constant 3.200000e+01 : f32
    %22 = vector.broadcast %cst_17 : f32 to vector<1x16xf32>
    %23 = arith.divf %21, %22 : vector<1x16xf32>
    %24 = vector.broadcast %23 : vector<1x16xf32> to vector<32x16xf32>
    %25 = arith.subf %17, %24 : vector<32x16xf32>
    %26 = arith.mulf %25, %25 : vector<32x16xf32>
    %cst_18 = arith.constant dense<0.000000e+00> : vector<16xf32>
    %27 = vector.multi_reduction <add>, %26, %cst_18 [0] : vector<32x16xf32> to vector<16xf32>
    %28 = vector.shape_cast %27 : vector<16xf32> to vector<1x16xf32>
    %cst_19 = arith.constant 3.200000e+01 : f32
    %29 = vector.broadcast %cst_19 : f32 to vector<1x16xf32>
    %30 = arith.divf %28, %29 : vector<1x16xf32>
    %31 = vector.broadcast %23 : vector<1x16xf32> to vector<32x16xf32>
    %32 = arith.subf %17, %31 : vector<32x16xf32>
    %cst_20 = arith.constant 9.99999974E-6 : f32
    %33 = vector.broadcast %cst_20 : f32 to vector<1x16xf32>
    %34 = arith.addf %30, %33 : vector<1x16xf32>
    %35 = math.rsqrt %34 : vector<1x16xf32>
    %36 = vector.broadcast %35 : vector<1x16xf32> to vector<32x16xf32>
    %37 = arith.mulf %32, %36 : vector<32x16xf32>
    %38 = vector.broadcast %18 : vector<1x16xf32> to vector<32x16xf32>
    %39 = arith.mulf %37, %38 : vector<32x16xf32>
    %40 = vector.broadcast %19 : vector<1x16xf32> to vector<32x16xf32>
    %41 = arith.addf %39, %40 : vector<32x16xf32>
    %42 = vector.broadcast %3 : vector<32x1xf32> to vector<32x16xf32>
    %43 = arith.mulf %41, %42 : vector<32x16xf32>
    %c0_21 = arith.constant 0 : index
    %c0_22 = arith.constant 0 : index
    %44 = vector.load %arg6[%c0_21, %c0_22] : memref<16x16xf32, #tpu.memory_space<vmem>>, vector<16x16xf32>
    %cst_23 = arith.constant dense<0.000000e+00> : vector<32x16xf32>
    %45 = tpu.matmul %43, %44, %cst_23 {dimension_numbers = #tpu.dot_dimension_numbers<[1], [0], [0], [1], [0, 0, 1, 1], [], []>} : vector<32x16xf32>, vector<16x16xf32>, vector<32x16xf32> -> vector<32x16xf32>
    %c0_24 = arith.constant 0 : index
    %c0_25 = arith.constant 0 : index
    %46 = vector.load %arg7[%c0_24, %c0_25] : memref<1x16xf32, #tpu.memory_space<vmem>>, vector<1x16xf32>
    %47 = vector.broadcast %46 : vector<1x16xf32> to vector<32x16xf32>
    %48 = arith.addf %45, %47 : vector<32x16xf32>
    %cst_26 = arith.constant 0.000000e+00 : f32
    %49 = vector.broadcast %cst_26 : f32 to vector<32x16xf32>
    %50 = arith.cmpf oge, %48, %49 : vector<32x16xf32>
    %cst_27 = arith.constant 2.000000e-01 : f32
    %51 = vector.broadcast %cst_27 : f32 to vector<32x16xf32>
    %52 = arith.mulf %51, %48 : vector<32x16xf32>
    %53 = arith.select %50, %48, %52 : vector<32x16xi1>, vector<32x16xf32>
    %54 = arith.addf %53, %41 : vector<32x16xf32>
    %c0_28 = arith.constant 0 : index
    %c0_29 = arith.constant 0 : index
    %55 = vector.load %arg8[%c0_28, %c0_29] : memref<1x16xf32, #tpu.memory_space<vmem>>, vector<1x16xf32>
    %c0_30 = arith.constant 0 : index
    %c0_31 = arith.constant 0 : index
    %56 = vector.load %arg9[%c0_30, %c0_31] : memref<1x16xf32, #tpu.memory_space<vmem>>, vector<1x16xf32>
    %cst_32 = arith.constant dense<0.000000e+00> : vector<16xf32>
    %57 = vector.multi_reduction <add>, %54, %cst_32 [0] : vector<32x16xf32> to vector<16xf32>
    %58 = vector.shape_cast %57 : vector<16xf32> to vector<1x16xf32>
    %cst_33 = arith.constant 3.200000e+01 : f32
    %59 = vector.broadcast %cst_33 : f32 to vector<1x16xf32>
    %60 = arith.divf %58, %59 : vector<1x16xf32>
    %61 = vector.broadcast %60 : vector<1x16xf32> to vector<32x16xf32>
    %62 = arith.subf %54, %61 : vector<32x16xf32>
    %63 = arith.mulf %62, %62 : vector<32x16xf32>
    %cst_34 = arith.constant dense<0.000000e+00> : vector<16xf32>
    %64 = vector.multi_reduction <add>, %63, %cst_34 [0] : vector<32x16xf32> to vector<16xf32>
    %65 = vector.shape_cast %64 : vector<16xf32> to vector<1x16xf32>
    %cst_35 = arith.constant 3.200000e+01 : f32
    %66 = vector.broadcast %cst_35 : f32 to vector<1x16xf32>
    %67 = arith.divf %65, %66 : vector<1x16xf32>
    %68 = vector.broadcast %60 : vector<1x16xf32> to vector<32x16xf32>
    %69 = arith.subf %54, %68 : vector<32x16xf32>
    %cst_36 = arith.constant 9.99999974E-6 : f32
    %70 = vector.broadcast %cst_36 : f32 to vector<1x16xf32>
    %71 = arith.addf %67, %70 : vector<1x16xf32>
    %72 = math.rsqrt %71 : vector<1x16xf32>
    %73 = vector.broadcast %72 : vector<1x16xf32> to vector<32x16xf32>
    %74 = arith.mulf %69, %73 : vector<32x16xf32>
    %75 = vector.broadcast %55 : vector<1x16xf32> to vector<32x16xf32>
    %76 = arith.mulf %74, %75 : vector<32x16xf32>
    %77 = vector.broadcast %56 : vector<1x16xf32> to vector<32x16xf32>
    %78 = arith.addf %76, %77 : vector<32x16xf32>
    %79 = vector.broadcast %3 : vector<32x1xf32> to vector<32x16xf32>
    %80 = arith.mulf %78, %79 : vector<32x16xf32>
    %c0_37 = arith.constant 0 : index
    %c0_38 = arith.constant 0 : index
    %81 = vector.load %arg10[%c0_37, %c0_38] : memref<16x64xf32, #tpu.memory_space<vmem>>, vector<16x64xf32>
    %cst_39 = arith.constant dense<0.000000e+00> : vector<32x64xf32>
    %82 = tpu.matmul %80, %81, %cst_39 {dimension_numbers = #tpu.dot_dimension_numbers<[1], [0], [0], [1], [0, 0, 1, 1], [], []>} : vector<32x16xf32>, vector<16x64xf32>, vector<32x64xf32> -> vector<32x64xf32>
    %c0_40 = arith.constant 0 : index
    %c0_41 = arith.constant 0 : index
    %83 = vector.load %arg11[%c0_40, %c0_41] : memref<1x64xf32, #tpu.memory_space<vmem>>, vector<1x64xf32>
    %84 = vector.broadcast %83 : vector<1x64xf32> to vector<32x64xf32>
    %85 = arith.addf %82, %84 : vector<32x64xf32>
    %cst_42 = arith.constant 0.000000e+00 : f32
    %86 = vector.broadcast %cst_42 : f32 to vector<32x64xf32>
    %87 = arith.cmpf oge, %85, %86 : vector<32x64xf32>
    %cst_43 = arith.constant 2.000000e-01 : f32
    %88 = vector.broadcast %cst_43 : f32 to vector<32x64xf32>
    %89 = arith.mulf %88, %85 : vector<32x64xf32>
    %90 = arith.select %87, %85, %89 : vector<32x64xi1>, vector<32x64xf32>
    %c0_44 = arith.constant 0 : index
    %c0_45 = arith.constant 0 : index
    %91 = vector.load %arg12[%c0_44, %c0_45] : memref<64x16xf32, #tpu.memory_space<vmem>>, vector<64x16xf32>
    %cst_46 = arith.constant dense<0.000000e+00> : vector<32x16xf32>
    %92 = tpu.matmul %90, %91, %cst_46 {dimension_numbers = #tpu.dot_dimension_numbers<[1], [0], [0], [1], [0, 0, 1, 1], [], []>} : vector<32x64xf32>, vector<64x16xf32>, vector<32x16xf32> -> vector<32x16xf32>
    %c0_47 = arith.constant 0 : index
    %c0_48 = arith.constant 0 : index
    %93 = vector.load %arg13[%c0_47, %c0_48] : memref<1x16xf32, #tpu.memory_space<vmem>>, vector<1x16xf32>
    %94 = vector.broadcast %93 : vector<1x16xf32> to vector<32x16xf32>
    %95 = arith.addf %92, %94 : vector<32x16xf32>
    %cst_49 = arith.constant 0.000000e+00 : f32
    %96 = vector.broadcast %cst_49 : f32 to vector<32x16xf32>
    %97 = arith.cmpf oge, %95, %96 : vector<32x16xf32>
    %cst_50 = arith.constant 2.000000e-01 : f32
    %98 = vector.broadcast %cst_50 : f32 to vector<32x16xf32>
    %99 = arith.mulf %98, %95 : vector<32x16xf32>
    %100 = arith.select %97, %95, %99 : vector<32x16xi1>, vector<32x16xf32>
    %c0_51 = arith.constant 0 : index
    %c0_52 = arith.constant 0 : index
    %101 = vector.load %arg14[%c0_51, %c0_52] : memref<16x16xf32, #tpu.memory_space<vmem>>, vector<16x16xf32>
    %cst_53 = arith.constant dense<0.000000e+00> : vector<32x16xf32>
    %102 = tpu.matmul %78, %101, %cst_53 {dimension_numbers = #tpu.dot_dimension_numbers<[1], [0], [0], [1], [0, 0, 1, 1], [], []>} : vector<32x16xf32>, vector<16x16xf32>, vector<32x16xf32> -> vector<32x16xf32>
    %c0_54 = arith.constant 0 : index
    %c0_55 = arith.constant 0 : index
    %103 = vector.load %arg15[%c0_54, %c0_55] : memref<1x16xf32, #tpu.memory_space<vmem>>, vector<1x16xf32>
    %104 = vector.broadcast %103 : vector<1x16xf32> to vector<32x16xf32>
    %105 = arith.addf %102, %104 : vector<32x16xf32>
    %cst_56 = arith.constant 0.000000e+00 : f32
    %106 = vector.broadcast %cst_56 : f32 to vector<32x16xf32>
    %107 = arith.cmpf oge, %105, %106 : vector<32x16xf32>
    %cst_57 = arith.constant 2.000000e-01 : f32
    %108 = vector.broadcast %cst_57 : f32 to vector<32x16xf32>
    %109 = arith.mulf %108, %105 : vector<32x16xf32>
    %110 = arith.select %107, %105, %109 : vector<32x16xi1>, vector<32x16xf32>
    %111 = arith.addf %100, %110 : vector<32x16xf32>
    %c0_58 = arith.constant 0 : index
    %c0_59 = arith.constant 0 : index
    %112 = vector.load %arg16[%c0_58, %c0_59] : memref<1x16xf32, #tpu.memory_space<vmem>>, vector<1x16xf32>
    %c0_60 = arith.constant 0 : index
    %c0_61 = arith.constant 0 : index
    %113 = vector.load %arg17[%c0_60, %c0_61] : memref<1x16xf32, #tpu.memory_space<vmem>>, vector<1x16xf32>
    %cst_62 = arith.constant dense<0.000000e+00> : vector<16xf32>
    %114 = vector.multi_reduction <add>, %111, %cst_62 [0] : vector<32x16xf32> to vector<16xf32>
    %115 = vector.shape_cast %114 : vector<16xf32> to vector<1x16xf32>
    %cst_63 = arith.constant 3.200000e+01 : f32
    %116 = vector.broadcast %cst_63 : f32 to vector<1x16xf32>
    %117 = arith.divf %115, %116 : vector<1x16xf32>
    %118 = vector.broadcast %117 : vector<1x16xf32> to vector<32x16xf32>
    %119 = arith.subf %111, %118 : vector<32x16xf32>
    %120 = arith.mulf %119, %119 : vector<32x16xf32>
    %cst_64 = arith.constant dense<0.000000e+00> : vector<16xf32>
    %121 = vector.multi_reduction <add>, %120, %cst_64 [0] : vector<32x16xf32> to vector<16xf32>
    %122 = vector.shape_cast %121 : vector<16xf32> to vector<1x16xf32>
    %cst_65 = arith.constant 3.200000e+01 : f32
    %123 = vector.broadcast %cst_65 : f32 to vector<1x16xf32>
    %124 = arith.divf %122, %123 : vector<1x16xf32>
    %125 = vector.broadcast %117 : vector<1x16xf32> to vector<32x16xf32>
    %126 = arith.subf %111, %125 : vector<32x16xf32>
    %cst_66 = arith.constant 9.99999974E-6 : f32
    %127 = vector.broadcast %cst_66 : f32 to vector<1x16xf32>
    %128 = arith.addf %124, %127 : vector<1x16xf32>
    %129 = math.rsqrt %128 : vector<1x16xf32>
    %130 = vector.broadcast %129 : vector<1x16xf32> to vector<32x16xf32>
    %131 = arith.mulf %126, %130 : vector<32x16xf32>
    %132 = vector.broadcast %112 : vector<1x16xf32> to vector<32x16xf32>
    %133 = arith.mulf %131, %132 : vector<32x16xf32>
    %134 = vector.broadcast %113 : vector<1x16xf32> to vector<32x16xf32>
    %135 = arith.addf %133, %134 : vector<32x16xf32>
    %c0_67 = arith.constant 0 : index
    %c0_68 = arith.constant 0 : index
    %136 = vector.load %arg18[%c0_67, %c0_68] : memref<1x16xf32, #tpu.memory_space<vmem>>, vector<1x16xf32>
    %137 = vector.extract_strided_slice %135 {offsets = [0, 0], sizes = [16, 16], strides = [1, 1]} : vector<32x16xf32> to vector<16x16xf32>
    %138 = vector.extract_strided_slice %135 {offsets = [16, 0], sizes = [16, 16], strides = [1, 1]} : vector<32x16xf32> to vector<16x16xf32>
    %139 = tpu.concatenate %136, %137, %136, %138 in 0 : vector<1x16xf32>, vector<16x16xf32>, vector<1x16xf32>, vector<16x16xf32> -> vector<34x16xf32>
    %c0_69 = arith.constant 0 : index
    %c0_70 = arith.constant 0 : index
    %140 = vector.load %arg19[%c0_69, %c0_70] : memref<16x32xf32, #tpu.memory_space<vmem>>, vector<16x32xf32>
    %cst_71 = arith.constant dense<0.000000e+00> : vector<34x32xf32>
    %141 = tpu.matmul %139, %140, %cst_71 {dimension_numbers = #tpu.dot_dimension_numbers<[1], [0], [0], [1], [0, 0, 1, 1], [], []>} : vector<34x16xf32>, vector<16x32xf32>, vector<34x32xf32> -> vector<34x32xf32>
    %c0_72 = arith.constant 0 : index
    %c0_73 = arith.constant 0 : index
    %142 = vector.load %arg20[%c0_72, %c0_73] : memref<1x32xf32, #tpu.memory_space<vmem>>, vector<1x32xf32>
    %143 = vector.broadcast %142 : vector<1x32xf32> to vector<34x32xf32>
    %144 = arith.addf %141, %143 : vector<34x32xf32>
    %c0_74 = arith.constant 0 : index
    %c0_75 = arith.constant 0 : index
    %145 = vector.load %arg21[%c0_74, %c0_75] : memref<16x32xf32, #tpu.memory_space<vmem>>, vector<16x32xf32>
    %cst_76 = arith.constant dense<0.000000e+00> : vector<34x32xf32>
    %146 = tpu.matmul %139, %145, %cst_76 {dimension_numbers = #tpu.dot_dimension_numbers<[1], [0], [0], [1], [0, 0, 1, 1], [], []>} : vector<34x16xf32>, vector<16x32xf32>, vector<34x32xf32> -> vector<34x32xf32>
    %c0_77 = arith.constant 0 : index
    %c0_78 = arith.constant 0 : index
    %147 = vector.load %arg22[%c0_77, %c0_78] : memref<1x32xf32, #tpu.memory_space<vmem>>, vector<1x32xf32>
    %148 = vector.broadcast %147 : vector<1x32xf32> to vector<34x32xf32>
    %149 = arith.addf %146, %148 : vector<34x32xf32>
    %c0_79 = arith.constant 0 : index
    %c0_80 = arith.constant 0 : index
    %150 = vector.load %arg23[%c0_79, %c0_80] : memref<16x32xf32, #tpu.memory_space<vmem>>, vector<16x32xf32>
    %cst_81 = arith.constant dense<0.000000e+00> : vector<34x32xf32>
    %151 = tpu.matmul %139, %150, %cst_81 {dimension_numbers = #tpu.dot_dimension_numbers<[1], [0], [0], [1], [0, 0, 1, 1], [], []>} : vector<34x16xf32>, vector<16x32xf32>, vector<34x32xf32> -> vector<34x32xf32>
    %c0_82 = arith.constant 0 : index
    %c0_83 = arith.constant 0 : index
    %152 = vector.load %arg24[%c0_82, %c0_83] : memref<1x32xf32, #tpu.memory_space<vmem>>, vector<1x32xf32>
    %153 = vector.broadcast %152 : vector<1x32xf32> to vector<34x32xf32>
    %154 = arith.addf %151, %153 : vector<34x32xf32>
    %155 = vector.extract_strided_slice %144 {offsets = [0, 0], sizes = [17, 8], strides = [1, 1]} : vector<34x32xf32> to vector<17x8xf32>
    %156 = vector.extract_strided_slice %149 {offsets = [0, 0], sizes = [17, 8], strides = [1, 1]} : vector<34x32xf32> to vector<17x8xf32>
    %157 = vector.extract_strided_slice %154 {offsets = [0, 0], sizes = [17, 8], strides = [1, 1]} : vector<34x32xf32> to vector<17x8xf32>
    %cst_84 = arith.constant dense<0.000000e+00> : vector<17x17xf32>
    %158 = tpu.matmul %155, %156, %cst_84 {dimension_numbers = #tpu.dot_dimension_numbers<[1], [1], [0], [0], [0, 0, 1, 0], [], []>} : vector<17x8xf32>, vector<17x8xf32>, vector<17x17xf32> -> vector<17x17xf32>
    %cst_85 = arith.constant 0.353553385 : f32
    %159 = vector.broadcast %cst_85 : f32 to vector<17x17xf32>
    %160 = arith.mulf %158, %159 : vector<17x17xf32>
    %cst_86 = arith.constant dense<0xFF800000> : vector<17xf32>
    %161 = vector.multi_reduction <maximumf>, %160, %cst_86 [1] : vector<17x17xf32> to vector<17xf32>
    %162 = vector.shape_cast %161 : vector<17xf32> to vector<17x1xf32>
    %163 = vector.broadcast %162 : vector<17x1xf32> to vector<17x17xf32>
    %164 = arith.subf %160, %163 : vector<17x17xf32>
    %165 = math.exp %164 : vector<17x17xf32>
    %cst_87 = arith.constant dense<0.000000e+00> : vector<17xf32>
    %166 = vector.multi_reduction <add>, %165, %cst_87 [1] : vector<17x17xf32> to vector<17xf32>
    %167 = vector.shape_cast %166 : vector<17xf32> to vector<17x1xf32>
    %168 = vector.broadcast %167 : vector<17x1xf32> to vector<17x17xf32>
    %169 = arith.divf %165, %168 : vector<17x17xf32>
    %c0_88 = arith.constant 0 : index
    %c0_89 = arith.constant 0 : index
    %c0_90 = arith.constant 0 : index
    %170 = vector.load %arg28[%c0_88, %c0_89, %c0_90] : memref<8x17x17xf32, #tpu.memory_space<vmem>>, vector<1x17x17xf32>
    %171 = vector.shape_cast %170 : vector<1x17x17xf32> to vector<17x17xf32>
    %172 = vector.shape_cast %169 : vector<17x17xf32> to vector<1x17x17xf32>
    tpu.vector_store %arg28[%c0_88, %c0_89, %c0_90], %172 {strides = array<i32>} : memref<8x17x17xf32, #tpu.memory_space<vmem>>, vector<1x17x17xf32>,
    %cst_91 = arith.constant dense<0.000000e+00> : vector<17x8xf32>
    %173 = tpu.matmul %169, %157, %cst_91 {dimension_numbers = #tpu.dot_dimension_numbers<[1], [0], [0], [1], [0, 0, 1, 1], [], []>} : vector<17x17xf32>, vector<17x8xf32>, vector<17x8xf32> -> vector<17x8xf32>
    %174 = vector.extract_strided_slice %169 {offsets = [0, 1], sizes = [1, 16], strides = [1, 1]} : vector<17x17xf32> to vector<1x16xf32>
    %175 = vector.extract_strided_slice %144 {offsets = [0, 8], sizes = [17, 8], strides = [1, 1]} : vector<34x32xf32> to vector<17x8xf32>
    %176 = vector.extract_strided_slice %149 {offsets = [0, 8], sizes = [17, 8], strides = [1, 1]} : vector<34x32xf32> to vector<17x8xf32>
    %177 = vector.extract_strided_slice %154 {offsets = [0, 8], sizes = [17, 8], strides = [1, 1]} : vector<34x32xf32> to vector<17x8xf32>
    %cst_92 = arith.constant dense<0.000000e+00> : vector<17x17xf32>
    %178 = tpu.matmul %175, %176, %cst_92 {dimension_numbers = #tpu.dot_dimension_numbers<[1], [1], [0], [0], [0, 0, 1, 0], [], []>} : vector<17x8xf32>, vector<17x8xf32>, vector<17x17xf32> -> vector<17x17xf32>
    %cst_93 = arith.constant 0.353553385 : f32
    %179 = vector.broadcast %cst_93 : f32 to vector<17x17xf32>
    %180 = arith.mulf %178, %179 : vector<17x17xf32>
    %cst_94 = arith.constant dense<0xFF800000> : vector<17xf32>
    %181 = vector.multi_reduction <maximumf>, %180, %cst_94 [1] : vector<17x17xf32> to vector<17xf32>
    %182 = vector.shape_cast %181 : vector<17xf32> to vector<17x1xf32>
    %183 = vector.broadcast %182 : vector<17x1xf32> to vector<17x17xf32>
    %184 = arith.subf %180, %183 : vector<17x17xf32>
    %185 = math.exp %184 : vector<17x17xf32>
    %cst_95 = arith.constant dense<0.000000e+00> : vector<17xf32>
    %186 = vector.multi_reduction <add>, %185, %cst_95 [1] : vector<17x17xf32> to vector<17xf32>
    %187 = vector.shape_cast %186 : vector<17xf32> to vector<17x1xf32>
    %188 = vector.broadcast %187 : vector<17x1xf32> to vector<17x17xf32>
    %189 = arith.divf %185, %188 : vector<17x17xf32>
    %c1 = arith.constant 1 : index
    %c0_96 = arith.constant 0 : index
    %c0_97 = arith.constant 0 : index
    %190 = vector.load %arg28[%c1, %c0_96, %c0_97] : memref<8x17x17xf32, #tpu.memory_space<vmem>>, vector<1x17x17xf32>
    %191 = vector.shape_cast %190 : vector<1x17x17xf32> to vector<17x17xf32>
    %192 = vector.shape_cast %189 : vector<17x17xf32> to vector<1x17x17xf32>
    tpu.vector_store %arg28[%c1, %c0_96, %c0_97], %192 {strides = array<i32>} : memref<8x17x17xf32, #tpu.memory_space<vmem>>, vector<1x17x17xf32>,
    %cst_98 = arith.constant dense<0.000000e+00> : vector<17x8xf32>
    %193 = tpu.matmul %189, %177, %cst_98 {dimension_numbers = #tpu.dot_dimension_numbers<[1], [0], [0], [1], [0, 0, 1, 1], [], []>} : vector<17x17xf32>, vector<17x8xf32>, vector<17x8xf32> -> vector<17x8xf32>
    %194 = vector.extract_strided_slice %189 {offsets = [0, 1], sizes = [1, 16], strides = [1, 1]} : vector<17x17xf32> to vector<1x16xf32>
    %195 = arith.addf %174, %194 : vector<1x16xf32>
    %196 = vector.extract_strided_slice %144 {offsets = [0, 16], sizes = [17, 8], strides = [1, 1]} : vector<34x32xf32> to vector<17x8xf32>
    %197 = vector.extract_strided_slice %149 {offsets = [0, 16], sizes = [17, 8], strides = [1, 1]} : vector<34x32xf32> to vector<17x8xf32>
    %198 = vector.extract_strided_slice %154 {offsets = [0, 16], sizes = [17, 8], strides = [1, 1]} : vector<34x32xf32> to vector<17x8xf32>
    %cst_99 = arith.constant dense<0.000000e+00> : vector<17x17xf32>
    %199 = tpu.matmul %196, %197, %cst_99 {dimension_numbers = #tpu.dot_dimension_numbers<[1], [1], [0], [0], [0, 0, 1, 0], [], []>} : vector<17x8xf32>, vector<17x8xf32>, vector<17x17xf32> -> vector<17x17xf32>
    %cst_100 = arith.constant 0.353553385 : f32
    %200 = vector.broadcast %cst_100 : f32 to vector<17x17xf32>
    %201 = arith.mulf %199, %200 : vector<17x17xf32>
    %cst_101 = arith.constant dense<0xFF800000> : vector<17xf32>
    %202 = vector.multi_reduction <maximumf>, %201, %cst_101 [1] : vector<17x17xf32> to vector<17xf32>
    %203 = vector.shape_cast %202 : vector<17xf32> to vector<17x1xf32>
    %204 = vector.broadcast %203 : vector<17x1xf32> to vector<17x17xf32>
    %205 = arith.subf %201, %204 : vector<17x17xf32>
    %206 = math.exp %205 : vector<17x17xf32>
    %cst_102 = arith.constant dense<0.000000e+00> : vector<17xf32>
    %207 = vector.multi_reduction <add>, %206, %cst_102 [1] : vector<17x17xf32> to vector<17xf32>
    %208 = vector.shape_cast %207 : vector<17xf32> to vector<17x1xf32>
    %209 = vector.broadcast %208 : vector<17x1xf32> to vector<17x17xf32>
    %210 = arith.divf %206, %209 : vector<17x17xf32>
    %c2 = arith.constant 2 : index
    %c0_103 = arith.constant 0 : index
    %c0_104 = arith.constant 0 : index
    %211 = vector.load %arg28[%c2, %c0_103, %c0_104] : memref<8x17x17xf32, #tpu.memory_space<vmem>>, vector<1x17x17xf32>
    %212 = vector.shape_cast %211 : vector<1x17x17xf32> to vector<17x17xf32>
    %213 = vector.shape_cast %210 : vector<17x17xf32> to vector<1x17x17xf32>
    tpu.vector_store %arg28[%c2, %c0_103, %c0_104], %213 {strides = array<i32>} : memref<8x17x17xf32, #tpu.memory_space<vmem>>, vector<1x17x17xf32>,
    %cst_105 = arith.constant dense<0.000000e+00> : vector<17x8xf32>
    %214 = tpu.matmul %210, %198, %cst_105 {dimension_numbers = #tpu.dot_dimension_numbers<[1], [0], [0], [1], [0, 0, 1, 1], [], []>} : vector<17x17xf32>, vector<17x8xf32>, vector<17x8xf32> -> vector<17x8xf32>
    %215 = vector.extract_strided_slice %210 {offsets = [0, 1], sizes = [1, 16], strides = [1, 1]} : vector<17x17xf32> to vector<1x16xf32>
    %216 = arith.addf %195, %215 : vector<1x16xf32>
    %217 = vector.extract_strided_slice %144 {offsets = [0, 24], sizes = [17, 8], strides = [1, 1]} : vector<34x32xf32> to vector<17x8xf32>
    %218 = vector.extract_strided_slice %149 {offsets = [0, 24], sizes = [17, 8], strides = [1, 1]} : vector<34x32xf32> to vector<17x8xf32>
    %219 = vector.extract_strided_slice %154 {offsets = [0, 24], sizes = [17, 8], strides = [1, 1]} : vector<34x32xf32> to vector<17x8xf32>
    %cst_106 = arith.constant dense<0.000000e+00> : vector<17x17xf32>
    %220 = tpu.matmul %217, %218, %cst_106 {dimension_numbers = #tpu.dot_dimension_numbers<[1], [1], [0], [0], [0, 0, 1, 0], [], []>} : vector<17x8xf32>, vector<17x8xf32>, vector<17x17xf32> -> vector<17x17xf32>
    %cst_107 = arith.constant 0.353553385 : f32
    %221 = vector.broadcast %cst_107 : f32 to vector<17x17xf32>
    %222 = arith.mulf %220, %221 : vector<17x17xf32>
    %cst_108 = arith.constant dense<0xFF800000> : vector<17xf32>
    %223 = vector.multi_reduction <maximumf>, %222, %cst_108 [1] : vector<17x17xf32> to vector<17xf32>
    %224 = vector.shape_cast %223 : vector<17xf32> to vector<17x1xf32>
    %225 = vector.broadcast %224 : vector<17x1xf32> to vector<17x17xf32>
    %226 = arith.subf %222, %225 : vector<17x17xf32>
    %227 = math.exp %226 : vector<17x17xf32>
    %cst_109 = arith.constant dense<0.000000e+00> : vector<17xf32>
    %228 = vector.multi_reduction <add>, %227, %cst_109 [1] : vector<17x17xf32> to vector<17xf32>
    %229 = vector.shape_cast %228 : vector<17xf32> to vector<17x1xf32>
    %230 = vector.broadcast %229 : vector<17x1xf32> to vector<17x17xf32>
    %231 = arith.divf %227, %230 : vector<17x17xf32>
    %c3 = arith.constant 3 : index
    %c0_110 = arith.constant 0 : index
    %c0_111 = arith.constant 0 : index
    %232 = vector.load %arg28[%c3, %c0_110, %c0_111] : memref<8x17x17xf32, #tpu.memory_space<vmem>>, vector<1x17x17xf32>
    %233 = vector.shape_cast %232 : vector<1x17x17xf32> to vector<17x17xf32>
    %234 = vector.shape_cast %231 : vector<17x17xf32> to vector<1x17x17xf32>
    tpu.vector_store %arg28[%c3, %c0_110, %c0_111], %234 {strides = array<i32>} : memref<8x17x17xf32, #tpu.memory_space<vmem>>, vector<1x17x17xf32>,
    %cst_112 = arith.constant dense<0.000000e+00> : vector<17x8xf32>
    %235 = tpu.matmul %231, %219, %cst_112 {dimension_numbers = #tpu.dot_dimension_numbers<[1], [0], [0], [1], [0, 0, 1, 1], [], []>} : vector<17x17xf32>, vector<17x8xf32>, vector<17x8xf32> -> vector<17x8xf32>
    %236 = vector.extract_strided_slice %231 {offsets = [0, 1], sizes = [1, 16], strides = [1, 1]} : vector<17x17xf32> to vector<1x16xf32>
    %237 = arith.addf %216, %236 : vector<1x16xf32>
    %238 = tpu.concatenate %173, %193, %214, %235 in 1 : vector<17x8xf32>, vector<17x8xf32>, vector<17x8xf32>, vector<17x8xf32> -> vector<17x32xf32>
    %239 = vector.extract_strided_slice %144 {offsets = [17, 0], sizes = [17, 8], strides = [1, 1]} : vector<34x32xf32> to vector<17x8xf32>
    %240 = vector.extract_strided_slice %149 {offsets = [17, 0], sizes = [17, 8], strides = [1, 1]} : vector<34x32xf32> to vector<17x8xf32>
    %241 = vector.extract_strided_slice %154 {offsets = [17, 0], sizes = [17, 8], strides = [1, 1]} : vector<34x32xf32> to vector<17x8xf32>
    %cst_113 = arith.constant dense<0.000000e+00> : vector<17x17xf32>
    %242 = tpu.matmul %239, %240, %cst_113 {dimension_numbers = #tpu.dot_dimension_numbers<[1], [1], [0], [0], [0, 0, 1, 0], [], []>} : vector<17x8xf32>, vector<17x8xf32>, vector<17x17xf32> -> vector<17x17xf32>
    %cst_114 = arith.constant 0.353553385 : f32
    %243 = vector.broadcast %cst_114 : f32 to vector<17x17xf32>
    %244 = arith.mulf %242, %243 : vector<17x17xf32>
    %cst_115 = arith.constant dense<0xFF800000> : vector<17xf32>
    %245 = vector.multi_reduction <maximumf>, %244, %cst_115 [1] : vector<17x17xf32> to vector<17xf32>
    %246 = vector.shape_cast %245 : vector<17xf32> to vector<17x1xf32>
    %247 = vector.broadcast %246 : vector<17x1xf32> to vector<17x17xf32>
    %248 = arith.subf %244, %247 : vector<17x17xf32>
    %249 = math.exp %248 : vector<17x17xf32>
    %cst_116 = arith.constant dense<0.000000e+00> : vector<17xf32>
    %250 = vector.multi_reduction <add>, %249, %cst_116 [1] : vector<17x17xf32> to vector<17xf32>
    %251 = vector.shape_cast %250 : vector<17xf32> to vector<17x1xf32>
    %252 = vector.broadcast %251 : vector<17x1xf32> to vector<17x17xf32>
    %253 = arith.divf %249, %252 : vector<17x17xf32>
    %c4 = arith.constant 4 : index
    %c0_117 = arith.constant 0 : index
    %c0_118 = arith.constant 0 : index
    %254 = vector.load %arg28[%c4, %c0_117, %c0_118] : memref<8x17x17xf32, #tpu.memory_space<vmem>>, vector<1x17x17xf32>
    %255 = vector.shape_cast %254 : vector<1x17x17xf32> to vector<17x17xf32>
    %256 = vector.shape_cast %253 : vector<17x17xf32> to vector<1x17x17xf32>
    tpu.vector_store %arg28[%c4, %c0_117, %c0_118], %256 {strides = array<i32>} : memref<8x17x17xf32, #tpu.memory_space<vmem>>, vector<1x17x17xf32>,
    %cst_119 = arith.constant dense<0.000000e+00> : vector<17x8xf32>
    %257 = tpu.matmul %253, %241, %cst_119 {dimension_numbers = #tpu.dot_dimension_numbers<[1], [0], [0], [1], [0, 0, 1, 1], [], []>} : vector<17x17xf32>, vector<17x8xf32>, vector<17x8xf32> -> vector<17x8xf32>
    %258 = vector.extract_strided_slice %253 {offsets = [0, 1], sizes = [1, 16], strides = [1, 1]} : vector<17x17xf32> to vector<1x16xf32>
    %259 = vector.extract_strided_slice %144 {offsets = [17, 8], sizes = [17, 8], strides = [1, 1]} : vector<34x32xf32> to vector<17x8xf32>
    %260 = vector.extract_strided_slice %149 {offsets = [17, 8], sizes = [17, 8], strides = [1, 1]} : vector<34x32xf32> to vector<17x8xf32>
    %261 = vector.extract_strided_slice %154 {offsets = [17, 8], sizes = [17, 8], strides = [1, 1]} : vector<34x32xf32> to vector<17x8xf32>
    %cst_120 = arith.constant dense<0.000000e+00> : vector<17x17xf32>
    %262 = tpu.matmul %259, %260, %cst_120 {dimension_numbers = #tpu.dot_dimension_numbers<[1], [1], [0], [0], [0, 0, 1, 0], [], []>} : vector<17x8xf32>, vector<17x8xf32>, vector<17x17xf32> -> vector<17x17xf32>
    %cst_121 = arith.constant 0.353553385 : f32
    %263 = vector.broadcast %cst_121 : f32 to vector<17x17xf32>
    %264 = arith.mulf %262, %263 : vector<17x17xf32>
    %cst_122 = arith.constant dense<0xFF800000> : vector<17xf32>
    %265 = vector.multi_reduction <maximumf>, %264, %cst_122 [1] : vector<17x17xf32> to vector<17xf32>
    %266 = vector.shape_cast %265 : vector<17xf32> to vector<17x1xf32>
    %267 = vector.broadcast %266 : vector<17x1xf32> to vector<17x17xf32>
    %268 = arith.subf %264, %267 : vector<17x17xf32>
    %269 = math.exp %268 : vector<17x17xf32>
    %cst_123 = arith.constant dense<0.000000e+00> : vector<17xf32>
    %270 = vector.multi_reduction <add>, %269, %cst_123 [1] : vector<17x17xf32> to vector<17xf32>
    %271 = vector.shape_cast %270 : vector<17xf32> to vector<17x1xf32>
    %272 = vector.broadcast %271 : vector<17x1xf32> to vector<17x17xf32>
    %273 = arith.divf %269, %272 : vector<17x17xf32>
    %c5 = arith.constant 5 : index
    %c0_124 = arith.constant 0 : index
    %c0_125 = arith.constant 0 : index
    %274 = vector.load %arg28[%c5, %c0_124, %c0_125] : memref<8x17x17xf32, #tpu.memory_space<vmem>>, vector<1x17x17xf32>
    %275 = vector.shape_cast %274 : vector<1x17x17xf32> to vector<17x17xf32>
    %276 = vector.shape_cast %273 : vector<17x17xf32> to vector<1x17x17xf32>
    tpu.vector_store %arg28[%c5, %c0_124, %c0_125], %276 {strides = array<i32>} : memref<8x17x17xf32, #tpu.memory_space<vmem>>, vector<1x17x17xf32>,
    %cst_126 = arith.constant dense<0.000000e+00> : vector<17x8xf32>
    %277 = tpu.matmul %273, %261, %cst_126 {dimension_numbers = #tpu.dot_dimension_numbers<[1], [0], [0], [1], [0, 0, 1, 1], [], []>} : vector<17x17xf32>, vector<17x8xf32>, vector<17x8xf32> -> vector<17x8xf32>
    %278 = vector.extract_strided_slice %273 {offsets = [0, 1], sizes = [1, 16], strides = [1, 1]} : vector<17x17xf32> to vector<1x16xf32>
    %279 = arith.addf %258, %278 : vector<1x16xf32>
    %280 = vector.extract_strided_slice %144 {offsets = [17, 16], sizes = [17, 8], strides = [1, 1]} : vector<34x32xf32> to vector<17x8xf32>
    %281 = vector.extract_strided_slice %149 {offsets = [17, 16], sizes = [17, 8], strides = [1, 1]} : vector<34x32xf32> to vector<17x8xf32>
    %282 = vector.extract_strided_slice %154 {offsets = [17, 16], sizes = [17, 8], strides = [1, 1]} : vector<34x32xf32> to vector<17x8xf32>
    %cst_127 = arith.constant dense<0.000000e+00> : vector<17x17xf32>
    %283 = tpu.matmul %280, %281, %cst_127 {dimension_numbers = #tpu.dot_dimension_numbers<[1], [1], [0], [0], [0, 0, 1, 0], [], []>} : vector<17x8xf32>, vector<17x8xf32>, vector<17x17xf32> -> vector<17x17xf32>
    %cst_128 = arith.constant 0.353553385 : f32
    %284 = vector.broadcast %cst_128 : f32 to vector<17x17xf32>
    %285 = arith.mulf %283, %284 : vector<17x17xf32>
    %cst_129 = arith.constant dense<0xFF800000> : vector<17xf32>
    %286 = vector.multi_reduction <maximumf>, %285, %cst_129 [1] : vector<17x17xf32> to vector<17xf32>
    %287 = vector.shape_cast %286 : vector<17xf32> to vector<17x1xf32>
    %288 = vector.broadcast %287 : vector<17x1xf32> to vector<17x17xf32>
    %289 = arith.subf %285, %288 : vector<17x17xf32>
    %290 = math.exp %289 : vector<17x17xf32>
    %cst_130 = arith.constant dense<0.000000e+00> : vector<17xf32>
    %291 = vector.multi_reduction <add>, %290, %cst_130 [1] : vector<17x17xf32> to vector<17xf32>
    %292 = vector.shape_cast %291 : vector<17xf32> to vector<17x1xf32>
    %293 = vector.broadcast %292 : vector<17x1xf32> to vector<17x17xf32>
    %294 = arith.divf %290, %293 : vector<17x17xf32>
    %c6 = arith.constant 6 : index
    %c0_131 = arith.constant 0 : index
    %c0_132 = arith.constant 0 : index
    %295 = vector.load %arg28[%c6, %c0_131, %c0_132] : memref<8x17x17xf32, #tpu.memory_space<vmem>>, vector<1x17x17xf32>
    %296 = vector.shape_cast %295 : vector<1x17x17xf32> to vector<17x17xf32>
    %297 = vector.shape_cast %294 : vector<17x17xf32> to vector<1x17x17xf32>
    tpu.vector_store %arg28[%c6, %c0_131, %c0_132], %297 {strides = array<i32>} : memref<8x17x17xf32, #tpu.memory_space<vmem>>, vector<1x17x17xf32>,
    %cst_133 = arith.constant dense<0.000000e+00> : vector<17x8xf32>
    %298 = tpu.matmul %294, %282, %cst_133 {dimension_numbers = #tpu.dot_dimension_numbers<[1], [0], [0], [1], [0, 0, 1, 1], [], []>} : vector<17x17xf32>, vector<17x8xf32>, vector<17x8xf32> -> vector<17x8xf32>
    %299 = vector.extract_strided_slice %294 {offsets = [0, 1], sizes = [1, 16], strides = [1, 1]} : vector<17x17xf32> to vector<1x16xf32>
    %300 = arith.addf %279, %299 : vector<1x16xf32>
    %301 = vector.extract_strided_slice %144 {offsets = [17, 24], sizes = [17, 8], strides = [1, 1]} : vector<34x32xf32> to vector<17x8xf32>
    %302 = vector.extract_strided_slice %149 {offsets = [17, 24], sizes = [17, 8], strides = [1, 1]} : vector<34x32xf32> to vector<17x8xf32>
    %303 = vector.extract_strided_slice %154 {offsets = [17, 24], sizes = [17, 8], strides = [1, 1]} : vector<34x32xf32> to vector<17x8xf32>
    %cst_134 = arith.constant dense<0.000000e+00> : vector<17x17xf32>
    %304 = tpu.matmul %301, %302, %cst_134 {dimension_numbers = #tpu.dot_dimension_numbers<[1], [1], [0], [0], [0, 0, 1, 0], [], []>} : vector<17x8xf32>, vector<17x8xf32>, vector<17x17xf32> -> vector<17x17xf32>
    %cst_135 = arith.constant 0.353553385 : f32
    %305 = vector.broadcast %cst_135 : f32 to vector<17x17xf32>
    %306 = arith.mulf %304, %305 : vector<17x17xf32>
    %cst_136 = arith.constant dense<0xFF800000> : vector<17xf32>
    %307 = vector.multi_reduction <maximumf>, %306, %cst_136 [1] : vector<17x17xf32> to vector<17xf32>
    %308 = vector.shape_cast %307 : vector<17xf32> to vector<17x1xf32>
    %309 = vector.broadcast %308 : vector<17x1xf32> to vector<17x17xf32>
    %310 = arith.subf %306, %309 : vector<17x17xf32>
    %311 = math.exp %310 : vector<17x17xf32>
    %cst_137 = arith.constant dense<0.000000e+00> : vector<17xf32>
    %312 = vector.multi_reduction <add>, %311, %cst_137 [1] : vector<17x17xf32> to vector<17xf32>
    %313 = vector.shape_cast %312 : vector<17xf32> to vector<17x1xf32>
    %314 = vector.broadcast %313 : vector<17x1xf32> to vector<17x17xf32>
    %315 = arith.divf %311, %314 : vector<17x17xf32>
    %c7 = arith.constant 7 : index
    %c0_138 = arith.constant 0 : index
    %c0_139 = arith.constant 0 : index
    %316 = vector.load %arg28[%c7, %c0_138, %c0_139] : memref<8x17x17xf32, #tpu.memory_space<vmem>>, vector<1x17x17xf32>
    %317 = vector.shape_cast %316 : vector<1x17x17xf32> to vector<17x17xf32>
    %318 = vector.shape_cast %315 : vector<17x17xf32> to vector<1x17x17xf32>
    tpu.vector_store %arg28[%c7, %c0_138, %c0_139], %318 {strides = array<i32>} : memref<8x17x17xf32, #tpu.memory_space<vmem>>, vector<1x17x17xf32>,
    %cst_140 = arith.constant dense<0.000000e+00> : vector<17x8xf32>
    %319 = tpu.matmul %315, %303, %cst_140 {dimension_numbers = #tpu.dot_dimension_numbers<[1], [0], [0], [1], [0, 0, 1, 1], [], []>} : vector<17x17xf32>, vector<17x8xf32>, vector<17x8xf32> -> vector<17x8xf32>
    %320 = vector.extract_strided_slice %315 {offsets = [0, 1], sizes = [1, 16], strides = [1, 1]} : vector<17x17xf32> to vector<1x16xf32>
    %321 = arith.addf %300, %320 : vector<1x16xf32>
    %322 = tpu.concatenate %257, %277, %298, %319 in 1 : vector<17x8xf32>, vector<17x8xf32>, vector<17x8xf32>, vector<17x8xf32> -> vector<17x32xf32>
    %323 = tpu.concatenate %238, %322 in 0 : vector<17x32xf32>, vector<17x32xf32> -> vector<34x32xf32>
    %c0_141 = arith.constant 0 : index
    %c0_142 = arith.constant 0 : index
    %324 = vector.load %arg25[%c0_141, %c0_142] : memref<32x16xf32, #tpu.memory_space<vmem>>, vector<32x16xf32>
    %cst_143 = arith.constant dense<0.000000e+00> : vector<34x16xf32>
    %325 = tpu.matmul %323, %324, %cst_143 {dimension_numbers = #tpu.dot_dimension_numbers<[1], [0], [0], [1], [0, 0, 1, 1], [], []>} : vector<34x32xf32>, vector<32x16xf32>, vector<34x16xf32> -> vector<34x16xf32>
    %c0_144 = arith.constant 0 : index
    %c0_145 = arith.constant 0 : index
    %326 = vector.load %arg26[%c0_144, %c0_145] : memref<1x16xf32, #tpu.memory_space<vmem>>, vector<1x16xf32>
    %327 = vector.broadcast %326 : vector<1x16xf32> to vector<34x16xf32>
    %328 = arith.addf %325, %327 : vector<34x16xf32>
    %329 = vector.shape_cast %328 : vector<34x16xf32> to vector<2x17x16xf32>
    %c0_146 = arith.constant 0 : index
    %c0_147 = arith.constant 0 : index
    %c0_148 = arith.constant 0 : index
    %330 = vector.load %arg27[%c0_146, %c0_147, %c0_148] : memref<2x17x16xf32, #tpu.memory_space<vmem>>, vector<2x17x16xf32>
    tpu.vector_store %arg27[%c0_146, %c0_147, %c0_148], %329 {strides = array<i32>} : memref<2x17x16xf32, #tpu.memory_space<vmem>>, vector<2x17x16xf32>,
    %331 = tpu.concatenate %237, %321 in 0 : vector<1x16xf32>, vector<1x16xf32> -> vector<2x16xf32>
    %c0_149 = arith.constant 0 : index
    %c0_150 = arith.constant 0 : index
    %332 = vector.load %arg29[%c0_149, %c0_150] : memref<2x16xf32, #tpu.memory_space<vmem>>, vector<2x16xf32>
    tpu.vector_store %arg29[%c0_149, %c0_150], %331 {strides = array<i32>} : memref<2x16xf32, #tpu.memory_space<vmem>>, vector<2x16xf32>,
    return
  }
}

</mosaic_0001>

<bundles_post_ra>
// kernel: tpu_custom_call.1
= control target key start
LH: loop header
LB: loop body
LE: loop exit
PB: predicated region body
PF: predicated region fallthrough
CT: control target
= control target key end

     0   :  { %s5354_s6 = smov 1   ;;  %s5355_s10 = smov 2   ;;  %s6622_s0 = inlined_call_operand.smem [shape: u32[30], index: -1, kind: input, shape index: {}] }
   0x1   :  { %s5418_s5 = sld [smem:[%s6622_s0]]   ;;  %s5356_s14 = smov 3  }
   0x2   :  { %s5423_s9 = sld [smem:[%s6622_s0 + %s5354_s6]]   ;;  %s5357_s18 = smov 4  }
   0x3   :  { %s5428_s13 = sld [smem:[%s6622_s0 + %s5355_s10]]   ;;  %s5358_s22 = smov 5  }
   0x4   :  { %s5433_s17 = sld [smem:[%s6622_s0 + %s5356_s14]]   ;;  %s5359_s26 = smov 6  }
   0x5   :  { %s5438_s21 = sld [smem:[%s6622_s0 + %s5357_s18]]   ;;  %s5360_s30 = smov 7  }
   0x6   :  { %s5443_s25 = sld [smem:[%s6622_s0 + %s5358_s22]]   ;;  %s5361_s4 = smov 8  }
   0x7   :  { %6631 = sst [smem:[#allocation36_spill]] %s5418_s5  ;;  %s5362_s10 = smov 9  }
   0x8   :  { %6632 = sst [smem:[#allocation37_spill]] %s5423_s9  ;;  %s5363_s15 = smov 10  }
   0x9   :  { %6633 = sst [smem:[#allocation38_spill]] %s5428_s13  ;;  %s5364_s20 = smov 11  }
   0xa   :  { %s5448_s29 = sld [smem:[%s6622_s0 + %s5359_s26]]   ;;  %s5365_s26 = smov 12  }
   0xb   :  { %s5453_s3 = sld [smem:[%s6622_s0 + %s5360_s30]]   ;;  %s5366_s1 = smov 13  }
   0xc   :  { %s5458_s8 = sld [smem:[%s6622_s0 + %s5361_s4]]   ;;  %s5367_s7 = smov 14  }
   0xd   :  { %s5463_s14 = sld [smem:[%s6622_s0 + %s5362_s10]]   ;;  %s5369_s22 = smov 16  }
   0xe   :  { %s5468_s19 = sld [smem:[%s6622_s0 + %s5363_s15]]   ;;  %s5368_s15 = smov 15  }
   0xf   :  { %s5473_s24 = sld [smem:[%s6622_s0 + %s5364_s20]]   ;;  %s5370_s28 = smov 17  }
  0x10   :  { %6634 = sst [smem:[#allocation39_spill]] %s5448_s29 }
  0x11   :  { %s5478_s30 = sld [smem:[%s6622_s0 + %s5365_s26]]  }
  0x12   :  { %s5483_s6 = sld [smem:[%s6622_s0 + %s5366_s1]]  }
  0x13   :  { %s5488_s12 = sld [smem:[%s6622_s0 + %s5367_s7]]   ;;  %s5371_s7 = smov 18  }
  0x14   :  { %6635 = sst [smem:[#allocation40_spill]] %s5468_s19 }
  0x15   :  { %s5493_s20 = sld [smem:[%s6622_s0 + %s5368_s15]]   ;;  %s5372_s15 = smov 19  }
  0x16   :  { %s5498_s27 = sld [smem:[%s6622_s0 + %s5369_s22]]   ;;  %s5373_s22 = smov 20  }
  0x17   :  { %6636 = sst [smem:[#allocation41_spill]] %s5478_s30 }
  0x18   :  { %s5503_s4 = sld [smem:[%s6622_s0 + %s5370_s28]]   ;;  %s5374_s28 = smov 21  }
  0x19   :  { %6637 = sst [smem:[#allocation42_spill]] %s5488_s12 }
  0x1a   :  { %s5508_s30 = sld [smem:[%s6622_s0 + %s5371_s7]]   ;;  %s5375_s7 = smov 22  }
  0x1b   :  { %s5513_s12 = sld [smem:[%s6622_s0 + %s5372_s15]]   ;;  %s5376_s15 = smov 23  }
  0x1c   :  { %s5518_s19 = sld [smem:[%s6622_s0 + %s5373_s22]]   ;;  %s5377_s22 = smov 24  }
  0x1d   :  { %s5523_s29 = sld [smem:[%s6622_s0 + %s5374_s28]]   ;;  %s5378_s28 = smov 25  }
  0x1e   :  { %s5528_s9 = sld [smem:[%s6622_s0 + %s5375_s7]]   ;;  %s5379_s7 = smov 26  }
  0x1f   :  { %s5533_s13 = sld [smem:[%s6622_s0 + %s5376_s15]]   ;;  %s5380_s15 = smov 27  }
  0x20   :  { %s5543_s5 = sld [smem:[%s6622_s0 + %s5378_s28]]   ;;  %s5382_s28 = smov 29  }
  0x22   :  { %6638 = sst [smem:[#allocation43_spill]] %s5518_s19 }
  0x23   :  { %s5538_s19 = sld [smem:[%s6622_s0 + %s5377_s22]]   ;;  %s5381_s22 = smov 28  }
  0x24   :  { %6639 = sst [smem:[#allocation44_spill]] %s5528_s9 }
  0x25   :  { %6640 = sst [smem:[#allocation45_spill]] %s5533_s13 }
  0x26   :  { %6642 = sst [smem:[#allocation47_spill]] %s5543_s5 }
  0x27   :  { %s5548_s9 = sld [smem:[%s6622_s0 + %s5379_s7]]  }
  0x28   :  { %s5553_s13 = sld [smem:[%s6622_s0 + %s5380_s15]]  }
  0x29   :  { %6641 = sst [smem:[#allocation46_spill]] %s5538_s19 }
  0x2a   :  { %s5558_s19 = sld [smem:[%s6622_s0 + %s5381_s22]]  }
  0x2b   :  { %s5563_s5 = sld [smem:[%s6622_s0 + %s5382_s28]]  }
  0x2c   :  { %65 = vsyncpa [#allocation3], 0 }
  0x2d   :  { %66 = vsyncpa [#allocation6], 0 }
  0x2e   :  { %67 = vsyncpa [#allocation9], 0 }
  0x2f   :  { %68 = vsyncpa [#allocation12], 0 }
  0x30   :  { %69 = vsyncpa [#allocation15], 0 }
  0x31   :  { %70 = vsyncpa [#allocation18], 0 }
  0x32   :  { %71 = vsyncpa [#allocation21], 0 }
  0x33   :  { %72 = vsyncpa [#allocation24], 0 }
  0x34   :  { %73 = vsyncpa [#allocation4], 0  ;;  %s5383_s7 = smov [#allocation5]   ;;  %s5384_s11 = smov [#allocation8]  }
  0x35   :  { %s96_s10 = sshll.u32 %s5383_s7, 4  ;;  %s118_s15 = sshll.u32 %s5384_s11, 4  ;;  %s97_s10 = int_to_ptr.vmem [resolvable:$true] %s96_s10  ;;  %s119_s15 = int_to_ptr.vmem [resolvable:$true] %s118_s15 }
  0x36   :  { %s5024_s16 = scalar_lea.vmem %s97_s10, 16  ;;  %s5028_s18 = scalar_lea.vmem %s97_s10, 32 }
  0x37   :  { %p5025_p0 = scmp.ne.s32.totalorder %s97_s10, %s5024_s16  ;;  %p5029_p1 = scmp.lt.s32.totalorder %s97_s10, %s97_s10 }
  0x38   :  { %p5030_p2 = scmp.lt.s32.totalorder %s5028_s18, %s5024_s16 }
  0x3a   :  { %p5031_p3 = por %p5030_p2, %p5029_p1 }
  0x3c   :  { %p5032_p4 = pnand %p5031_p3, %p5025_p0 }
  0x3e   :  { %5035 = shalt.err (!%p5032_p4)
}
  0x3f   :  { %99 = dma.hbm_to_vmem [thread:$0]  %s5438_s21, 16, %s97_s10, [#allocation6]  }
  0x40   :  { %s5044_s0 = scalar_lea.vmem %s119_s15, 16  ;;  %s5048_s22 = scalar_lea.vmem %s119_s15, 32 }
  0x41   :  { %p5045_p5 = scmp.ne.s32.totalorder %s119_s15, %s5044_s0  ;;  %p5049_p6 = scmp.lt.s32.totalorder %s119_s15, %s119_s15 }
  0x42   :  { %p5050_p7 = scmp.lt.s32.totalorder %s5048_s22, %s5044_s0 }
  0x44   :  { %p5051_p8 = por %p5050_p7, %p5049_p6 }
  0x46   :  { %p5052_p9 = pnand %p5051_p8, %p5045_p5 }
  0x48   :  { %5055 = shalt.err (!%p5052_p9)
}
  0x49   :  { %121 = dma.hbm_to_vmem [thread:$0]  %s5453_s3, 16, %s119_s15, [#allocation9]  }
  0x4a   :  { %s5385_s23 = smov [#allocation11]   ;;  %s5386_s28 = smov [#allocation14]  }
  0x4b   :  { %s138_s26 = sshll.u32 %s5385_s23, 4  ;;  %s162_s1 = sshll.u32 %s5386_s28, 4  ;;  %s139_s26 = int_to_ptr.vmem [resolvable:$true] %s138_s26  ;;  %s163_s1 = int_to_ptr.vmem [resolvable:$true] %s162_s1 }
  0x4c   :  { %s5064_s2 = scalar_lea.vmem %s139_s26, 16  ;;  %s5068_s7 = scalar_lea.vmem %s139_s26, 32 }
  0x4d   :  { %p5065_p10 = scmp.ne.s32.totalorder %s139_s26, %s5064_s2  ;;  %p5069_p11 = scmp.lt.s32.totalorder %s139_s26, %s139_s26 }
  0x4e   :  { %p5070_p12 = scmp.lt.s32.totalorder %s5068_s7, %s5064_s2 }
  0x50   :  { %p5071_p13 = por %p5070_p12, %p5069_p11 }
  0x52   :  { %p5072_p0 = pnand %p5071_p13, %p5065_p10 }
  0x54   :  { %5075 = shalt.err (!%p5072_p0)
}
  0x55   :  { %141 = dma.hbm_to_vmem [thread:$0]  %s5463_s14, 16, %s139_s26, [#allocation12]  }
  0x56   :  { %s5084_s21 = scalar_lea.vmem %s163_s1, 16  ;;  %s5088_s10 = scalar_lea.vmem %s163_s1, 32 }
  0x57   :  { %p5085_p1 = scmp.ne.s32.totalorder %s163_s1, %s5084_s21  ;;  %p5089_p2 = scmp.lt.s32.totalorder %s163_s1, %s163_s1 }
  0x58   :  { %p5090_p3 = scmp.lt.s32.totalorder %s5088_s10, %s5084_s21 }
  0x5a   :  { %p5091_p4 = por %p5090_p3, %p5089_p2 }
  0x5c   :  { %p5092_p5 = pnand %p5091_p4, %p5085_p1 }
  0x5e   :  { %5095 = shalt.err (!%p5092_p5)
}
  0x5f   :  { %165 = dma.hbm_to_vmem [thread:$0]  %s5483_s6, 16, %s163_s1, [#allocation15]  }
  0x60   :  { %s5387_s3 = smov [#allocation17]   ;;  %s5388_s15 = smov [#allocation20]  }
  0x61   :  { %s184_s11 = sshll.u32 %s5387_s3, 4  ;;  %s204_s16 = sshll.u32 %s5388_s15, 4  ;;  %s185_s11 = int_to_ptr.vmem [resolvable:$true] %s184_s11  ;;  %s205_s16 = int_to_ptr.vmem [resolvable:$true] %s204_s16 }
  0x62   :  { %s5104_s18 = scalar_lea.vmem %s185_s11, 16  ;;  %s5108_s0 = scalar_lea.vmem %s185_s11, 32 }
  0x63   :  { %p5105_p6 = scmp.ne.s32.totalorder %s185_s11, %s5104_s18  ;;  %p5109_p7 = scmp.lt.s32.totalorder %s185_s11, %s185_s11 }
  0x64   :  { %p5110_p8 = scmp.lt.s32.totalorder %s5108_s0, %s5104_s18 }
  0x66   :  { %p5111_p9 = por %p5110_p8, %p5109_p7 }
  0x68   :  { %p5112_p10 = pnand %p5111_p9, %p5105_p6 }
  0x6a   :  { %5115 = shalt.err (!%p5112_p10)
}
  0x6b   :  { %187 = dma.hbm_to_vmem [thread:$0]  %s5498_s27, 16, %s185_s11, [#allocation18]  }
  0x6c   :  { %s5124_s14 = scalar_lea.vmem %s205_s16, 16  ;;  %s5128_s22 = scalar_lea.vmem %s205_s16, 32 }
  0x6d   :  { %p5125_p11 = scmp.ne.s32.totalorder %s205_s16, %s5124_s14  ;;  %p5129_p12 = scmp.lt.s32.totalorder %s205_s16, %s205_s16 }
  0x6e   :  { %p5130_p13 = scmp.lt.s32.totalorder %s5128_s22, %s5124_s14 }
  0x70   :  { %p5131_p0 = por %p5130_p13, %p5129_p12 }
  0x72   :  { %p5132_p1 = pnand %p5131_p0, %p5125_p11 }
  0x74   :  { %5135 = shalt.err (!%p5132_p1)
}
  0x75   :  { %207 = dma.hbm_to_vmem [thread:$0]  %s5508_s30, 16, %s205_s16, [#allocation21]  }
  0x76   :  { %s5389_s6 = smov [#allocation23]   ;;  %s5390_s26 = smov [#allocation2]  }
  0x77   :  { %s227_s23 = sshll.u32 %s5389_s6, 4  ;;  %s86_s28 = sshll.u32 %s5390_s26, 4  ;;  %s228_s23 = int_to_ptr.vmem [resolvable:$true] %s227_s23  ;;  %s87_s28 = int_to_ptr.vmem [resolvable:$true] %s86_s28 }
  0x78   :  { %s5144_s1 = scalar_lea.vmem %s228_s23, 256  ;;  %p5149_p3 = scmp.lt.s32.totalorder %s228_s23, %s228_s23 }
  0x79   :  { %p5145_p2 = scmp.ne.s32.totalorder %s228_s23, %s5144_s1  ;;  %p5150_p4 = scmp.lt.s32.totalorder %s5144_s1, %s5144_s1 }
  0x7b   :  { %p5151_p5 = por %p5150_p4, %p5149_p3 }
  0x7d   :  { %p5152_p6 = pnand %p5151_p5, %p5145_p2 }
  0x7f   :  { %5155 = shalt.err (!%p5152_p6)
}
  0x80   :  { %s5391_s27 = smov 128   ;;  %s5392_s2 = smov 8  }
  0x81   :  { %233 = dma.hbm_to_vmem [thread:$0]  %s5523_s29, 256, %s228_s23, [#allocation24], %s5391_s27, %s5391_s27, %s5392_s2  }
  0x82   :  { %s5164_s30 = scalar_lea.vmem %s87_s28, 16  ;;  %s5168_s7 = scalar_lea.vmem %s87_s28, 32 }
  0x83   :  { %p5165_p7 = scmp.ne.s32.totalorder %s87_s28, %s5164_s30  ;;  %p5169_p8 = scmp.lt.s32.totalorder %s87_s28, %s87_s28 }
  0x84   :  { %p5170_p9 = scmp.lt.s32.totalorder %s5168_s7, %s5164_s30 }
  0x86   :  { %p5171_p10 = por %p5170_p9, %p5169_p8 }
  0x88   :  { %p5172_p11 = pnand %p5171_p10, %p5165_p7 }
  0x8a   :  { %5175 = shalt.err (!%p5172_p11)
}
  0x8b   :  { %89 = dma.hbm_to_vmem [thread:$0]  %s5433_s17, 16, %s87_s28, [#allocation3]  }
  0x8c   :  { %s5393_s21 = smov [#allocation7]   ;;  %s5394_s3 = smov [#allocation10]  }
  0x8d   :  { %s106_s10 = sshll.u32 %s5393_s21, 4  ;;  %s128_s11 = sshll.u32 %s5394_s3, 4  ;;  %s107_s10 = int_to_ptr.vmem [resolvable:$true] %s106_s10  ;;  %s129_s11 = int_to_ptr.vmem [resolvable:$true] %s128_s11 }
  0x8e   :  { %s5184_s15 = scalar_lea.vmem %s107_s10, 16  ;;  %s5188_s16 = scalar_lea.vmem %s107_s10, 32 }
  0x8f   :  { %p5185_p12 = scmp.ne.s32.totalorder %s107_s10, %s5184_s15  ;;  %p5189_p13 = scmp.lt.s32.totalorder %s107_s10, %s107_s10 }
  0x90   :  { %p5190_p0 = scmp.lt.s32.totalorder %s5188_s16, %s5184_s15 }
  0x92   :  { %p5191_p1 = por %p5190_p0, %p5189_p13 }
  0x94   :  { %p5192_p2 = pnand %p5191_p1, %p5185_p12 }
  0x96   :  { %5195 = shalt.err (!%p5192_p2)
}
  0x97   :  { %109 = dma.hbm_to_vmem [thread:$0]  %s5443_s25, 16, %s107_s10, [#allocation6]  }
  0x98   :  { %s5204_s29 = scalar_lea.vmem %s129_s11, 16  ;;  %s5208_s18 = scalar_lea.vmem %s129_s11, 32 }
  0x99   :  { %p5205_p3 = scmp.ne.s32.totalorder %s129_s11, %s5204_s29  ;;  %p5209_p4 = scmp.lt.s32.totalorder %s129_s11, %s129_s11 }
  0x9a   :  { %p5210_p5 = scmp.lt.s32.totalorder %s5208_s18, %s5204_s29 }
  0x9c   :  { %p5211_p6 = por %p5210_p5, %p5209_p4 }
  0x9e   :  { %p5212_p7 = pnand %p5211_p6, %p5205_p3 }
  0xa0   :  { %5215 = shalt.err (!%p5212_p7)
}
  0xa1   :  { %131 = dma.hbm_to_vmem [thread:$0]  %s5458_s8, 16, %s129_s11, [#allocation9]  }
  0xa2   :  { %s5395_s17 = smov [#allocation13]   ;;  %s5396_s14 = smov [#allocation16]  }
  0xa3   :  { %s150_s0 = sshll.u32 %s5395_s17, 4  ;;  %s174_s22 = sshll.u32 %s5396_s14, 4  ;;  %s151_s0 = int_to_ptr.vmem [resolvable:$true] %s150_s0  ;;  %s175_s22 = int_to_ptr.vmem [resolvable:$true] %s174_s22 }
  0xa4   :  { %s5224_s6 = scalar_lea.vmem %s151_s0, 16  ;;  %s5228_s23 = scalar_lea.vmem %s151_s0, 32 }
  0xa5   :  { %p5225_p8 = scmp.ne.s32.totalorder %s151_s0, %s5224_s6  ;;  %p5229_p9 = scmp.lt.s32.totalorder %s151_s0, %s151_s0 }
  0xa6   :  { %p5230_p10 = scmp.lt.s32.totalorder %s5228_s23, %s5224_s6 }
  0xa8   :  { %p5231_p11 = por %p5230_p10, %p5229_p9 }
  0xaa   :  { %p5232_p12 = pnand %p5231_p11, %p5225_p8 }
  0xac   :  { %5235 = shalt.err (!%p5232_p12)
}
  0xad   :  { %153 = dma.hbm_to_vmem [thread:$0]  %s5473_s24, 16, %s151_s0, [#allocation12]  }
  0xae   :  { %s5244_s25 = scalar_lea.vmem %s175_s22, 16  ;;  %s5248_s26 = scalar_lea.vmem %s175_s22, 32 }
  0xaf   :  { %p5245_p13 = scmp.ne.s32.totalorder %s175_s22, %s5244_s25  ;;  %p5249_p0 = scmp.lt.s32.totalorder %s175_s22, %s175_s22 }
  0xb0   :  { %p5250_p1 = scmp.lt.s32.totalorder %s5248_s26, %s5244_s25 }
  0xb2   :  { %p5251_p2 = por %p5250_p1, %p5249_p0 }
  0xb4   :  { %p5252_p3 = pnand %p5251_p2, %p5245_p13 }
  0xb6   :  { %5255 = shalt.err (!%p5252_p3)
}
  0xb7   :  { %177 = dma.hbm_to_vmem [thread:$0]  %s5493_s20, 16, %s175_s22, [#allocation15]  }
  0xb8   :  { %s5397_s8 = smov [#allocation19]   ;;  %s5398_s1 = smov [#allocation22]  }
  0xb9   :  { %s194_s28 = sshll.u32 %s5397_s8, 4  ;;  %s213_s30 = sshll.u32 %s5398_s1, 4  ;;  %s195_s28 = int_to_ptr.vmem [resolvable:$true] %s194_s28  ;;  %s214_s30 = int_to_ptr.vmem [resolvable:$true] %s213_s30 }
  0xba   :  { %s5264_s7 = scalar_lea.vmem %s195_s28, 16  ;;  %s5268_s21 = scalar_lea.vmem %s195_s28, 32 }
  0xbb   :  { %p5265_p4 = scmp.ne.s32.totalorder %s195_s28, %s5264_s7  ;;  %p5269_p5 = scmp.lt.s32.totalorder %s195_s28, %s195_s28 }
  0xbc   :  { %p5270_p6 = scmp.lt.s32.totalorder %s5268_s21, %s5264_s7 }
  0xbe   :  { %p5271_p7 = por %p5270_p6, %p5269_p5 }
  0xc0   :  { %p5272_p8 = pnand %p5271_p7, %p5265_p4 }
  0xc2   :  { %5275 = shalt.err (!%p5272_p8)
}
  0xc3   :  { %197 = dma.hbm_to_vmem [thread:$0]  %s5503_s4, 16, %s195_s28, [#allocation18]  }
  0xc4   :  { %s5284_s24 = scalar_lea.vmem %s214_s30, 256  ;;  %p5289_p10 = scmp.lt.s32.totalorder %s214_s30, %s214_s30 }
  0xc5   :  { %p5285_p9 = scmp.ne.s32.totalorder %s214_s30, %s5284_s24  ;;  %p5290_p11 = scmp.lt.s32.totalorder %s5284_s24, %s5284_s24 }
  0xc7   :  { %p5291_p12 = por %p5290_p11, %p5289_p10 }
  0xc9   :  { %p5292_p13 = pnand %p5291_p12, %p5285_p9 }
  0xcb   :  { %5295 = shalt.err (!%p5292_p13)
}
  0xcc   :  { %219 = dma.hbm_to_vmem [thread:$0]  %s5513_s12, 256, %s214_s30, [#allocation21], %s5391_s27, %s5391_s27, %s5392_s2  }
  0xcd   :  { %s5399_s20 = smov [#allocation25]  }
  0xce   :  { %s241_s10 = sshll.u32 %s5399_s20, 4  ;;  %s242_s10 = int_to_ptr.vmem [resolvable:$true] %s241_s10 }
  0xcf   :  { %s5304_s3 = scalar_lea.vmem %s242_s10, 256  ;;  %p5309_p1 = scmp.lt.s32.totalorder %s242_s10, %s242_s10 }
  0xd0   :  { %p5305_p0 = scmp.ne.s32.totalorder %s242_s10, %s5304_s3  ;;  %p5310_p2 = scmp.lt.s32.totalorder %s5304_s3, %s5304_s3 }
  0xd2   :  { %p5311_p3 = por %p5310_p2, %p5309_p1 }
  0xd4   :  { %p5312_p4 = pnand %p5311_p3, %p5305_p0 }
  0xd6   :  { %5315 = shalt.err (!%p5312_p4)
}
  0xd7   :  { %s6643_s4 = sld [smem:[#allocation45_spill]] }
  0xdd   :  { %247 = dma.hbm_to_vmem [thread:$0]  %s6643_s4, 256, %s242_s10, [#allocation24], %s5391_s27, %s5391_s27, %s5392_s2  }
  0xde   :  { %5336 = dma.done.wait [#allocation3], 16  }
  0xdf   :  { %5337 = vsyncadd [#allocation3], 4294967280 }
  0xe0   :  { %5338 = dma.done.wait [#allocation6], 32  }
  0xe1   :  { %5339 = vsyncadd [#allocation6], 4294967264 }
  0xe2   :  { %5340 = dma.done.wait [#allocation9], 32  }
  0xe3   :  { %5341 = vsyncadd [#allocation9], 4294967264 }
  0xe4   :  { %5342 = dma.done.wait [#allocation12], 32  }
  0xe5   :  { %5343 = vsyncadd [#allocation12], 4294967264 }
  0xe6   :  { %5344 = dma.done.wait [#allocation15], 32  }
  0xe7   :  { %5345 = vsyncadd [#allocation15], 4294967264 }
  0xe8   :  { %5346 = dma.done.wait [#allocation18], 32  }
  0xe9   :  { %5347 = vsyncadd [#allocation18], 4294967264 }
  0xea   :  { %5348 = dma.done.wait [#allocation21], 272  }
  0xeb   :  { %5349 = vsyncadd [#allocation21], 4294967024 }
  0xec   :  { %5350 = dma.done.wait [#allocation24], 512  }
  0xed   :  { %5351 = vsyncadd [#allocation24], 4294966784  ;;  %s6644_s12 = sld [smem:[#allocation36_spill]]  ;;  %vm303_vm0 = vcmask 130048   ;;  %v4154_v24 = vld [vmem:[#allocation2] ss:$0 sm:$0xff] }
  0xee   :  { %s6645_s27 = sld [smem:[#allocation38_spill]]  ;;  %vm834_vm9 = vcmask 523264   ;;  %vm5401_vm14 = vmmov 0   ;;  %s5402_s14 = smov 120  }
  0xef   :  { %s6646_s11 = sld [smem:[#allocation37_spill]]  ;;  %s5403_s22 = smov 112  }
  0xf0   :  { %s6647_s15 = sld [smem:[#allocation39_spill]]  ;;  %s5404_s23 = smov 104  }
  0xf1   :  { %s6648_s16 = sld [smem:[#allocation40_spill]]  ;;  %s5406_s26 = smov 24  }
  0xf2   :  { %s6649_s29 = sld [smem:[#allocation42_spill]]  ;;  %s5407_s8 = smov 127  }
  0xf3   :  { %v299_v0 = vld [vmem:[%s6644_s12] sm:$0xff]  ;;  %v301_v1 = vld [vmem:[%s6644_s12 + $0x10] sm:$0xff]  ;;  %v300_v2 = vld [vmem:[%s6644_s12 + $0x8] sm:$0xff]  ;;  %s6650_s18 = sld [smem:[#allocation41_spill]] }
  0xf4   :  { %v304_v3 = vsel %vm303_vm0, %v299_v0, 0.0  ;;  %v310_v4 = vsel %vm303_vm0, %v301_v1, 0.0  ;;  %v302_v5 = vld [vmem:[%s6644_s12 + $0x18] sm:$0xff]  ;;  %v307_v6 = vsel %vm303_vm0, %v300_v2, 0.0  ;;  %v325_v8 = vld [vmem:[%s6645_s27 + $0x8] sm:$0xff]  ;;  %v324_v9 = vld [vmem:[%s6645_s27] sm:$0xff] }
  0xf5   :  { %305 = vadd.xlane.f32.xlu0 %v304_v3  ;;  %311 = vadd.xlane.f32.xlu1 %v310_v4  ;;  %v313_v7 = vsel %vm303_vm0, %v302_v5, 0.0  ;;  %v316_v10 = vld [vmem:[%s6646_s11] sm:$0xff]  ;;  %v318_v14 = vld [vmem:[%s6646_s11 + $0x10] sm:$0xff]  ;;  %v317_v15 = vld [vmem:[%s6646_s11 + $0x8] sm:$0xff]  ;;  %s6651_s17 = sld [smem:[#allocation44_spill]] }
  0xf6   :  { %4476 = vmatprep.subr.mxu1 %v325_v8  ;;  %v319_v18 = vld [vmem:[%s6646_s11 + $0x18] sm:$0xff]  ;;  %v512_v22 = vld [vmem:[%s6647_s15 + $0x8] sm:$0xff]  ;;  %v511_v23 = vld [vmem:[%s6647_s15] sm:$0xff]  ;;  %s6652_s0 = sld [smem:[#allocation43_spill]] }
  0xf7   :  { %4477 = vmatpush3.msra.mxu1 %v325_v8  ;;  %s6653_s6 = sld [smem:[#allocation46_spill]] }
  0xf8   :  { %4478 = vmatprep.subr.mxu1 %v324_v9  ;;  %s6654_s25 = sld [smem:[#allocation47_spill]] }
  0xf9   :  { %308 = vadd.xlane.f32.xlu0 %v307_v6  ;;  %314 = vadd.xlane.f32.xlu1 %v313_v7 }
  0xfa   :  { %4479 = vmatpush3.msra.mxu1 %v324_v9 }
  0xfb   :  { %4486 = vmatprep.subr.mxu1 %v512_v22 }
 0x17e   :  { %v5600_v11 = vpop.xlane.xlu0 %305  ;;  %v5602_v12 = vpop.xlane.xlu1 %311 }
 0x17f   :  { %v320_v13 = vmul.f32 %v316_v10, %v5600_v11  ;;  %v322_v16 = vmul.f32 %v318_v14, %v5602_v12 }
 0x181   :  { %4480 = vmatprep.mubr.msk.f32.mxu1 %vm303_vm0, %v320_v13 }
 0x182   :  { %v5609_v17 = vpop.xlane.xlu0 %308  ;;  %v5612_v19 = vpop.xlane.xlu1 %314 }
 0x183   :  { %v321_v20 = vmul.f32 %v317_v15, %v5609_v17  ;;  %v323_v21 = vmul.f32 %v319_v18, %v5612_v19  ;;  %v4159_v18 = vld [vmem:[#allocation5] ss:$0 sm:$0xff] }
 0x185   :  { %4481 = vmatmul.mubr.msk.f32.vlgmr.msra.gmra.mxu1 %vm303_vm0, %v321_v20 }
 0x186   :  { %4483 = vmatprep.mubr.msk.f32.mxu1 %vm303_vm0, %v322_v16  ;;  %4487 = vmatpush3.msra.mxu1 %v512_v22 }
 0x187   :  { %4488 = vmatprep.subr.mxu1 %v511_v23 }
 0x188   :  { %4489 = vmatpush3.msra.mxu1 %v511_v23 }
 0x189   :  { %4484 = vmatmul.mubr.msk.f32.gmra.mxu1 %vm303_vm0, %v323_v21 }
 0x245   :  { %v4482_v25 = vpop.f32.mrf.mxu1 }
 0x246   :  { %v417_v26 = vadd.f32 %v4482_v25, %v4154_v24 }
 0x247   :  { %v411_v27 = vpop.f32.mrf.mxu1 }
 0x248   :  { %v435_v28 = vmul.f32 0.2, %v417_v26  ;;  %v412_v29 = vadd.f32 %v4154_v24, %v411_v27  ;;  %vm431_vm1 = vcmp.ge.f32.partialorder %v417_v26, 0.0 }
 0x249   :  { %v4485_v30 = vpop.f32.mrf.mxu1 }
 0x24a   :  { %vm430_vm2 = vcmp.ge.f32.partialorder %v412_v29, 0.0  ;;  %v434_v31 = vmul.f32 0.2, %v412_v29  ;;  %v427_v32 = vadd.f32 %v4485_v30, %v4154_v24  ;;  %v439_v34 = vsel %vm431_vm1, %v417_v26, %v435_v28 }
 0x24b   :  { %v421_v33 = vpop.f32.mrf.mxu1  ;;  %v445_v40 = vsel %vm303_vm0, %v439_v34, 0.0 }
 0x24c   :  { %v438_v35 = vsel %vm430_vm2, %v412_v29, %v434_v31  ;;  %v437_v36 = vmul.f32 0.2, %v427_v32  ;;  %v422_v37 = vadd.f32 %v4154_v24, %v421_v33  ;;  %vm433_vm3 = vcmp.ge.f32.partialorder %v427_v32, 0.0  ;;  %v4160_v24 = vld [vmem:[#allocation7] ss:$0 sm:$0xff] }
 0x24d   :  { %v444_v38 = vsel %vm303_vm0, %v438_v35, 0.0 }
 0x24e   :  { %vm432_vm4 = vcmp.ge.f32.partialorder %v422_v37, 0.0  ;;  %v436_v39 = vmul.f32 0.2, %v422_v37  ;;  %v446_v41 = vadd.f32 %v445_v40, %v444_v38  ;;  %v441_v42 = vsel %vm433_vm3, %v427_v32, %v437_v36  ;;  %v701_v38 = vld [vmem:[%s6648_s16] sm:$0xff]  ;;  %v826_v40 = vld [vmem:[%s6650_s18 + $0x38] sm:$0xff] }
 0x24f   :  { %v449_v46 = vsel %vm303_vm0, %v441_v42, 0.0  ;;  %4506 = vmatprep.subr.mxu1 %v826_v40 }
 0x250   :  { %v440_v43 = vsel %vm432_vm4, %v422_v37, %v436_v39  ;;  %v702_v37 = vld [vmem:[%s6648_s16 + $0x8] sm:$0xff] }
 0x251   :  { %v447_v44 = vsel %vm303_vm0, %v440_v43, 0.0  ;;  %4496 = vmatprep.subr.mxu0 %v702_v37  ;;  %v5640_v39 = vld [vmem:[%s6649_s29 + $0x8] sm:$0xff] }
 0x252   :  { %v448_v45 = vadd.f32 %v447_v44, %v446_v41  ;;  %4497 = vmatpush3.msra.mxu0 %v702_v37  ;;  %v825_v41 = vld [vmem:[%s6650_s18 + $0x30] sm:$0xff]  ;;  %v4161_v44 = vld [vmem:[#allocation8] ss:$0 sm:$0xff] }
 0x253   :  { %4498 = vmatprep.subr.mxu0 %v701_v38 }
 0x254   :  { %v450_v47 = vadd.f32 %v449_v46, %v448_v45  ;;  %4499 = vmatpush3.msra.mxu0 %v701_v38 }
 0x255   :  { %4528 = vmatprep.subr.mxu0 %v5640_v39 }
 0x256   :  { %v451_v48 = vrot.slane %v450_v47, 4 }
 0x258   :  { %v452_v49 = vadd.f32 %v451_v48, %v450_v47 }
 0x25a   :  { %v453_v50 = vrot.slane %v452_v49, 2 }
 0x25c   :  { %v454_v51 = vadd.f32 %v453_v50, %v452_v49 }
 0x25e   :  { %v455_v52 = vrot.slane %v454_v51, 1 }
 0x260   :  { %v456_v53 = vadd.f32 %v455_v52, %v454_v51 }
 0x262   :  { %v458_v54 = vmul.f32 0.03125, %v456_v53 }
 0x264   :  { %v459_v55 = vsub.f32 %v438_v35, %v458_v54  ;;  %v460_v56 = vsub.f32 %v439_v34, %v458_v54  ;;  %v461_v57 = vsub.f32 %v440_v43, %v458_v54  ;;  %v462_v58 = vsub.f32 %v441_v42, %v458_v54  ;;  %v824_v42 = vld [vmem:[%s6650_s18 + $0x28] sm:$0xff]  ;;  %v823_v43 = vld [vmem:[%s6650_s18 + $0x20] sm:$0xff] }
 0x266   :  { %v463_v59 = vmul.f32 %v459_v55, %v459_v55  ;;  %v464_v60 = vmul.f32 %v460_v56, %v460_v56  ;;  %v465_v61 = vmul.f32 %v461_v57, %v461_v57  ;;  %v466_v62 = vmul.f32 %v462_v58, %v462_v58 }
 0x268   :  { %v467_v63 = vsel %vm303_vm0, %v463_v59, 0.0  ;;  %v468_v0 = vsel %vm303_vm0, %v464_v60, 0.0  ;;  %v470_v2 = vsel %vm303_vm0, %v465_v61, 0.0  ;;  %v472_v4 = vsel %vm303_vm0, %v466_v62, 0.0 }
 0x269   :  { %v469_v1 = vadd.f32 %v468_v0, %v467_v63 }
 0x26b   :  { %v471_v3 = vadd.f32 %v470_v2, %v469_v1 }
 0x26d   :  { %v473_v5 = vadd.f32 %v472_v4, %v471_v3 }
 0x26f   :  { %v474_v6 = vrot.slane %v473_v5, 4 }
 0x271   :  { %v475_v7 = vadd.f32 %v474_v6, %v473_v5 }
 0x273   :  { %v476_v8 = vrot.slane %v475_v7, 2 }
 0x275   :  { %v477_v9 = vadd.f32 %v476_v8, %v475_v7 }
 0x277   :  { %v478_v10 = vrot.slane %v477_v9, 1 }
 0x279   :  { %v479_v13 = vadd.f32 %v478_v10, %v477_v9 }
 0x27b   :  { %v480_v14 = vmul.f32 0.03125, %v479_v13 }
 0x27d   :  { %v481_v15 = vadd.f32 1e-05, %v480_v14 }
 0x27f   :  { %4914 = vrsqrt.f32 %v481_v15 }
 0x28c   :  { %v4915_v16 = vpop.eup %4914 }
 0x28d   :  { %v484_v20 = vmul.f32 %v4915_v16, %v460_v56  ;;  %v485_v21 = vmul.f32 %v4915_v16, %v461_v57  ;;  %v483_v22 = vmul.f32 %v4915_v16, %v459_v55  ;;  %v486_v23 = vmul.f32 %v4915_v16, %v462_v58 }
 0x28f   :  { %v494_v25 = vmul.f32 %v4159_v18, %v484_v20  ;;  %v495_v26 = vmul.f32 %v4159_v18, %v485_v21  ;;  %v493_v27 = vmul.f32 %v4159_v18, %v483_v22  ;;  %v496_v28 = vmul.f32 %v4159_v18, %v486_v23 }
 0x291   :  { %v503_v29 = vadd.f32 %v4160_v24, %v493_v27  ;;  %v504_v30 = vadd.f32 %v4160_v24, %v494_v25  ;;  %v505_v31 = vadd.f32 %v4160_v24, %v495_v26  ;;  %v506_v34 = vadd.f32 %v4160_v24, %v496_v28 }
 0x293   :  { %v507_v32 = vmul.f32 %v503_v29, %v5600_v11  ;;  %v508_v33 = vmul.f32 %v504_v30, %v5609_v17  ;;  %v509_v35 = vmul.f32 %v505_v31, %v5602_v12  ;;  %v510_v36 = vmul.f32 %v506_v34, %v5612_v19 }
 0x295   :  { %4490 = vmatprep.mubr.msk.f32.mxu1 %vm303_vm0, %v507_v32 }
 0x296   :  { %4491 = vmatmul.mubr.msk.f32.vlgmr.msra.gmra.mxu1 %vm303_vm0, %v508_v33 }
 0x297   :  { %4493 = vmatprep.mubr.msk.f32.mxu1 %vm303_vm0, %v509_v35  ;;  %4507 = vmatpush3.msra.mxu1 %v826_v40 }
 0x298   :  { %4508 = vmatprep.subr.mxu1 %v825_v41 }
 0x299   :  { %4509 = vmatpush3.msra.mxu1 %v825_v41 }
 0x29a   :  { %4494 = vmatmul.mubr.msk.f32.gmra.mxu1 %vm303_vm0, %v510_v36  ;;  %4510 = vmatprep.subr.mxu1 %v824_v42 }
 0x29b   :  { %4511 = vmatpush3.msra.mxu1 %v824_v42 }
 0x29c   :  { %4512 = vmatprep.subr.mxu1 %v823_v43 }
 0x29d   :  { %4513 = vmatpush3.msra.mxu1 %v823_v43 }
 0x356   :  { %v4492_v45 = vpop.f32.mrf.mxu1 }
 0x357   :  { %v604_v46 = vadd.f32 %v4492_v45, %v4161_v44 }
 0x358   :  { %v598_v47 = vpop.f32.mrf.mxu1 }
 0x359   :  { %vm618_vm5 = vcmp.ge.f32.partialorder %v604_v46, 0.0  ;;  %v622_v48 = vmul.f32 0.2, %v604_v46  ;;  %v599_v49 = vadd.f32 %v4161_v44, %v598_v47 }
 0x35a   :  { %v4495_v50 = vpop.f32.mrf.mxu1 }
 0x35b   :  { %v626_v51 = vsel %vm618_vm5, %v604_v46, %v622_v48  ;;  %vm617_vm6 = vcmp.ge.f32.partialorder %v599_v49, 0.0  ;;  %v621_v52 = vmul.f32 0.2, %v599_v49  ;;  %v614_v53 = vadd.f32 %v4495_v50, %v4161_v44 }
 0x35c   :  { %v608_v54 = vpop.f32.mrf.mxu1  ;;  %v630_v58 = vadd.f32 %v626_v51, %v504_v30 }
 0x35d   :  { %v625_v55 = vsel %vm617_vm6, %v599_v49, %v621_v52  ;;  %vm620_vm7 = vcmp.ge.f32.partialorder %v614_v53, 0.0  ;;  %v624_v56 = vmul.f32 0.2, %v614_v53  ;;  %v609_v57 = vadd.f32 %v4161_v44, %v608_v54  ;;  %v4166_v44 = vld [vmem:[#allocation10] ss:$0 sm:$0xff] }
 0x35e   :  { %v629_v59 = vadd.f32 %v625_v55, %v503_v29  ;;  %v636_v0 = vsel %vm303_vm0, %v630_v58, 0.0  ;;  %v4167_v49 = vld [vmem:[#allocation11] ss:$0 sm:$0xff] }
 0x35f   :  { %v628_v60 = vsel %vm620_vm7, %v614_v53, %v624_v56  ;;  %vm619_vm8 = vcmp.ge.f32.partialorder %v609_v57, 0.0  ;;  %v623_v61 = vmul.f32 0.2, %v609_v57 }
 0x360   :  { %v635_v62 = vsel %vm303_vm0, %v629_v59, 0.0  ;;  %v632_v1 = vadd.f32 %v628_v60, %v506_v34 }
 0x361   :  { %v627_v63 = vsel %vm619_vm8, %v609_v57, %v623_v61  ;;  %v637_v3 = vadd.f32 %v636_v0, %v635_v62  ;;  %v944_v61 = vld [vmem:[%s6649_s29] sm:$0xff]  ;;  %vm1133_vm8 = vcmask 1040384  }
 0x362   :  { %v631_v2 = vadd.f32 %v627_v63, %v505_v31  ;;  %v640_v6 = vsel %vm303_vm0, %v632_v1, 0.0 }
 0x364   :  { %v638_v4 = vsel %vm303_vm0, %v631_v2, 0.0 }
 0x365   :  { %v639_v5 = vadd.f32 %v638_v4, %v637_v3 }
 0x367   :  { %v641_v7 = vadd.f32 %v640_v6, %v639_v5 }
 0x369   :  { %v642_v8 = vrot.slane %v641_v7, 4 }
 0x36b   :  { %v643_v9 = vadd.f32 %v642_v8, %v641_v7 }
 0x36d   :  { %v644_v10 = vrot.slane %v643_v9, 2 }
 0x36f   :  { %v645_v13 = vadd.f32 %v644_v10, %v643_v9 }
 0x371   :  { %v646_v14 = vrot.slane %v645_v13, 1 }
 0x373   :  { %v647_v15 = vadd.f32 %v646_v14, %v645_v13 }
 0x375   :  { %v648_v16 = vmul.f32 0.03125, %v647_v15 }
 0x377   :  { %v651_v18 = vsub.f32 %v631_v2, %v648_v16  ;;  %v649_v20 = vsub.f32 %v629_v59, %v648_v16  ;;  %v650_v21 = vsub.f32 %v630_v58, %v648_v16  ;;  %v652_v22 = vsub.f32 %v632_v1, %v648_v16 }
 0x379   :  { %v655_v23 = vmul.f32 %v651_v18, %v651_v18  ;;  %v653_v24 = vmul.f32 %v649_v20, %v649_v20  ;;  %v654_v25 = vmul.f32 %v650_v21, %v650_v21  ;;  %v656_v26 = vmul.f32 %v652_v22, %v652_v22 }
 0x37b   :  { %v657_v27 = vsel %vm303_vm0, %v653_v24, 0.0  ;;  %v658_v28 = vsel %vm303_vm0, %v654_v25, 0.0  ;;  %v660_v30 = vsel %vm303_vm0, %v655_v23, 0.0  ;;  %v662_v32 = vsel %vm303_vm0, %v656_v26, 0.0  ;;  %v1266_v23 = vld [vmem:[#allocation23] sm:$0xff] }
 0x37c   :  { %v659_v29 = vadd.f32 %v658_v28, %v657_v27  ;;  %v4178_v26 = vld [vmem:[#allocation16] ss:$0 sm:$0xff] }
 0x37e   :  { %v661_v31 = vadd.f32 %v660_v30, %v659_v29  ;;  %v4173_v30 = vld [vmem:[#allocation14] ss:$0 sm:$0xff] }
 0x380   :  { %v663_v33 = vadd.f32 %v662_v32, %v661_v31 }
 0x382   :  { %v664_v34 = vrot.slane %v663_v33, 4 }
 0x384   :  { %v665_v35 = vadd.f32 %v664_v34, %v663_v33 }
 0x386   :  { %v666_v36 = vrot.slane %v665_v35, 2 }
 0x388   :  { %v667_v37 = vadd.f32 %v666_v36, %v665_v35 }
 0x38a   :  { %v668_v38 = vrot.slane %v667_v37, 1 }
 0x38c   :  { %v669_v40 = vadd.f32 %v668_v38, %v667_v37 }
 0x38e   :  { %v670_v41 = vmul.f32 0.03125, %v669_v40 }
 0x390   :  { %v671_v42 = vadd.f32 1e-05, %v670_v41 }
 0x392   :  { %4916 = vrsqrt.f32 %v671_v42 }
 0x39f   :  { %v4917_v43 = vpop.eup %4916 }
 0x3a0   :  { %v673_v45 = vmul.f32 %v4917_v43, %v649_v20  ;;  %v674_v46 = vmul.f32 %v4917_v43, %v650_v21  ;;  %v675_v47 = vmul.f32 %v4917_v43, %v651_v18  ;;  %v676_v48 = vmul.f32 %v4917_v43, %v652_v22  ;;  %v1156_v18 = vld [vmem:[#allocation22 + $0x8] sm:$0xff]  ;;  %v1267_v20 = vld [vmem:[#allocation23 + $0x8] sm:$0xff]  ;;  %v1155_v22 = vld [vmem:[#allocation22] sm:$0xff] }
 0x3a1   :  { %v5400_v21 = vmov 0.0  }
 0x3a2   :  { %v683_v50 = vmul.f32 %v4166_v44, %v673_v45  ;;  %v684_v51 = vmul.f32 %v4166_v44, %v674_v46  ;;  %v685_v52 = vmul.f32 %v4166_v44, %v675_v47  ;;  %v686_v53 = vmul.f32 %v4166_v44, %v676_v48 }
 0x3a4   :  { %v693_v54 = vadd.f32 %v4167_v49, %v683_v50  ;;  %v694_v55 = vadd.f32 %v4167_v49, %v684_v51  ;;  %v695_v56 = vadd.f32 %v4167_v49, %v685_v52  ;;  %v696_v59 = vadd.f32 %v4167_v49, %v686_v53 }
 0x3a6   :  { %v697_v57 = vmul.f32 %v693_v54, %v5600_v11  ;;  %v698_v58 = vmul.f32 %v694_v55, %v5609_v17  ;;  %v699_v60 = vmul.f32 %v695_v56, %v5602_v12  ;;  %v700_v62 = vmul.f32 %v696_v59, %v5612_v19  ;;  %v822_v11 = vld [vmem:[%s6650_s18 + $0x18] sm:$0xff]  ;;  %v821_v12 = vld [vmem:[%s6650_s18 + $0x10] sm:$0xff]  ;;  %v820_v17 = vld [vmem:[%s6650_s18 + $0x8] sm:$0xff] }
 0x3a7   :  { %4514 = vmatprep.subr.mxu1 %v822_v11  ;;  %v819_v19 = vld [vmem:[%s6650_s18] sm:$0xff] }
 0x3a8   :  { %4500 = vmatprep.mubr.msk.f32.mxu0 %vm303_vm0, %v697_v57  ;;  %4515 = vmatpush3.msra.mxu1 %v822_v11 }
 0x3a9   :  { %4501 = vmatmul.mubr.msk.f32.vlgmr.msra.gmra.mxu0 %vm303_vm0, %v698_v58  ;;  %4516 = vmatprep.subr.mxu1 %v821_v12 }
 0x3aa   :  { %4503 = vmatprep.mubr.msk.f32.mxu0 %vm303_vm0, %v699_v60  ;;  %4529 = vmatpush3.msra.mxu0 %v5640_v39  ;;  %v4168_v39 = vld [vmem:[#allocation13] ss:$0 sm:$0xff] }
 0x3ab   :  { %4530 = vmatprep.subr.mxu0 %v944_v61  ;;  %4517 = vmatpush3.msra.mxu1 %v821_v12 }
 0x3ac   :  { %4531 = vmatpush3.msra.mxu0 %v944_v61  ;;  %4518 = vmatprep.subr.mxu1 %v820_v17 }
 0x3ad   :  { %4504 = vmatmul.mubr.msk.f32.gmra.mxu0 %vm303_vm0, %v700_v62  ;;  %4519 = vmatpush3.msra.mxu1 %v820_v17 }
 0x3ae   :  { %4532 = vmatprep.mubr.msk.f32.mxu0 %vm303_vm0, %v693_v54  ;;  %4520 = vmatprep.subr.mxu1 %v819_v19 }
 0x3af   :  { %4521 = vmatpush3.msra.mxu1 %v819_v19  ;;  %4538 = vmatprep.subr.mxu0 %v5400_v21 }
 0x3b0   :  { %4557 = vmatprep.subr.mxu1 %v5400_v21 }
 0x3b1   :  { %4533 = vmatmul.mubr.msk.f32.vlgmr.msra.gmra.mxu0 %vm303_vm0, %v694_v55 }
 0x3b2   :  { %4535 = vmatprep.mubr.msk.f32.mxu0 %vm303_vm0, %v695_v56  ;;  %4539 = vmatpush3.msra.mxu0 %v1156_v18 }
 0x3b3   :  { %4540 = vmatprep.subr.mxu0 %v5400_v21 }
 0x3b4   :  { %4541 = vmatpush3.msra.mxu0 %v1155_v22 }
 0x3b5   :  { %4536 = vmatmul.mubr.msk.f32.gmra.mxu0 %vm303_vm0, %v696_v59  ;;  %4576 = vmatprep.subr.mxu0 %v5400_v21 }
 0x3b6   :  { %4542 = vmatprep.mubr.msk.f32.mxu0 %vm5401_vm14, %v5400_v21 }
 0x469   :  { %v4502_v63 = vpop.f32.mrf.mxu0 }
 0x46a   :  { %v794_v0 = vadd.f32 %v4502_v63, %v4168_v39 }
 0x46b   :  { %v788_v1 = vpop.f32.mrf.mxu0 }
 0x46c   :  { %v789_v2 = vadd.f32 %v4168_v39, %v788_v1  ;;  %v812_v3 = vmul.f32 0.2, %v794_v0  ;;  %vm808_vm10 = vcmp.ge.f32.partialorder %v794_v0, 0.0 }
 0x46d   :  { %v4505_v4 = vpop.f32.mrf.mxu0 }
 0x46e   :  { %vm807_vm11 = vcmp.ge.f32.partialorder %v789_v2, 0.0  ;;  %v811_v5 = vmul.f32 0.2, %v789_v2  ;;  %v804_v6 = vadd.f32 %v4505_v4, %v4168_v39  ;;  %v816_v10 = vsel %vm808_vm10, %v794_v0, %v812_v3 }
 0x46f   :  { %v798_v7 = vpop.f32.mrf.mxu0  ;;  %vm1464_vm10 = vcmask 64512  }
 0x470   :  { %v799_v8 = vadd.f32 %v4168_v39, %v798_v7  ;;  %v815_v9 = vsel %vm807_vm11, %v789_v2, %v811_v5  ;;  %v814_v13 = vmul.f32 0.2, %v804_v6  ;;  %vm810_vm12 = vcmp.ge.f32.partialorder %v804_v6, 0.0 }
 0x471   :  { %4522 = vmatprep.mubr.msk.f32.mxu1 %vm834_vm9, %v815_v9  ;;  %v4534_v24 = vpop.f32.mrf.mxu0  ;;  %vm2478_vm11 = vcmask 1046528  }
 0x472   :  { %vm809_vm13 = vcmp.ge.f32.partialorder %v799_v8, 0.0  ;;  %v813_v14 = vmul.f32 0.2, %v799_v8  ;;  %4523 = vmatmul.mubr.msk.f32.vlgmr.msra.gmra.mxu1 %vm834_vm9, %v816_v10  ;;  %v818_v16 = vsel %vm810_vm12, %v804_v6, %v814_v13  ;;  %v1037_v28 = vadd.f32 %v4534_v24, %v4178_v26 }
 0x473   :  { %4558 = vmatpush3.msra.mxu1 %v1267_v20  ;;  %v1031_v25 = vpop.f32.mrf.mxu0  ;;  %vm1566_vm12 = vcmask 138240  }
 0x474   :  { %v817_v15 = vsel %vm809_vm13, %v799_v8, %v813_v14  ;;  %4559 = vmatprep.subr.mxu1 %v5400_v21  ;;  %v1032_v29 = vadd.f32 %v4178_v26, %v1031_v25  ;;  %vm1051_vm15 = vcmp.ge.f32.partialorder %v1037_v28, 0.0  ;;  %v1055_v34 = vmul.f32 0.2, %v1037_v28 }
 0x475   :  { %4525 = vmatprep.mubr.msk.f32.mxu1 %vm834_vm9, %v817_v15  ;;  %4560 = vmatpush3.msra.mxu1 %v1266_v23  ;;  %v4537_v27 = vpop.f32.mrf.mxu0  ;;  %vm1573_vm13 = vcmask 131072  }
 0x476   :  { %4526 = vmatmul.mubr.msk.f32.gmra.mxu1 %vm834_vm9, %v818_v16  ;;  %4595 = vmatprep.subr.mxu1 %v5400_v21  ;;  %v1054_v35 = vmul.f32 0.2, %v1032_v29  ;;  %v1047_v36 = vadd.f32 %v4537_v27, %v4178_v26  ;;  %vm1050_vm1 = vcmp.ge.f32.partialorder %v1032_v29, 0.0  ;;  %v1059_v46 = vsel %vm1051_vm15, %v1037_v28, %v1055_v34 }
 0x477   :  { %4561 = vmatprep.mubr.msk.f32.mxu1 %vm5401_vm14, %v5400_v21  ;;  %v1041_v31 = vpop.f32.mrf.mxu0  ;;  %vm1147_vm9 = vcmask 1041408   ;;  %vm2472_vm15 = vcmask 195584  }
 0x478   :  { %v1042_v37 = vadd.f32 %v4178_v26, %v1041_v31  ;;  %v1058_v47 = vsel %vm1050_vm1, %v1032_v29, %v1054_v35  ;;  %v1057_v48 = vmul.f32 0.2, %v1047_v36  ;;  %vm1053_vm5 = vcmp.ge.f32.partialorder %v1047_v36, 0.0 }
 0x479   :  { %vm3521_vm1 = vcmask 261120  }
 0x47a   :  { %v1056_v49 = vmul.f32 0.2, %v1042_v37  ;;  %vm1052_vm6 = vcmp.ge.f32.partialorder %v1042_v37, 0.0  ;;  %v1061_v59 = vsel %vm1053_vm5, %v1047_v36, %v1057_v48  ;;  %v1140_v36 = vlaneseq }
 0x47c   :  { %v1060_v60 = vsel %vm1052_vm6, %v1042_v37, %v1056_v49 }
 0x532   :  { %v4524_v32 = vpop.f32.mrf.mxu1 }
 0x533   :  { %v919_v33 = vadd.f32 %v4524_v32, %v4173_v30 }
 0x534   :  { %v913_v38 = vpop.f32.mrf.mxu1 }
 0x535   :  { %vm933_vm2 = vcmp.ge.f32.partialorder %v919_v33, 0.0  ;;  %v937_v40 = vmul.f32 0.2, %v919_v33  ;;  %v914_v41 = vadd.f32 %v4173_v30, %v913_v38  ;;  %v4183_v38 = vld [vmem:[#allocation17] ss:$0 sm:$0xff] }
 0x536   :  { %v4527_v42 = vpop.f32.mrf.mxu1 }
 0x537   :  { %v941_v43 = vsel %vm933_vm2, %v919_v33, %v937_v40  ;;  %vm932_vm3 = vcmp.ge.f32.partialorder %v914_v41, 0.0  ;;  %v936_v44 = vmul.f32 0.2, %v914_v41  ;;  %v929_v45 = vadd.f32 %v4527_v42, %v4173_v30 }
 0x538   :  { %v923_v50 = vpop.f32.mrf.mxu1  ;;  %v1063_v54 = vadd.f32 %v1059_v46, %v941_v43  ;;  %v4184_v43 = vld [vmem:[#allocation19] ss:$0 sm:$0xff]  ;;  %vm4093_vm2 = vcmask 123904  }
 0x539   :  { %v940_v51 = vsel %vm932_vm3, %v914_v41, %v936_v44  ;;  %vm935_vm4 = vcmp.ge.f32.partialorder %v929_v45, 0.0  ;;  %v939_v52 = vmul.f32 0.2, %v929_v45  ;;  %v924_v53 = vadd.f32 %v4173_v30, %v923_v50 }
 0x53a   :  { %v1062_v55 = vadd.f32 %v1058_v47, %v940_v51  ;;  %v1069_v62 = vsel %vm303_vm0, %v1063_v54, 0.0  ;;  %v5696_v44 = vshrl.u32 %v1140_v36, 7  ;;  %v4197_v36 = vld [vmem:[%s6653_s6] ss:$0 sm:$0xff] }
 0x53b   :  { %v943_v56 = vsel %vm935_vm4, %v929_v45, %v939_v52  ;;  %vm934_vm7 = vcmp.ge.f32.partialorder %v924_v53, 0.0  ;;  %v938_v57 = vmul.f32 0.2, %v924_v53  ;;  %v1130_v52 = vld [vmem:[#allocation20] sm:$0x1] }
 0x53c   :  { %v1068_v58 = vsel %vm303_vm0, %v1062_v55, 0.0  ;;  %v1065_v11 = vadd.f32 %v1061_v59, %v943_v56  ;;  %v1142_v51 = vsub.s32 0, %v5696_v44 }
 0x53d   :  { %v942_v61 = vsel %vm934_vm7, %v924_v53, %v938_v57  ;;  %v1070_v17 = vadd.f32 %v1069_v62, %v1068_v58  ;;  %v1366_v58 = vld [vmem:[#allocation25 + $0x8] sm:$0xff] }
 0x53e   :  { %v1064_v12 = vadd.f32 %v1060_v60, %v942_v61  ;;  %v1073_v63 = vsel %vm303_vm0, %v1065_v11, 0.0  ;;  %v1143_v59 = vrot.slane %v1130_v52, %v1142_v51 }
 0x540   :  { %v1071_v19 = vsel %vm303_vm0, %v1064_v12, 0.0 }
 0x541   :  { %v1072_v39 = vadd.f32 %v1071_v19, %v1070_v17 }
 0x543   :  { %v1074_v0 = vadd.f32 %v1073_v63, %v1072_v39 }
 0x545   :  { %v1075_v1 = vrot.slane %v1074_v0, 4 }
 0x547   :  { %v1076_v2 = vadd.f32 %v1075_v1, %v1074_v0 }
 0x549   :  { %v1077_v3 = vrot.slane %v1076_v2, 2 }
 0x54b   :  { %v1078_v4 = vadd.f32 %v1077_v3, %v1076_v2  ;;  %v5750_v3 = vld [vmem:[%s6651_s17] ss:$0 sm:$0xff] }
 0x54d   :  { %v1079_v5 = vrot.slane %v1078_v4, 1 }
 0x54f   :  { %v1080_v6 = vadd.f32 %v1079_v5, %v1078_v4 }
 0x551   :  { %v1081_v7 = vmul.f32 0.03125, %v1080_v6 }
 0x553   :  { %v1082_v8 = vsub.f32 %v1062_v55, %v1081_v7  ;;  %v1083_v9 = vsub.f32 %v1063_v54, %v1081_v7  ;;  %v1084_v10 = vsub.f32 %v1064_v12, %v1081_v7  ;;  %v1085_v13 = vsub.f32 %v1065_v11, %v1081_v7  ;;  %v1365_v11 = vld [vmem:[#allocation25] sm:$0xff] }
 0x555   :  { %v1086_v14 = vmul.f32 %v1082_v8, %v1082_v8  ;;  %v1087_v15 = vmul.f32 %v1083_v9, %v1083_v9  ;;  %v1088_v16 = vmul.f32 %v1084_v10, %v1084_v10  ;;  %v1089_v18 = vmul.f32 %v1085_v13, %v1085_v13 }
 0x557   :  { %v1090_v20 = vsel %vm303_vm0, %v1086_v14, 0.0  ;;  %v1091_v22 = vsel %vm303_vm0, %v1087_v15, 0.0  ;;  %v1093_v24 = vsel %vm303_vm0, %v1088_v16, 0.0  ;;  %v1095_v26 = vsel %vm303_vm0, %v1089_v18, 0.0  ;;  %v5759_v15 = vld [vmem:[%s6652_s0] ss:$0 sm:$0xff] }
 0x558   :  { %v1092_v23 = vadd.f32 %v1091_v22, %v1090_v20 }
 0x55a   :  { %v1094_v25 = vadd.f32 %v1093_v24, %v1092_v23 }
 0x55c   :  { %v1096_v27 = vadd.f32 %v1095_v26, %v1094_v25 }
 0x55e   :  { %v1097_v28 = vrot.slane %v1096_v27, 4 }
 0x560   :  { %v1098_v29 = vadd.f32 %v1097_v28, %v1096_v27 }
 0x562   :  { %v1099_v30 = vrot.slane %v1098_v29, 2 }
 0x564   :  { %v1100_v31 = vadd.f32 %v1099_v30, %v1098_v29 }
 0x566   :  { %v1101_v32 = vrot.slane %v1100_v31, 1 }
 0x568   :  { %v1102_v33 = vadd.f32 %v1101_v32, %v1100_v31 }
 0x56a   :  { %v1103_v34 = vmul.f32 0.03125, %v1102_v33 }
 0x56c   :  { %v1104_v35 = vadd.f32 1e-05, %v1103_v34 }
 0x56e   :  { %4918 = vrsqrt.f32 %v1104_v35 }
 0x57b   :  { %v4919_v37 = vpop.eup %4918 }
 0x57c   :  { %v1108_v40 = vmul.f32 %v4919_v37, %v1084_v10  ;;  %v1106_v41 = vmul.f32 %v4919_v37, %v1082_v8  ;;  %v1107_v42 = vmul.f32 %v4919_v37, %v1083_v9  ;;  %v1109_v50 = vmul.f32 %v4919_v37, %v1085_v13 }
 0x57e   :  { %v1116_v45 = vmul.f32 %v4183_v38, %v1106_v41  ;;  %v1117_v46 = vmul.f32 %v4183_v38, %v1107_v42  ;;  %v1118_v49 = vmul.f32 %v4183_v38, %v1108_v40  ;;  %v1119_v57 = vmul.f32 %v4183_v38, %v1109_v50 }
 0x580   :  { %v1126_v47 = vadd.f32 %v4184_v43, %v1116_v45  ;;  %v1127_v48 = vadd.f32 %v4184_v43, %v1117_v46  ;;  %v1128_v56 = vadd.f32 %v4184_v43, %v1118_v49  ;;  %v1129_v62 = vadd.f32 %v4184_v43, %v1119_v57 }
 0x582   :  { %v1134_v53 = vrot.slane %v1126_v47, 7  ;;  %v1135_v55 = vrot.slane %v1127_v48, 7  ;;  %v1148_v61 = vrot.slane %v1128_v56, 6  ;;  %v1149_v19 = vrot.slane %v1129_v62, 6 }
 0x584   :  { %v1152_v54 = vsel %vm1133_vm8, %v1130_v52, %v1134_v53  ;;  %v1136_v60 = vsel %vm1133_vm8, %v1134_v53, %v1135_v55  ;;  %v1153_v12 = vsel %vm1133_vm8, %v1135_v55, %v1143_v59  ;;  %v1150_v39 = vsel %vm1147_vm9, %v1148_v61, %v1149_v19 }
 0x585   :  { %4543 = vmatmul.mubr.msk.f32.vlgmr.msra.gmra.mxu0 %vm303_vm0, %v1152_v54  ;;  %4562 = vmatmul.mubr.msk.f32.vlgmr.msra.gmra.mxu1 %vm303_vm0, %v1152_v54  ;;  %v1154_v17 = vsel %vm1147_vm9, %v1153_v12, %v1148_v61 }
 0x586   :  { %4545 = vmatprep.mubr.msk.f32.mxu0 %vm5401_vm14, %v5400_v21  ;;  %4564 = vmatprep.mubr.msk.f32.mxu1 %vm5401_vm14, %v5400_v21 }
 0x587   :  { %4577 = vmatpush3.msra.mxu0 %v1366_v58 }
 0x588   :  { %4578 = vmatprep.subr.mxu0 %v5400_v21 }
 0x589   :  { %4546 = vmatmul.mubr.msk.f32.gmra.mxu0 %vm303_vm0, %v1136_v60  ;;  %4565 = vmatmul.mubr.msk.f32.gmra.mxu1 %vm303_vm0, %v1136_v60 }
 0x58a   :  { %4548 = vmatprep.mubr.msk.f32.mxu0 %vm5401_vm14, %v5400_v21  ;;  %4567 = vmatprep.mubr.msk.f32.mxu1 %vm5401_vm14, %v5400_v21 }
 0x58b   :  { %4579 = vmatpush3.msra.mxu0 %v1365_v11 }
 0x58c   :  { %4625 = vmatprep.subr.mxu0 %v5400_v21 }
 0x58d   :  { %4549 = vmatmul.mubr.msk.f32.gmra.mxu0 %vm303_vm0, %v1154_v17  ;;  %4568 = vmatmul.mubr.msk.f32.gmra.mxu1 %vm303_vm0, %v1154_v17 }
 0x58e   :  { %4551 = vmatprep.mubr.msk.f32.mxu0 %vm5401_vm14, %v5400_v21  ;;  %4570 = vmatprep.mubr.msk.f32.mxu1 %vm5401_vm14, %v5400_v21 }
 0x591   :  { %4552 = vmatmul.mubr.msk.f32.gmra.mxu0 %vm303_vm0, %v1150_v39  ;;  %4571 = vmatmul.mubr.msk.f32.gmra.mxu1 %vm303_vm0, %v1150_v39 }
 0x592   :  { %4554 = vmatprep.mubr.msk.f32.mxu0 %vm5401_vm14, %v5400_v21  ;;  %4573 = vmatprep.mubr.msk.f32.mxu1 %vm5401_vm14, %v5400_v21 }
 0x595   :  { %4555 = vmatmul.mubr.msk.f32.gmra.mxu0 %vm303_vm0, %v1149_v19  ;;  %4574 = vmatmul.mubr.msk.f32.gmra.mxu1 %vm303_vm0, %v1149_v19 }
 0x596   :  { %4580 = vmatprep.mubr.msk.f32.mxu0 %vm5401_vm14, %v5400_v21  ;;  %4601 = vmatprep.mubr.msk.f32.mxu1 %vm5401_vm14, %v5400_v21 }
 0x599   :  { %4581 = vmatmul.mubr.msk.f32.vlgmr.msra.gmra.mxu0 %vm303_vm0, %v1152_v54 }
 0x59a   :  { %4583 = vmatprep.mubr.msk.f32.mxu0 %vm5401_vm14, %v5400_v21 }
 0x59d   :  { %4584 = vmatmul.mubr.msk.f32.gmra.mxu0 %vm303_vm0, %v1136_v60 }
 0x59e   :  { %4586 = vmatprep.mubr.msk.f32.mxu0 %vm5401_vm14, %v5400_v21 }
 0x5a1   :  { %4587 = vmatmul.mubr.msk.f32.gmra.mxu0 %vm303_vm0, %v1154_v17 }
 0x5a2   :  { %4589 = vmatprep.mubr.msk.f32.mxu0 %vm5401_vm14, %v5400_v21 }
 0x5a5   :  { %4590 = vmatmul.mubr.msk.f32.gmra.mxu0 %vm303_vm0, %v1150_v39 }
 0x5a6   :  { %4592 = vmatprep.mubr.msk.f32.mxu0 %vm5401_vm14, %v5400_v21 }
 0x5a9   :  { %4593 = vmatmul.mubr.msk.f32.gmra.mxu0 %vm303_vm0, %v1149_v19 }
 0x5aa   :  { %4631 = vmatprep.mubr.msk.f32.mxu0 %vm5401_vm14, %v5400_v21 }
 0x645   :  { %v1242_v63 = vpop.f32.mrf.mxu0  ;;  %v1341_v0 = vpop.f32.mrf.mxu1 }
 0x646   :  { %v1342_v13 = vadd.f32 %v5750_v3, %v1341_v0  ;;  %v1243_v23 = vadd.f32 %v5759_v15, %v1242_v63 }
 0x647   :  { %v4544_v1 = vpop.f32.mrf.mxu0  ;;  %v4563_v2 = vpop.f32.mrf.mxu1 }
 0x649   :  { %v1247_v4 = vpop.f32.mrf.mxu0  ;;  %v1346_v5 = vpop.f32.mrf.mxu1 }
 0x64a   :  { %v1347_v6 = vadd.f32 %v5750_v3, %v1346_v5  ;;  %v1248_v28 = vadd.f32 %v5759_v15, %v1247_v4 }
 0x64b   :  { %v4547_v7 = vpop.f32.mrf.mxu0  ;;  %v4566_v8 = vpop.f32.mrf.mxu1 }
 0x64c   :  { %1704 = vrot.lane.b32.xlu1 %v1347_v6, %s5402_s14 }
 0x64d   :  { %v1252_v9 = vpop.f32.mrf.mxu0  ;;  %v1351_v10 = vpop.f32.mrf.mxu1 }
 0x64e   :  { %v5756_v14 = vadd.f32 %v5750_v3, %v1351_v10  ;;  %v1253_v32 = vadd.f32 %v5759_v15, %v1252_v9 }
 0x64f   :  { %v4550_v16 = vpop.f32.mrf.mxu0  ;;  %v4569_v18 = vpop.f32.mrf.mxu1 }
 0x650   :  { %1702 = vrot.lane.b32.xlu1 %v1342_v13, %s5402_s14  ;;  %1706 = vrot.lane.b32.xlu0 %v5756_v14, %s5402_s14  ;;  %v2486_v58 = vrot.slane %v5756_v14, 1  ;;  %v2479_v11 = vrot.slane %v1253_v32, 1 }
 0x651   :  { %4596 = vmatpush3.xpose.msk.msra.mxu1 %vm1464_vm10, %v5756_v14  ;;  %v5766_v20 = vpop.f32.mrf.mxu0  ;;  %v1356_v22 = vpop.f32.mrf.mxu1 }
 0x652   :  { %4597 = vmatprep.subr.mxu1 %v5400_v21  ;;  %v1357_v50 = vadd.f32 %v5750_v3, %v1356_v22  ;;  %v1258_v57 = vadd.f32 %v5759_v15, %v5766_v20 }
 0x653   :  { %v4553_v24 = vpop.f32.mrf.mxu0  ;;  %v4572_v25 = vpop.f32.mrf.mxu1 }
 0x654   :  { %1696 = vrot.lane.b32.xlu1 %v1243_v23, %s5402_s14  ;;  %1952 = vrot.lane.b32.xlu0 %v5756_v14, %s5403_s22  ;;  %v2487_v56 = vrot.slane %v1357_v50, 1  ;;  %v2480_v60 = vrot.slane %v1258_v57, 1 }
 0x655   :  { %4598 = vmatpush3.xpose.msk.msra.mxu1 %vm1464_vm10, %v1347_v6  ;;  %v5774_v26 = vpop.f32.mrf.mxu0  ;;  %v1361_v27 = vpop.f32.mrf.mxu1 }
 0x656   :  { %4599 = vmatprep.subr.mxu1 %v5400_v21  ;;  %v1362_v48 = vadd.f32 %v5750_v3, %v1361_v27  ;;  %v5831_v59 = vsel %vm2478_vm11, %v2486_v58, %v2487_v56  ;;  %v1263_v61 = vadd.f32 %v5759_v15, %v5774_v26  ;;  %v5848_v17 = vsel %vm2478_vm11, %v2479_v11, %v2480_v60 }
 0x657   :  { %v4556_v29 = vpop.f32.mrf.mxu0  ;;  %v4575_v30 = vpop.f32.mrf.mxu1 }
 0x658   :  { %1950 = vrot.lane.b32.xlu0 %v1347_v6, %s5403_s22  ;;  %1698 = vrot.lane.b32.xlu1 %v1248_v28, %s5402_s14  ;;  %v5818_v54 = vrot.slane %v1362_v48, 1  ;;  %v5843_v12 = vrot.slane %v1263_v61, 1 }
 0x659   :  { %4600 = vmatpush3.xpose.msk.msra.mxu1 %vm1464_vm10, %v1342_v13  ;;  %v1440_v31 = vpop.f32.mrf.mxu0 }
 0x65a   :  { %4610 = vmatprep.subr.mxu1 %v5400_v21  ;;  %v1441_v45 = vadd.f32 %v4197_v36, %v1440_v31  ;;  %v5839_v62 = vsel %vm2478_vm11, %v2487_v56, %v5818_v54  ;;  %v5856_v19 = vsel %vm2478_vm11, %v2480_v60, %v5843_v12 }
 0x65b   :  { %v4582_v33 = vpop.f32.mrf.mxu0 }
 0x65c   :  { %4602 = vmatmul.mubr.msk.f32.vlgmr.msra.gmra.mxu1 %vm1464_vm10, %v1243_v23  ;;  %1948 = vrot.lane.b32.xlu0 %v1342_v13, %s5403_s22 }
 0x65d   :  { %1700 = vrot.lane.b32.xlu1 %v1253_v32, %s5402_s14  ;;  %v1445_v34 = vpop.f32.mrf.mxu0  ;;  %4604 = vmatprep.mubr.msk.f32.mxu1 %vm5401_vm14, %v5400_v21 }
 0x65e   :  { %v1446_v41 = vadd.f32 %v4197_v36, %v1445_v34 }
 0x65f   :  { %v4585_v35 = vpop.f32.mrf.mxu0 }
 0x660   :  { %4605 = vmatmul.mubr.msk.f32.gmra.mxu1 %vm1464_vm10, %v1248_v28  ;;  %2196 = vrot.lane.b32.xlu0 %v5756_v14, %s5404_s23 }
 0x661   :  { %1942 = vrot.lane.b32.xlu1 %v1243_v23, %s5403_s22  ;;  %v1450_v37 = vpop.f32.mrf.mxu0  ;;  %4607 = vmatprep.mubr.msk.f32.mxu1 %vm5401_vm14, %v5400_v21 }
 0x662   :  { %v5795_v38 = vadd.f32 %v4197_v36, %v1450_v37 }
 0x663   :  { %v4588_v40 = vpop.f32.mrf.mxu0 }
 0x664   :  { %4608 = vmatmul.mubr.msk.f32.gmra.mxu1 %vm1464_vm10, %v1253_v32  ;;  %2194 = vrot.lane.b32.xlu0 %v1347_v6, %s5404_s23  ;;  %v2625_v39 = vrot.slane %v5795_v38, 1 }
 0x665   :  { %1944 = vrot.lane.b32.xlu1 %v1248_v28, %s5403_s22  ;;  %4611 = vmatpush3.msk.msra.mxu1 %vm1133_vm8, %v5795_v38  ;;  %v1455_v42 = vpop.f32.mrf.mxu0 }
 0x666   :  { %v5802_v43 = vadd.f32 %v4197_v36, %v1455_v42  ;;  %4612 = vmatprep.subr.mxu1 %v5400_v21  ;;  %4616 = vmatprep.mubr.msk.f32.mxu1 %vm5401_vm14, %v5400_v21 }
 0x667   :  { %4613 = vmatpush3.msra.mxu1 %v1446_v41  ;;  %v4591_v46 = vpop.f32.mrf.mxu0 }
 0x668   :  { %4614 = vmatprep.subr.mxu1 %v5400_v21  ;;  %2192 = vrot.lane.b32.xlu0 %v1342_v13, %s5404_s23  ;;  %v2626_v52 = vrot.slane %v5802_v43, 1 }
 0x669   :  { %1946 = vrot.lane.b32.xlu1 %v1253_v32, %s5403_s22  ;;  %4615 = vmatpush3.msra.mxu1 %v1441_v45  ;;  %v1460_v47 = vpop.f32.mrf.mxu0 }
 0x66a   :  { %v1461_v49 = vadd.f32 %v4197_v36, %v1460_v47  ;;  %4640 = vmatprep.subr.mxu1 %v5400_v21  ;;  %v5898_v63 = vsel %vm2478_vm11, %v2625_v39, %v2626_v52 }
 0x66b   :  { %v4594_v51 = vpop.f32.mrf.mxu0 }
 0x66c   :  { %v5814_v53 = vrot.slane %v1461_v49, 1  ;;  %2188 = vrot.lane.b32.xlu0 %v1248_v28, %s5404_s23 }
 0x66d   :  { %2186 = vrot.lane.b32.xlu1 %v1243_v23, %s5404_s23 }
 0x66e   :  { %v5822_v55 = vsel %vm2478_vm11, %v2626_v52, %v5814_v53 }
 0x670   :  { %2733 = vrot.lane.b32.xlu0 %v5818_v54, %s5402_s14 }
 0x671   :  { %2190 = vrot.lane.b32.xlu1 %v1253_v32, %s5404_s23 }
 0x674   :  { %2729 = vrot.lane.b32.xlu0 %v5831_v59, %s5402_s14 }
 0x675   :  { %2731 = vrot.lane.b32.xlu1 %v5839_v62, %s5402_s14 }
 0x678   :  { %2977 = vrot.lane.b32.xlu0 %v5818_v54, %s5403_s22 }
 0x679   :  { %2723 = vrot.lane.b32.xlu1 %v5848_v17, %s5402_s14 }
 0x67c   :  { %2975 = vrot.lane.b32.xlu0 %v5839_v62, %s5403_s22 }
 0x67d   :  { %2725 = vrot.lane.b32.xlu1 %v5856_v19, %s5402_s14 }
 0x680   :  { %2973 = vrot.lane.b32.xlu0 %v5831_v59, %s5403_s22 }
 0x681   :  { %2727 = vrot.lane.b32.xlu1 %v5843_v12, %s5402_s14 }
 0x684   :  { %3221 = vrot.lane.b32.xlu0 %v5818_v54, %s5404_s23 }
 0x685   :  { %2967 = vrot.lane.b32.xlu1 %v5848_v17, %s5403_s22 }
 0x688   :  { %3219 = vrot.lane.b32.xlu0 %v5839_v62, %s5404_s23 }
 0x689   :  { %2969 = vrot.lane.b32.xlu1 %v5856_v19, %s5403_s22 }
 0x68c   :  { %3217 = vrot.lane.b32.xlu0 %v5831_v59, %s5404_s23 }
 0x68d   :  { %2971 = vrot.lane.b32.xlu1 %v5843_v12, %s5403_s22 }
 0x690   :  { %3213 = vrot.lane.b32.xlu0 %v5856_v19, %s5404_s23 }
 0x691   :  { %3211 = vrot.lane.b32.xlu1 %v5848_v17, %s5404_s23 }
 0x694   :  { %1844 = vrot.lane.b32.xlu0 %v1446_v41, %s5402_s14 }
 0x695   :  { %3215 = vrot.lane.b32.xlu1 %v5843_v12, %s5404_s23 }
 0x698   :  { %2088 = vrot.lane.b32.xlu0 %v1446_v41, %s5403_s22 }
 0x699   :  { %1842 = vrot.lane.b32.xlu1 %v1441_v45, %s5402_s14 }
 0x69c   :  { %2332 = vrot.lane.b32.xlu0 %v1446_v41, %s5404_s23 }
 0x69d   :  { %2086 = vrot.lane.b32.xlu1 %v1441_v45, %s5403_s22 }
 0x6a0   :  { %2871 = vrot.lane.b32.xlu0 %v5814_v53, %s5402_s14 }
 0x6a1   :  { %2330 = vrot.lane.b32.xlu1 %v1441_v45, %s5404_s23 }
 0x6a5   :  { %1846 = vrot.lane.b32.xlu1 %v5795_v38, %s5402_s14 }
 0x6a9   :  { %2090 = vrot.lane.b32.xlu1 %v5795_v38, %s5403_s22 }
 0x6ad   :  { %2334 = vrot.lane.b32.xlu1 %v5795_v38, %s5404_s23 }
 0x6b1   :  { %2867 = vrot.lane.b32.xlu1 %v5898_v63, %s5402_s14 }
 0x6b5   :  { %2869 = vrot.lane.b32.xlu1 %v5822_v55, %s5402_s14 }
 0x6be   :  { %v1705_v0 = vpop.permute.xlu1 %1704 }
 0x6c2   :  { %v1703_v1 = vpop.permute.xlu1 %1702  ;;  %v1707_v2 = vpop.permute.xlu0 %1706 }
 0x6c3   :  { %4626 = vmatpush3.xpose.msk.msra.mxu0 %vm1464_vm10, %v1707_v2 }
 0x6c4   :  { %4627 = vmatprep.subr.mxu0 %v5400_v21 }
 0x6c6   :  { %v1697_v3 = vpop.permute.xlu1 %1696  ;;  %v1953_v4 = vpop.permute.xlu0 %1952 }
 0x6c7   :  { %4628 = vmatpush3.xpose.msk.msra.mxu0 %vm1464_vm10, %v1705_v0 }
 0x6c8   :  { %4629 = vmatprep.subr.mxu0 %v5400_v21 }
 0x6ca   :  { %v1951_v5 = vpop.permute.xlu0 %1950  ;;  %v1699_v6 = vpop.permute.xlu1 %1698 }
 0x6cb   :  { %4630 = vmatpush3.xpose.msk.msra.mxu0 %vm1464_vm10, %v1703_v1 }
 0x6cc   :  { %4655 = vmatprep.subr.mxu0 %v5400_v21 }
 0x6ce   :  { %v1949_v7 = vpop.permute.xlu0 %1948  ;;  %4632 = vmatmul.mubr.msk.f32.vlgmr.msra.gmra.mxu0 %vm1464_vm10, %v1697_v3 }
 0x6cf   :  { %v1701_v8 = vpop.permute.xlu1 %1700  ;;  %4656 = vmatpush3.xpose.msk.msra.mxu0 %vm1464_vm10, %v1953_v4  ;;  %4634 = vmatprep.mubr.msk.f32.mxu0 %vm5401_vm14, %v5400_v21 }
 0x6d0   :  { %4657 = vmatprep.subr.mxu0 %v5400_v21 }
 0x6d2   :  { %v2197_v9 = vpop.permute.xlu0 %2196  ;;  %4635 = vmatmul.mubr.msk.f32.gmra.mxu0 %vm1464_vm10, %v1699_v6 }
 0x6d3   :  { %v1943_v10 = vpop.permute.xlu1 %1942  ;;  %4658 = vmatpush3.xpose.msk.msra.mxu0 %vm1464_vm10, %v1951_v5  ;;  %4637 = vmatprep.mubr.msk.f32.mxu0 %vm5401_vm14, %v5400_v21 }
 0x6d4   :  { %4659 = vmatprep.subr.mxu0 %v5400_v21 }
 0x6d6   :  { %v2195_v13 = vpop.permute.xlu0 %2194  ;;  %4638 = vmatmul.mubr.msk.f32.gmra.mxu0 %vm1464_vm10, %v1701_v8 }
 0x6d7   :  { %v1945_v14 = vpop.permute.xlu1 %1944  ;;  %4660 = vmatpush3.xpose.msk.msra.mxu0 %vm1464_vm10, %v1949_v7  ;;  %4661 = vmatprep.mubr.msk.f32.mxu0 %vm5401_vm14, %v5400_v21 }
 0x6d8   :  { %4685 = vmatprep.subr.mxu0 %v5400_v21 }
 0x6da   :  { %4662 = vmatmul.mubr.msk.f32.vlgmr.msra.gmra.mxu0 %vm1464_vm10, %v1943_v10  ;;  %v2193_v16 = vpop.permute.xlu0 %2192 }
 0x6db   :  { %v1947_v15 = vpop.permute.xlu1 %1946  ;;  %4686 = vmatpush3.xpose.msk.msra.mxu0 %vm1464_vm10, %v2197_v9  ;;  %4664 = vmatprep.mubr.msk.f32.mxu0 %vm5401_vm14, %v5400_v21 }
 0x6dc   :  { %4687 = vmatprep.subr.mxu0 %v5400_v21 }
 0x6de   :  { %4665 = vmatmul.mubr.msk.f32.gmra.mxu0 %vm1464_vm10, %v1945_v14  ;;  %v2189_v20 = vpop.permute.xlu0 %2188 }
 0x6df   :  { %v2187_v18 = vpop.permute.xlu1 %2186  ;;  %4688 = vmatpush3.xpose.msk.msra.mxu0 %vm1464_vm10, %v2195_v13  ;;  %4667 = vmatprep.mubr.msk.f32.mxu0 %vm5401_vm14, %v5400_v21 }
 0x6e0   :  { %4689 = vmatprep.subr.mxu0 %v5400_v21 }
 0x6e2   :  { %4668 = vmatmul.mubr.msk.f32.gmra.mxu0 %vm1464_vm10, %v1947_v15  ;;  %v2734_v23 = vpop.permute.xlu0 %2733 }
 0x6e3   :  { %4690 = vmatpush3.xpose.msk.msra.mxu0 %vm1464_vm10, %v2193_v16  ;;  %4691 = vmatprep.mubr.msk.f32.mxu0 %vm5401_vm14, %v5400_v21  ;;  %v2191_v22 = vpop.permute.xlu1 %2190 }
 0x6e4   :  { %4715 = vmatprep.subr.mxu0 %v5400_v21 }
 0x6e6   :  { %4692 = vmatmul.mubr.msk.f32.vlgmr.msra.gmra.mxu0 %vm1464_vm10, %v2187_v18  ;;  %v2730_v25 = vpop.permute.xlu0 %2729 }
 0x6e7   :  { %4716 = vmatpush3.xpose.msk.msra.mxu0 %vm1464_vm10, %v5818_v54  ;;  %4694 = vmatprep.mubr.msk.f32.mxu0 %vm5401_vm14, %v5400_v21  ;;  %v2732_v24 = vpop.permute.xlu1 %2731 }
 0x6e8   :  { %4717 = vmatprep.subr.mxu0 %v5400_v21 }
 0x6ea   :  { %4695 = vmatmul.mubr.msk.f32.gmra.mxu0 %vm1464_vm10, %v2189_v20  ;;  %v2978_v27 = vpop.permute.xlu0 %2977 }
 0x6eb   :  { %4718 = vmatpush3.xpose.msk.msra.mxu0 %vm1464_vm10, %v5839_v62  ;;  %4697 = vmatprep.mubr.msk.f32.mxu0 %vm5401_vm14, %v5400_v21  ;;  %v2724_v26 = vpop.permute.xlu1 %2723 }
 0x6ec   :  { %4719 = vmatprep.subr.mxu0 %v5400_v21 }
 0x6ee   :  { %4698 = vmatmul.mubr.msk.f32.gmra.mxu0 %vm1464_vm10, %v2191_v22  ;;  %v2976_v29 = vpop.permute.xlu0 %2975 }
 0x6ef   :  { %4720 = vmatpush3.xpose.msk.msra.mxu0 %vm1464_vm10, %v5831_v59  ;;  %4721 = vmatprep.mubr.msk.f32.mxu0 %vm5401_vm14, %v5400_v21  ;;  %v2726_v28 = vpop.permute.xlu1 %2725 }
 0x6f0   :  { %4745 = vmatprep.subr.mxu0 %v5400_v21 }
 0x6f2   :  { %4722 = vmatmul.mubr.msk.f32.vlgmr.msra.gmra.mxu0 %vm1464_vm10, %v5848_v17  ;;  %v2974_v31 = vpop.permute.xlu0 %2973 }
 0x6f3   :  { %4746 = vmatpush3.xpose.msk.msra.mxu0 %vm1464_vm10, %v2734_v23  ;;  %4724 = vmatprep.mubr.msk.f32.mxu0 %vm5401_vm14, %v5400_v21  ;;  %v2728_v30 = vpop.permute.xlu1 %2727 }
 0x6f4   :  { %4747 = vmatprep.subr.mxu0 %v5400_v21 }
 0x6f6   :  { %4725 = vmatmul.mubr.msk.f32.gmra.mxu0 %vm1464_vm10, %v5856_v19  ;;  %v3222_v33 = vpop.permute.xlu0 %3221 }
 0x6f7   :  { %4748 = vmatpush3.xpose.msk.msra.mxu0 %vm1464_vm10, %v2732_v24  ;;  %4727 = vmatprep.mubr.msk.f32.mxu0 %vm5401_vm14, %v5400_v21  ;;  %v2968_v32 = vpop.permute.xlu1 %2967 }
 0x6f8   :  { %4749 = vmatprep.subr.mxu0 %v5400_v21 }
 0x6fa   :  { %4728 = vmatmul.mubr.msk.f32.gmra.mxu0 %vm1464_vm10, %v5843_v12  ;;  %v3220_v35 = vpop.permute.xlu0 %3219 }
 0x6fb   :  { %4750 = vmatpush3.xpose.msk.msra.mxu0 %vm1464_vm10, %v2730_v25  ;;  %4751 = vmatprep.mubr.msk.f32.mxu0 %vm5401_vm14, %v5400_v21  ;;  %v2970_v34 = vpop.permute.xlu1 %2969 }
 0x6fc   :  { %4775 = vmatprep.subr.mxu0 %v5400_v21 }
 0x6fe   :  { %4752 = vmatmul.mubr.msk.f32.vlgmr.msra.gmra.mxu0 %vm1464_vm10, %v2724_v26  ;;  %v3218_v37 = vpop.permute.xlu0 %3217 }
 0x6ff   :  { %4776 = vmatpush3.xpose.msk.msra.mxu0 %vm1464_vm10, %v2978_v27  ;;  %4754 = vmatprep.mubr.msk.f32.mxu0 %vm5401_vm14, %v5400_v21  ;;  %v2972_v36 = vpop.permute.xlu1 %2971 }
 0x700   :  { %4777 = vmatprep.subr.mxu0 %v5400_v21 }
 0x702   :  { %4755 = vmatmul.mubr.msk.f32.gmra.mxu0 %vm1464_vm10, %v2726_v28  ;;  %v3214_v40 = vpop.permute.xlu0 %3213 }
 0x703   :  { %4778 = vmatpush3.xpose.msk.msra.mxu0 %vm1464_vm10, %v2976_v29  ;;  %4757 = vmatprep.mubr.msk.f32.mxu0 %vm5401_vm14, %v5400_v21  ;;  %v3212_v38 = vpop.permute.xlu1 %3211 }
 0x704   :  { %4779 = vmatprep.subr.mxu0 %v5400_v21 }
 0x706   :  { %4758 = vmatmul.mubr.msk.f32.gmra.mxu0 %vm1464_vm10, %v2728_v30 }
 0x707   :  { %4780 = vmatpush3.xpose.msk.msra.mxu0 %vm1464_vm10, %v2974_v31  ;;  %4781 = vmatprep.mubr.msk.f32.mxu0 %vm5401_vm14, %v5400_v21  ;;  %v3216_v42 = vpop.permute.xlu1 %3215 }
 0x708   :  { %4805 = vmatprep.subr.mxu0 %v5400_v21 }
 0x70a   :  { %4782 = vmatmul.mubr.msk.f32.vlgmr.msra.gmra.mxu0 %vm1464_vm10, %v2968_v32 }
 0x70b   :  { %4806 = vmatpush3.xpose.msk.msra.mxu0 %vm1464_vm10, %v3222_v33  ;;  %4784 = vmatprep.mubr.msk.f32.mxu0 %vm5401_vm14, %v5400_v21  ;;  %v6045_v8 = vpop.permute.xlu1 %1842 }
 0x70c   :  { %4807 = vmatprep.subr.mxu0 %v5400_v21 }
 0x70e   :  { %4785 = vmatmul.mubr.msk.f32.gmra.mxu0 %vm1464_vm10, %v2970_v34 }
 0x70f   :  { %4808 = vmatpush3.xpose.msk.msra.mxu0 %vm1464_vm10, %v3220_v35  ;;  %4787 = vmatprep.mubr.msk.f32.mxu0 %vm5401_vm14, %v5400_v21  ;;  %v6053_v18 = vpop.permute.xlu1 %2086 }
 0x710   :  { %4809 = vmatprep.subr.mxu0 %v5400_v21 }
 0x712   :  { %4788 = vmatmul.mubr.msk.f32.gmra.mxu0 %vm1464_vm10, %v2972_v36 }
 0x713   :  { %4810 = vmatpush3.xpose.msk.msra.mxu0 %vm1464_vm10, %v3218_v37  ;;  %4811 = vmatprep.mubr.msk.f32.mxu0 %vm5401_vm14, %v5400_v21  ;;  %v6061_v27 = vpop.permute.xlu1 %2330  ;;  %v6071_v37 = vpop.permute.xlu0 %1844 }
 0x714   :  { %4835 = vmatprep.subr.mxu0 %v5400_v21 }
 0x716   :  { %4812 = vmatmul.mubr.msk.f32.vlgmr.msra.gmra.mxu0 %vm1464_vm10, %v3212_v38 }
 0x717   :  { %4814 = vmatprep.mubr.msk.f32.mxu0 %vm5401_vm14, %v5400_v21  ;;  %v6069_v34 = vpop.permute.xlu1 %1846 }
 0x71a   :  { %4815 = vmatmul.mubr.msk.f32.gmra.mxu0 %vm1464_vm10, %v3214_v40 }
 0x71b   :  { %4817 = vmatprep.mubr.msk.f32.mxu0 %vm5401_vm14, %v5400_v21  ;;  %v6073_v40 = vpop.permute.xlu1 %2090 }
 0x71c   :  { %v1549_v41 = vpop.f32.mrf.mxu1 }
 0x71d   :  { %v6012_v43 = vmul.f32 0.35355338, %v1549_v41 }
 0x71e   :  { %v4603_v45 = vpop.f32.mrf.mxu1  ;;  %4818 = vmatmul.mubr.msk.f32.gmra.mxu0 %vm1464_vm10, %v3216_v42 }
 0x71f   :  { %v1567_v46 = vsel %vm1566_vm12, %v6012_v43, -inf  ;;  %4843 = vmatprep.mubr.msk.f32.mxu0 %vm5401_vm14, %v5400_v21  ;;  %v6075_v45 = vpop.permute.xlu0 %2088 }
 0x720   :  { %v1554_v47 = vpop.f32.mrf.mxu1  ;;  %1568 = vmax.xlane.f32.xlu0 %v1567_v46 }
 0x721   :  { %v6019_v48 = vmul.f32 0.35355338, %v1554_v47  ;;  %v6077_v47 = vpop.permute.xlu1 %2334 }
 0x722   :  { %v4606_v49 = vpop.f32.mrf.mxu1 }
 0x723   :  { %v1570_v50 = vsel %vm1566_vm12, %v6019_v48, -inf }
 0x724   :  { %v1559_v51 = vpop.f32.mrf.mxu1  ;;  %1571 = vmax.xlane.f32.xlu1 %v1570_v50 }
 0x725   :  { %v6023_v52 = vmul.f32 0.35355338, %v1559_v51  ;;  %v6081_v51 = vpop.permute.xlu0 %2332 }
 0x726   :  { %v4609_v54 = vpop.f32.mrf.mxu1 }
 0x727   :  { %v1574_v56 = vsel %vm1573_vm13, %v6023_v52, -inf }
 0x728   :  { %1575 = vmax.xlane.f32.xlu0 %v1574_v56  ;;  %v6085_v56 = vpop.permute.xlu1 %2867 }
 0x78e   :  { %v1786_v57 = vpop.f32.mrf.mxu0 }
 0x78f   :  { %v6027_v58 = vmul.f32 0.35355338, %v1786_v57 }
 0x790   :  { %v4633_v59 = vpop.f32.mrf.mxu0 }
 0x791   :  { %v1803_v60 = vsel %vm1566_vm12, %v6027_v58, -inf }
 0x792   :  { %1804 = vmax.xlane.f32.xlu0 %v1803_v60  ;;  %v1791_v61 = vpop.f32.mrf.mxu0  ;;  %v6087_v60 = vpop.permute.xlu0 %2871 }
 0x793   :  { %v6031_v62 = vmul.f32 0.35355338, %v1791_v61 }
 0x794   :  { %v4636_v11 = vpop.f32.mrf.mxu0 }
 0x795   :  { %v1806_v12 = vsel %vm1566_vm12, %v6031_v62, -inf  ;;  %v6089_v11 = vpop.permute.xlu1 %2869 }
 0x796   :  { %1807 = vmax.xlane.f32.xlu0 %v1806_v12  ;;  %v1796_v17 = vpop.f32.mrf.mxu0 }
 0x797   :  { %v6035_v19 = vmul.f32 0.35355338, %v1796_v17 }
 0x798   :  { %v4639_v39 = vpop.f32.mrf.mxu0 }
 0x799   :  { %v1809_v0 = vsel %vm1573_vm13, %v6035_v19, -inf }
 0x79a   :  { %1810 = vmax.xlane.f32.xlu1 %v1809_v0  ;;  %v2032_v1 = vpop.f32.mrf.mxu0 }
 0x79b   :  { %v6039_v2 = vmul.f32 0.35355338, %v2032_v1 }
 0x79c   :  { %v4663_v3 = vpop.f32.mrf.mxu0 }
 0x79d   :  { %v2049_v4 = vsel %vm1566_vm12, %v6039_v2, -inf }
 0x79e   :  { %2050 = vmax.xlane.f32.xlu0 %v2049_v4  ;;  %v2037_v5 = vpop.f32.mrf.mxu0 }
 0x79f   :  { %v6043_v6 = vmul.f32 0.35355338, %v2037_v5 }
 0x7a0   :  { %v4666_v7 = vpop.f32.mrf.mxu0 }
 0x7a1   :  { %v2052_v9 = vsel %vm1566_vm12, %v6043_v6, -inf }
 0x7a2   :  { %2053 = vmax.xlane.f32.xlu1 %v2052_v9  ;;  %v2042_v10 = vpop.f32.mrf.mxu0 }
 0x7a3   :  { %v6049_v13 = vmul.f32 0.35355338, %v2042_v10 }
 0x7a4   :  { %v4669_v14 = vpop.f32.mrf.mxu0 }
 0x7a5   :  { %v2055_v15 = vsel %vm1573_vm13, %v6049_v13, -inf }
 0x7a6   :  { %2056 = vmax.xlane.f32.xlu0 %v2055_v15  ;;  %v2276_v16 = vpop.f32.mrf.mxu0 }
 0x7a7   :  { %v6055_v20 = vmul.f32 0.35355338, %v2276_v16 }
 0x7a8   :  { %v4693_v22 = vpop.f32.mrf.mxu0 }
 0x7a9   :  { %v2293_v23 = vsel %vm1566_vm12, %v6055_v20, -inf  ;;  %v1569_v17 = vpop.xlane.xlu0 %1568 }
 0x7aa   :  { %2294 = vmax.xlane.f32.xlu1 %v2293_v23  ;;  %v2281_v24 = vpop.f32.mrf.mxu0  ;;  %v1577_v3 = vsub.f32 %v6012_v43, %v1569_v17 }
 0x7ab   :  { %v6059_v25 = vmul.f32 0.35355338, %v2281_v24 }
 0x7ac   :  { %v4696_v26 = vpop.f32.mrf.mxu0  ;;  %v1580_v10 = vmul.f32 1.442695, %v1577_v3 }
 0x7ad   :  { %v2296_v28 = vsel %vm1566_vm12, %v6059_v25, -inf  ;;  %v1572_v0 = vpop.xlane.xlu1 %1571 }
 0x7ae   :  { %2297 = vmax.xlane.f32.xlu0 %v2296_v28  ;;  %v2286_v29 = vpop.f32.mrf.mxu0  ;;  %v1578_v4 = vsub.f32 %v6019_v48, %v1572_v0  ;;  %4920 = vpow2.f32 %v1580_v10 }
 0x7af   :  { %v6065_v30 = vmul.f32 0.35355338, %v2286_v29 }
 0x7b0   :  { %v4699_v31 = vpop.f32.mrf.mxu0  ;;  %v1582_v14 = vmul.f32 1.442695, %v1578_v4 }
 0x7b1   :  { %v2299_v32 = vsel %vm1573_vm13, %v6065_v30, -inf  ;;  %v1576_v7 = vpop.xlane.xlu0 %1575 }
 0x7b2   :  { %2300 = vmax.xlane.f32.xlu1 %v2299_v32  ;;  %v2569_v33 = vpop.f32.mrf.mxu0  ;;  %v1579_v15 = vsub.f32 %v6023_v52, %v1576_v7  ;;  %4922 = vpow2.f32 %v1582_v14 }
 0x7b3   :  { %v6094_v28 = vmul.f32 0.35355338, %v2569_v33 }
 0x7b4   :  { %v4723_v35 = vpop.f32.mrf.mxu0  ;;  %v1584_v23 = vmul.f32 1.442695, %v1579_v15 }
 0x7b5   :  { %v2586_v32 = vsel %vm1566_vm12, %v6094_v28, -inf }
 0x7b6   :  { %v2574_v36 = vpop.f32.mrf.mxu0  ;;  %4924 = vpow2.f32 %v1584_v23 }
 0x7b7   :  { %v6096_v48 = vmul.f32 0.35355338, %v2574_v36 }
 0x7b8   :  { %v4726_v38 = vpop.f32.mrf.mxu0 }
 0x7b9   :  { %v2589_v35 = vsel %vm1566_vm12, %v6096_v48, -inf }
 0x7ba   :  { %v2579_v41 = vpop.f32.mrf.mxu0 }
 0x7bb   :  { %v6098_v31 = vmul.f32 0.35355338, %v2579_v41  ;;  %v6102_v52 = vpop.eup %4920 }
 0x7bc   :  { %v4729_v42 = vpop.f32.mrf.mxu0  ;;  %v1586_v41 = vsel %vm1566_vm12, %v6102_v52, 0.0 }
 0x7bd   :  { %v2592_v38 = vsel %vm1573_vm13, %v6098_v31, -inf }
 0x7be   :  { %v2813_v46 = vpop.f32.mrf.mxu0 }
 0x7bf   :  { %v6108_v33 = vpop.eup %4922  ;;  %v6110_v36 = vmul.f32 0.35355338, %v2813_v46 }
 0x7c0   :  { %v4753_v49 = vpop.f32.mrf.mxu0  ;;  %v1589_v42 = vsel %vm1566_vm12, %v6108_v33, 0.0 }
 0x7c1   :  { %v2830_v46 = vsel %vm1566_vm12, %v6110_v36, -inf }
 0x7c2   :  { %v2818_v50 = vpop.f32.mrf.mxu0 }
 0x7c3   :  { %3113 = vrot.lane.b32.xlu1 %v5822_v55, %s5403_s22  ;;  %v6116_v49 = vpop.eup %4924 }
 0x7c4   :  { %3115 = vrot.lane.b32.xlu0 %v5814_v53, %s5403_s22  ;;  %v4756_v54 = vpop.f32.mrf.mxu0 }
 0x7c5   :  { %v6118_v54 = vmul.f32 0.35355338, %v2818_v50 }
 0x7c6   :  { %v2823_v57 = vpop.f32.mrf.mxu0 }
 0x7c8   :  { %v4759_v59 = vpop.f32.mrf.mxu0 }
 0x7c9   :  { %v6120_v59 = vmul.f32 0.35355338, %v2823_v57 }
 0x7ca   :  { %v3057_v61 = vpop.f32.mrf.mxu0 }
 0x7cb   :  { %v6126_v17 = vmul.f32 0.35355338, %v3057_v61  ;;  %v2836_v50 = vsel %vm1573_vm13, %v6120_v59, -inf }
 0x7cc   :  { %v4783_v12 = vpop.f32.mrf.mxu0 }
 0x7cd   :  { %v1592_v12 = vsel %vm1573_vm13, %v6116_v49, 0.0  ;;  %v3074_v4 = vsel %vm1566_vm12, %v6126_v17, -inf }
 0x7ce   :  { %v3062_v39 = vpop.f32.mrf.mxu0 }
 0x7cf   :  { %v6128_v0 = vmul.f32 0.35355338, %v3062_v39 }
 0x7d0   :  { %v4786_v1 = vpop.f32.mrf.mxu0 }
 0x7d1   :  { %v2833_v1 = vsel %vm1566_vm12, %v6118_v54, -inf  ;;  %v3077_v61 = vsel %vm1566_vm12, %v6128_v0, -inf }
 0x7d2   :  { %v3067_v5 = vpop.f32.mrf.mxu0 }
 0x7d3   :  { %v6134_v57 = vmul.f32 0.35355338, %v3067_v5 }
 0x7d4   :  { %v4789_v9 = vpop.f32.mrf.mxu0 }
 0x7d5   :  { %v3080_v9 = vsel %vm1573_vm13, %v6134_v57, -inf }
 0x7d6   :  { %v3301_v16 = vpop.f32.mrf.mxu0 }
 0x7d7   :  { %v6136_v3 = vmul.f32 0.35355338, %v3301_v16 }
 0x7d8   :  { %v4813_v22 = vpop.f32.mrf.mxu0 }
 0x7d9   :  { %v3318_v5 = vsel %vm1566_vm12, %v6136_v3, -inf }
 0x7da   :  { %v3306_v24 = vpop.f32.mrf.mxu0 }
 0x7db   :  { %v6142_v39 = vmul.f32 0.35355338, %v3306_v24 }
 0x7dc   :  { %v4816_v26 = vpop.f32.mrf.mxu0 }
 0x7dd   :  { %v3321_v10 = vsel %vm1566_vm12, %v6142_v39, -inf }
 0x7de   :  { %v3311_v43 = vpop.f32.mrf.mxu0 }
 0x7df   :  { %v6144_v7 = vmul.f32 0.35355338, %v3311_v43 }
 0x7e0   :  { %v4819_v29 = vpop.f32.mrf.mxu0 }
 0x7e1   :  { %v3324_v14 = vsel %vm1573_vm13, %v6144_v7, -inf }
 0x7e3   :  { %2587 = vmax.xlane.f32.xlu0 %v2586_v32 }
 0x7e7   :  { %2590 = vmax.xlane.f32.xlu1 %v2589_v35  ;;  %2593 = vmax.xlane.f32.xlu0 %v2592_v38 }
 0x7eb   :  { %1587 = vadd.xlane.f32.xlu1 %v1586_v41  ;;  %1590 = vadd.xlane.f32.xlu0 %v1589_v42 }
 0x7ef   :  { %1593 = vadd.xlane.f32.xlu0 %v1592_v12  ;;  %2831 = vmax.xlane.f32.xlu1 %v2830_v46 }
 0x7f3   :  { %2834 = vmax.xlane.f32.xlu0 %v2833_v1  ;;  %2837 = vmax.xlane.f32.xlu1 %v2836_v50 }
 0x7f7   :  { %3075 = vmax.xlane.f32.xlu0 %v3074_v4  ;;  %3078 = vmax.xlane.f32.xlu1 %v3077_v61 }
 0x7fb   :  { %3081 = vmax.xlane.f32.xlu0 %v3080_v9  ;;  %3319 = vmax.xlane.f32.xlu1 %v3318_v5 }
 0x7ff   :  { %3322 = vmax.xlane.f32.xlu0 %v3321_v10  ;;  %3325 = vmax.xlane.f32.xlu1 %v3324_v14 }
 0x81b   :  { %v1805_v15 = vpop.xlane.xlu0 %1804 }
 0x81c   :  { %v1812_v16 = vsub.f32 %v6027_v58, %v1805_v15 }
 0x81e   :  { %v1815_v22 = vmul.f32 1.442695, %v1812_v16 }
 0x81f   :  { %v1808_v23 = vpop.xlane.xlu0 %1807 }
 0x820   :  { %4926 = vpow2.f32 %v1815_v22  ;;  %v1813_v24 = vsub.f32 %v6031_v62, %v1808_v23 }
 0x822   :  { %v1817_v26 = vmul.f32 1.442695, %v1813_v24 }
 0x823   :  { %v1811_v43 = vpop.xlane.xlu1 %1810 }
 0x824   :  { %4928 = vpow2.f32 %v1817_v26  ;;  %v1814_v29 = vsub.f32 %v6035_v19, %v1811_v43 }
 0x826   :  { %v1819_v32 = vmul.f32 1.442695, %v1814_v29 }
 0x827   :  { %v2051_v35 = vpop.xlane.xlu0 %2050 }
 0x828   :  { %4930 = vpow2.f32 %v1819_v32  ;;  %v2058_v38 = vsub.f32 %v6039_v2, %v2051_v35 }
 0x82a   :  { %v2061_v41 = vmul.f32 1.442695, %v2058_v38 }
 0x82b   :  { %v2054_v42 = vpop.xlane.xlu1 %2053 }
 0x82c   :  { %4932 = vpow2.f32 %v2061_v41  ;;  %v2059_v58 = vsub.f32 %v6043_v6, %v2054_v42 }
 0x82d   :  { %v6159_v12 = vpop.eup %4926 }
 0x82e   :  { %v2063_v46 = vmul.f32 1.442695, %v2059_v58  ;;  %v1821_v62 = vsel %vm1566_vm12, %v6159_v12, 0.0 }
 0x82f   :  { %v2057_v1 = vpop.xlane.xlu0 %2056  ;;  %1822 = vadd.xlane.f32.xlu1 %v1821_v62 }
 0x830   :  { %4934 = vpow2.f32 %v2063_v46  ;;  %v2060_v19 = vsub.f32 %v6049_v13, %v2057_v1 }
 0x831   :  { %v6164_v50 = vpop.eup %4928 }
 0x832   :  { %v2065_v4 = vmul.f32 1.442695, %v2060_v19  ;;  %v1824_v2 = vsel %vm1566_vm12, %v6164_v50, 0.0 }
 0x833   :  { %v2295_v61 = vpop.xlane.xlu1 %2294  ;;  %1825 = vadd.xlane.f32.xlu0 %v1824_v2 }
 0x834   :  { %4936 = vpow2.f32 %v2065_v4  ;;  %v2302_v6 = vsub.f32 %v6055_v20, %v2295_v61 }
 0x835   :  { %v6169_v9 = vpop.eup %4930 }
 0x836   :  { %v2305_v5 = vmul.f32 1.442695, %v2302_v6  ;;  %v1827_v10 = vsel %vm1573_vm13, %v6169_v9, 0.0 }
 0x837   :  { %v2298_v14 = vpop.xlane.xlu0 %2297  ;;  %1828 = vadd.xlane.f32.xlu1 %v1827_v10 }
 0x838   :  { %4938 = vpow2.f32 %v2305_v5  ;;  %v2303_v13 = vsub.f32 %v6059_v25, %v2298_v14 }
 0x839   :  { %v6174_v15 = vpop.eup %4932 }
 0x83a   :  { %v2307_v16 = vmul.f32 1.442695, %v2303_v13  ;;  %v2067_v22 = vsel %vm1566_vm12, %v6174_v15, 0.0 }
 0x83b   :  { %v2301_v23 = vpop.xlane.xlu1 %2300  ;;  %2068 = vadd.xlane.f32.xlu0 %v2067_v22  ;;  %v6199_v58 = vpop.permute.xlu0 %3115 }
 0x83c   :  { %4940 = vpow2.f32 %v2307_v16  ;;  %v2304_v20 = vsub.f32 %v6065_v30, %v2301_v23 }
 0x83d   :  { %v6179_v24 = vpop.eup %4934 }
 0x83e   :  { %v2309_v26 = vmul.f32 1.442695, %v2304_v20  ;;  %v2070_v43 = vsel %vm1566_vm12, %v6179_v24, 0.0 }
 0x83f   :  { %2071 = vadd.xlane.f32.xlu1 %v2070_v43  ;;  %v6201_v46 = vpop.permute.xlu1 %3113 }
 0x840   :  { %4942 = vpow2.f32 %v2309_v26 }
 0x841   :  { %v6183_v25 = vpop.eup %4936 }
 0x842   :  { %v2073_v29 = vsel %vm1573_vm13, %v6183_v25, 0.0 }
 0x843   :  { %2074 = vadd.xlane.f32.xlu0 %v2073_v29 }
 0x845   :  { %v6187_v32 = vpop.eup %4938 }
 0x846   :  { %v2311_v35 = vsel %vm1566_vm12, %v6187_v32, 0.0 }
 0x847   :  { %2312 = vadd.xlane.f32.xlu0 %v2311_v35 }
 0x849   :  { %v6191_v30 = vpop.eup %4940 }
 0x84a   :  { %v2314_v38 = vsel %vm1566_vm12, %v6191_v30, 0.0 }
 0x84b   :  { %2315 = vadd.xlane.f32.xlu1 %v2314_v38 }
 0x84d   :  { %v6195_v41 = vpop.eup %4942 }
 0x84e   :  { %v2317_v42 = vsel %vm1573_vm13, %v6195_v41, 0.0 }
 0x84f   :  { %2318 = vadd.xlane.f32.xlu0 %v2317_v42 }
 0x86c   :  { %v2588_v62 = vpop.xlane.xlu0 %2587 }
 0x86d   :  { %v2595_v1 = vsub.f32 %v6094_v28, %v2588_v62 }
 0x86f   :  { %v2598_v19 = vmul.f32 1.442695, %v2595_v1 }
 0x870   :  { %v2591_v4 = vpop.xlane.xlu1 %2590  ;;  %v2594_v2 = vpop.xlane.xlu0 %2593 }
 0x871   :  { %4944 = vpow2.f32 %v2598_v19  ;;  %v2596_v61 = vsub.f32 %v6096_v48, %v2591_v4  ;;  %v2597_v6 = vsub.f32 %v6098_v31, %v2594_v2 }
 0x873   :  { %v2600_v5 = vmul.f32 1.442695, %v2596_v61  ;;  %v2602_v10 = vmul.f32 1.442695, %v2597_v6 }
 0x874   :  { %v1588_v14 = vpop.xlane.xlu1 %1587  ;;  %v1591_v13 = vpop.xlane.xlu0 %1590 }
 0x875   :  { %4946 = vpow2.f32 %v2600_v5 }
 0x876   :  { %4948 = vpow2.f32 %v2602_v10 }
 0x877   :  { %4950 = vrcp.f32 %v1588_v14 }
 0x878   :  { %4952 = vrcp.f32 %v1591_v13  ;;  %v1594_v16 = vpop.xlane.xlu0 %1593  ;;  %v2832_v22 = vpop.xlane.xlu1 %2831 }
 0x879   :  { %4954 = vrcp.f32 %v1594_v16  ;;  %v2839_v28 = vsub.f32 %v6110_v36, %v2832_v22 }
 0x87b   :  { %v2842_v23 = vmul.f32 1.442695, %v2839_v28 }
 0x87c   :  { %v2835_v20 = vpop.xlane.xlu0 %2834  ;;  %v2838_v26 = vpop.xlane.xlu1 %2837 }
 0x87d   :  { %4956 = vpow2.f32 %v2842_v23  ;;  %v2840_v48 = vsub.f32 %v6118_v54, %v2835_v20  ;;  %v2841_v31 = vsub.f32 %v6120_v59, %v2838_v26 }
 0x87e   :  { %v6209_v43 = vpop.eup %4944 }
 0x87f   :  { %v2844_v29 = vmul.f32 1.442695, %v2840_v48  ;;  %v2846_v35 = vmul.f32 1.442695, %v2841_v31  ;;  %v2604_v38 = vsel %vm1566_vm12, %v6209_v43, 0.0 }
 0x880   :  { %2605 = vadd.xlane.f32.xlu0 %v2604_v38  ;;  %v3079_v10 = vpop.xlane.xlu1 %3078 }
 0x881   :  { %4958 = vpow2.f32 %v2844_v29  ;;  %v3084_v13 = vsub.f32 %v6128_v0, %v3079_v10 }
 0x882   :  { %v6213_v42 = vpop.eup %4946  ;;  %4960 = vpow2.f32 %v2846_v35 }
 0x883   :  { %v6215_v36 = vpop.eup %4948  ;;  %v2607_v54 = vsel %vm1566_vm12, %v6213_v42, 0.0  ;;  %v3088_v26 = vmul.f32 1.442695, %v3084_v13 }
 0x884   :  { %v4951_v59 = vpop.eup %4950  ;;  %v2610_v62 = vsel %vm1573_vm13, %v6215_v36, 0.0  ;;  %2608 = vadd.xlane.f32.xlu1 %v2607_v54  ;;  %v3320_v22 = vpop.xlane.xlu1 %3319 }
 0x885   :  { %v4953_v1 = vpop.eup %4952  ;;  %v6222_v19 = vmul.f32 %v4951_v59, %v6102_v52  ;;  %2611 = vadd.xlane.f32.xlu0 %v2610_v62  ;;  %v3327_v31 = vsub.f32 %v6136_v3, %v3320_v22 }
 0x886   :  { %v4955_v4 = vpop.eup %4954  ;;  %v1598_v2 = vmul.f32 %v4953_v1, %v6108_v33 }
 0x887   :  { %1601 = vst.msk [vmem:[%s5558_s19] sm:$0xff] %vm1566_vm12, %v6222_v19  ;;  %4617 = vmatmul.mubr.msk.f32.vlgmr.msra.gmra.mxu1 %vm1566_vm12, %v6222_v19  ;;  %v1600_v61 = vmul.f32 %v4955_v4, %v6116_v49  ;;  %v3330_v38 = vmul.f32 1.442695, %v3327_v31 }
 0x888   :  { %4641 = vmatpush3.msk.msra.mxu1 %vm1133_vm8, %v6069_v34  ;;  %4619 = vmatprep.mubr.msk.f32.mxu1 %vm5401_vm14, %v5400_v21  ;;  %1602 = vst.msk [vmem:[%s5558_s19 + $0x8] sm:$0xff] %vm1566_vm12, %v1598_v2  ;;  %v3326_v35 = vpop.xlane.xlu1 %3325 }
 0x889   :  { %4642 = vmatprep.subr.mxu1 %v5400_v21  ;;  %1603 = vst.msk [vmem:[%s5558_s19 + $0x10] sm:$0x1] %vm1573_vm13, %v1600_v61 }
 0x88a   :  { %v6240_v52 = vpop.eup %4956  ;;  %4643 = vmatpush3.msra.mxu1 %v6071_v37 }
 0x88b   :  { %4644 = vmatprep.subr.mxu1 %v5400_v21  ;;  %4620 = vmatmul.mubr.msk.f32.gmra.mxu1 %vm1566_vm12, %v1598_v2  ;;  %v2848_v34 = vsel %vm1566_vm12, %v6240_v52, 0.0 }
 0x88c   :  { %4645 = vmatpush3.msra.mxu1 %v6045_v8  ;;  %4622 = vmatprep.mubr.msk.f32.mxu1 %vm5401_vm14, %v5400_v21  ;;  %v3076_v8 = vpop.xlane.xlu0 %3075 }
 0x88d   :  { %2849 = vadd.xlane.f32.xlu0 %v2848_v34  ;;  %4670 = vmatprep.subr.mxu1 %v5400_v21  ;;  %v3083_v14 = vsub.f32 %v6126_v17, %v3076_v8  ;;  %v3329_v17 = vsub.f32 %v6144_v7, %v3326_v35 }
 0x88e   :  { %v6251_v33 = vpop.eup %4958 }
 0x88f   :  { %v6253_v49 = vpop.eup %4960  ;;  %4623 = vmatmul.mubr.msk.f32.gmra.mxu1 %vm1566_vm12, %v1600_v61  ;;  %v2851_v37 = vsel %vm1566_vm12, %v6251_v33, 0.0  ;;  %v3086_v23 = vmul.f32 1.442695, %v3083_v14 }
 0x890   :  { %v2854_v6 = vsel %vm1573_vm13, %v6253_v49, 0.0  ;;  %2852 = vadd.xlane.f32.xlu1 %v2851_v37  ;;  %4646 = vmatprep.mubr.msk.f32.mxu1 %vm5401_vm14, %v5400_v21  ;;  %v3082_v5 = vpop.xlane.xlu0 %3081 }
 0x891   :  { %2855 = vadd.xlane.f32.xlu0 %v2854_v6  ;;  %v3085_v28 = vsub.f32 %v6134_v57, %v3082_v5  ;;  %4962 = vpow2.f32 %v3086_v23  ;;  %v3334_v57 = vmul.f32 1.442695, %v3329_v17 }
 0x892   :  { %4964 = vpow2.f32 %v3088_v26 }
 0x893   :  { %v3090_v48 = vmul.f32 1.442695, %v3085_v28 }
 0x894   :  { %v3323_v16 = vpop.xlane.xlu0 %3322 }
 0x895   :  { %v3328_v20 = vsub.f32 %v6142_v39, %v3323_v16  ;;  %4966 = vpow2.f32 %v3090_v48 }
 0x897   :  { %v3332_v29 = vmul.f32 1.442695, %v3328_v20 }
 0x899   :  { %4968 = vpow2.f32 %v3332_v29 }
 0x89e   :  { %v6272_v59 = vpop.eup %4962 }
 0x89f   :  { %v6274_v3 = vpop.eup %4964  ;;  %v3092_v7 = vsel %vm1566_vm12, %v6272_v59, 0.0 }
 0x8a0   :  { %v3095_v2 = vsel %vm1566_vm12, %v6274_v3, 0.0 }
 0x8a1   :  { %3359 = vrot.lane.b32.xlu1 %v5814_v53, %s5404_s23 }
 0x8a2   :  { %v6276_v62 = vpop.eup %4966 }
 0x8a3   :  { %v3098_v6 = vsel %vm1573_vm13, %v6276_v62, 0.0 }
 0x8a6   :  { %v6280_v4 = vpop.eup %4968 }
 0x8a7   :  { %3111 = vrot.lane.b32.xlu0 %v5898_v63, %s5403_s22  ;;  %v3339_v5 = vsel %vm1566_vm12, %v6280_v4, 0.0 }
 0x8b8   :  { %v1823_v0 = vpop.xlane.xlu1 %1822 }
 0x8b9   :  { %4970 = vrcp.f32 %v1823_v0 }
 0x8ba   :  { %4972 = vpow2.f32 %v3330_v38 }
 0x8bc   :  { %v1826_v54 = vpop.xlane.xlu0 %1825 }
 0x8bd   :  { %4974 = vrcp.f32 %v1826_v54 }
 0x8be   :  { %4976 = vpow2.f32 %v3334_v57 }
 0x8c0   :  { %v1829_v39 = vpop.xlane.xlu1 %1828 }
 0x8c1   :  { %4978 = vrcp.f32 %v1829_v39 }
 0x8c4   :  { %v2069_v1 = vpop.xlane.xlu0 %2068 }
 0x8c5   :  { %4980 = vrcp.f32 %v2069_v1  ;;  %3093 = vadd.xlane.f32.xlu1 %v3092_v7 }
 0x8c6   :  { %v4971_v61 = vpop.eup %4970  ;;  %3096 = vadd.xlane.f32.xlu0 %v3095_v2 }
 0x8c7   :  { %v1831_v34 = vmul.f32 %v4971_v61, %v6159_v12  ;;  %v6287_v8 = vpop.eup %4972 }
 0x8c8   :  { %v2072_v37 = vpop.xlane.xlu1 %2071  ;;  %v3336_v13 = vsel %vm1566_vm12, %v6287_v8, 0.0 }
 0x8c9   :  { %4219 = vst.msk [vmem:[%s5558_s19 + $0x18] sm:$0xff] %vm1566_vm12, %v1831_v34  ;;  %4982 = vrcp.f32 %v2072_v37  ;;  %3099 = vadd.xlane.f32.xlu1 %v3098_v6  ;;  %4647 = vmatmul.mubr.msk.f32.vlgmr.msra.gmra.mxu1 %vm1566_vm12, %v1831_v34 }
 0x8ca   :  { %v4975_v10 = vpop.eup %4974  ;;  %3340 = vadd.xlane.f32.xlu0 %v3339_v5  ;;  %4671 = vmatpush3.msk.msra.mxu1 %vm1133_vm8, %v6073_v40 }
 0x8cb   :  { %4672 = vmatprep.subr.mxu1 %v5400_v21  ;;  %4649 = vmatprep.mubr.msk.f32.mxu1 %vm5401_vm14, %v5400_v21  ;;  %v1833_v12 = vmul.f32 %v4975_v10, %v6164_v50  ;;  %v6303_v16 = vpop.eup %4976 }
 0x8cc   :  { %4673 = vmatpush3.msra.mxu1 %v6075_v45  ;;  %v2075_v14 = vpop.xlane.xlu0 %2074  ;;  %v3342_v22 = vsel %vm1573_vm13, %v6303_v16, 0.0 }
 0x8cd   :  { %4984 = vrcp.f32 %v2075_v14  ;;  %4674 = vmatprep.subr.mxu1 %v5400_v21  ;;  %3337 = vadd.xlane.f32.xlu1 %v3336_v13  ;;  %4220 = vst.msk [vmem:[%s5558_s19 + $0x20] sm:$0xff] %vm1566_vm12, %v1833_v12 }
 0x8ce   :  { %v4979_v40 = vpop.eup %4978  ;;  %4650 = vmatmul.mubr.msk.f32.gmra.mxu1 %vm1566_vm12, %v1833_v12 }
 0x8cf   :  { %4675 = vmatpush3.msra.mxu1 %v6053_v18  ;;  %4652 = vmatprep.mubr.msk.f32.mxu1 %vm5401_vm14, %v5400_v21  ;;  %v1835_v45 = vmul.f32 %v4979_v40, %v6169_v9  ;;  %v1941_v9 = vadd.f32 %v1831_v34, %v6222_v19 }
 0x8d0   :  { %v2313_v50 = vpop.xlane.xlu0 %2312  ;;  %4700 = vmatprep.subr.mxu1 %v5400_v21 }
 0x8d1   :  { %4986 = vrcp.f32 %v2313_v50  ;;  %3343 = vadd.xlane.f32.xlu1 %v3342_v22  ;;  %4221 = vst.msk [vmem:[%s5558_s19 + $0x28] sm:$0x1] %vm1573_vm13, %v1835_v45 }
 0x8d2   :  { %v4981_v28 = vpop.eup %4980  ;;  %4653 = vmatmul.mubr.msk.f32.gmra.mxu1 %vm1566_vm12, %v1835_v45 }
 0x8d3   :  { %v2077_v18 = vmul.f32 %v4981_v28, %v6174_v15  ;;  %4676 = vmatprep.mubr.msk.f32.mxu1 %vm5401_vm14, %v5400_v21 }
 0x8d4   :  { %v2316_v23 = vpop.xlane.xlu1 %2315 }
 0x8d5   :  { %4232 = vst.msk [vmem:[%s5558_s19 + $0x30] sm:$0xff] %vm1566_vm12, %v2077_v18  ;;  %4988 = vrcp.f32 %v2316_v23  ;;  %v2185_v20 = vadd.f32 %v2077_v18, %v1941_v9 }
 0x8d6   :  { %v4983_v26 = vpop.eup %4982  ;;  %4677 = vmatmul.mubr.msk.f32.vlgmr.msra.gmra.mxu1 %vm1566_vm12, %v2077_v18 }
 0x8d7   :  { %4701 = vmatpush3.msk.msra.mxu1 %vm1133_vm8, %v6077_v47  ;;  %4679 = vmatprep.mubr.msk.f32.mxu1 %vm5401_vm14, %v5400_v21  ;;  %v2079_v15 = vmul.f32 %v4983_v26, %v6179_v24 }
 0x8d8   :  { %4702 = vmatprep.subr.mxu1 %v5400_v21  ;;  %v2319_v19 = vpop.xlane.xlu0 %2318 }
 0x8d9   :  { %4703 = vmatpush3.msra.mxu1 %v6081_v51  ;;  %4990 = vrcp.f32 %v2319_v19  ;;  %4233 = vst.msk [vmem:[%s5558_s19 + $0x38] sm:$0xff] %vm1566_vm12, %v2079_v15 }
 0x8da   :  { %v4985_v48 = vpop.eup %4984  ;;  %4704 = vmatprep.subr.mxu1 %v5400_v21  ;;  %4680 = vmatmul.mubr.msk.f32.gmra.mxu1 %vm1566_vm12, %v2079_v15 }
 0x8db   :  { %4705 = vmatpush3.msra.mxu1 %v6061_v27  ;;  %4682 = vmatprep.mubr.msk.f32.mxu1 %vm5401_vm14, %v5400_v21  ;;  %v2081_v47 = vmul.f32 %v4985_v48, %v6183_v25 }
 0x8dc   :  { %4730 = vmatprep.subr.mxu1 %v5400_v21 }
 0x8dd   :  { %4234 = vst.msk [vmem:[%s5558_s19 + $0x40] sm:$0x1] %vm1573_vm13, %v2081_v47 }
 0x8de   :  { %v4987_v51 = vpop.eup %4986  ;;  %4683 = vmatmul.mubr.msk.f32.gmra.mxu1 %vm1566_vm12, %v2081_v47  ;;  %v3513_v47 = vld [vmem:[%s6654_s25 + $0x18] sm:$0xff] }
 0x8df   :  { %v2321_v24 = vmul.f32 %v4987_v51, %v6187_v32  ;;  %4706 = vmatprep.mubr.msk.f32.mxu1 %vm5401_vm14, %v5400_v21  ;;  %4836 = vmatpush3.msra.mxu0 %v3513_v47 }
 0x8e0   :  { %3357 = vrot.lane.b32.xlu0 %v5822_v55, %s5404_s23  ;;  %4837 = vmatprep.subr.mxu0 %v5400_v21 }
 0x8e1   :  { %4245 = vst.msk [vmem:[%s5558_s19 + $0x48] sm:$0xff] %vm1566_vm12, %v2321_v24  ;;  %v6352_v27 = vadd.f32 %v2321_v24, %v2185_v20 }
 0x8e2   :  { %v4989_v25 = vpop.eup %4988  ;;  %4707 = vmatmul.mubr.msk.f32.vlgmr.msra.gmra.mxu1 %vm1566_vm12, %v2321_v24  ;;  %3355 = vrot.lane.b32.xlu1 %v5898_v63, %s5404_s23 }
 0x8e3   :  { %4731 = vmatpush3.msk.msra.mxu1 %vm1133_vm8, %v5814_v53  ;;  %4709 = vmatprep.mubr.msk.f32.mxu1 %vm5401_vm14, %v5400_v21  ;;  %v2323_v32 = vmul.f32 %v4989_v25, %v6191_v30  ;;  %v3511_v25 = vld [vmem:[%s6654_s25 + $0x8] sm:$0xff] }
 0x8e4   :  { %4732 = vmatprep.subr.mxu1 %v5400_v21 }
 0x8e5   :  { %4733 = vmatpush3.msra.mxu1 %v5822_v55  ;;  %4246 = vst.msk [vmem:[%s5558_s19 + $0x50] sm:$0xff] %vm1566_vm12, %v2323_v32 }
 0x8e6   :  { %v4991_v31 = vpop.eup %4990  ;;  %4734 = vmatprep.subr.mxu1 %v5400_v21  ;;  %4710 = vmatmul.mubr.msk.f32.gmra.mxu1 %vm1566_vm12, %v2323_v32 }
 0x8e7   :  { %4735 = vmatpush3.msra.mxu1 %v5898_v63  ;;  %4712 = vmatprep.mubr.msk.f32.mxu1 %vm5401_vm14, %v5400_v21  ;;  %v2325_v53 = vmul.f32 %v4991_v31, %v6195_v41 }
 0x8e8   :  { %4760 = vmatprep.subr.mxu1 %v5400_v21 }
 0x8e9   :  { %4247 = vst.msk [vmem:[%s5558_s19 + $0x58] sm:$0x1] %vm1573_vm13, %v2325_v53 }
 0x8ea   :  { %4713 = vmatmul.mubr.msk.f32.gmra.mxu1 %vm1566_vm12, %v2325_v53  ;;  %v3510_v53 = vld [vmem:[%s6654_s25] sm:$0xff] }
 0x8eb   :  { %4736 = vmatprep.mubr.msk.f32.mxu1 %vm5401_vm14, %v5400_v21 }
 0x909   :  { %v2606_v55 = vpop.xlane.xlu0 %2605 }
 0x90a   :  { %4992 = vrcp.f32 %v2606_v55 }
 0x90d   :  { %v2609_v30 = vpop.xlane.xlu1 %2608 }
 0x90e   :  { %v2612_v29 = vpop.xlane.xlu0 %2611  ;;  %4994 = vrcp.f32 %v2609_v30 }
 0x90f   :  { %4996 = vrcp.f32 %v2612_v29 }
 0x916   :  { %v2850_v63 = vpop.xlane.xlu0 %2849 }
 0x917   :  { %v4993_v35 = vpop.eup %4992  ;;  %4998 = vrcp.f32 %v2850_v63 }
 0x918   :  { %v2614_v41 = vmul.f32 %v4993_v35, %v6209_v43 }
 0x919   :  { %v2853_v38 = vpop.xlane.xlu1 %2852 }
 0x91a   :  { %4258 = vst.msk [vmem:[%s5558_s19 + $0x60] sm:$0xff] %vm1566_vm12, %v2614_v41  ;;  %v2856_v17 = vpop.xlane.xlu0 %2855  ;;  %5000 = vrcp.f32 %v2853_v38  ;;  %4737 = vmatmul.mubr.msk.f32.vlgmr.msra.gmra.mxu1 %vm1566_vm12, %v2614_v41 }
 0x91b   :  { %v4995_v0 = vpop.eup %4994  ;;  %5002 = vrcp.f32 %v2856_v17  ;;  %4761 = vmatpush3.msk.msra.mxu1 %vm1133_vm8, %v6087_v60  ;;  %4739 = vmatprep.mubr.msk.f32.mxu1 %vm5401_vm14, %v5400_v21 }
 0x91c   :  { %v4997_v57 = vpop.eup %4996  ;;  %4762 = vmatprep.subr.mxu1 %v5400_v21  ;;  %v2616_v43 = vmul.f32 %v4995_v0, %v6213_v42 }
 0x91d   :  { %4763 = vmatpush3.msra.mxu1 %v6089_v11  ;;  %v2618_v54 = vmul.f32 %v4997_v57, %v6215_v36 }
 0x91e   :  { %4764 = vmatprep.subr.mxu1 %v5400_v21  ;;  %4259 = vst.msk [vmem:[%s5558_s19 + $0x68] sm:$0xff] %vm1566_vm12, %v2616_v43  ;;  %4740 = vmatmul.mubr.msk.f32.gmra.mxu1 %vm1566_vm12, %v2616_v43  ;;  %v3112_v1 = vpop.permute.xlu0 %3111 }
 0x91f   :  { %4765 = vmatpush3.msra.mxu1 %v6085_v56  ;;  %4742 = vmatprep.mubr.msk.f32.mxu1 %vm5401_vm14, %v5400_v21  ;;  %4260 = vst.msk [vmem:[%s5558_s19 + $0x70] sm:$0x1] %vm1573_vm13, %v2618_v54 }
 0x920   :  { %4790 = vmatprep.subr.mxu1 %v5400_v21 }
 0x922   :  { %4743 = vmatmul.mubr.msk.f32.gmra.mxu1 %vm1566_vm12, %v2618_v54 }
 0x923   :  { %4766 = vmatprep.mubr.msk.f32.mxu1 %vm5401_vm14, %v5400_v21 }
 0x924   :  { %v4999_v60 = vpop.eup %4998 }
 0x925   :  { %v2858_v11 = vmul.f32 %v4999_v60, %v6240_v52 }
 0x927   :  { %v5001_v42 = vpop.eup %5000  ;;  %4271 = vst.msk [vmem:[%s5558_s19 + $0x78] sm:$0xff] %vm1566_vm12, %v2858_v11  ;;  %4767 = vmatmul.mubr.msk.f32.vlgmr.msra.gmra.mxu1 %vm1566_vm12, %v2858_v11  ;;  %v2966_v56 = vadd.f32 %v2858_v11, %v2614_v41 }
 0x928   :  { %v5003_v36 = vpop.eup %5002  ;;  %4791 = vmatpush3.msk.msra.mxu1 %vm1133_vm8, %v6199_v58  ;;  %4769 = vmatprep.mubr.msk.f32.mxu1 %vm5401_vm14, %v5400_v21  ;;  %v2860_v39 = vmul.f32 %v5001_v42, %v6251_v33  ;;  %v3360_v33 = vpop.permute.xlu1 %3359 }
 0x929   :  { %4792 = vmatprep.subr.mxu1 %v5400_v21  ;;  %v2862_v52 = vmul.f32 %v5003_v36, %v6253_v49 }
 0x92a   :  { %4793 = vmatpush3.msra.mxu1 %v6201_v46  ;;  %4272 = vst.msk [vmem:[%s5558_s19 + $0x80] sm:$0xff] %vm1566_vm12, %v2860_v39 }
 0x92b   :  { %4794 = vmatprep.subr.mxu1 %v5400_v21  ;;  %4770 = vmatmul.mubr.msk.f32.gmra.mxu1 %vm1566_vm12, %v2860_v39  ;;  %4273 = vst.msk [vmem:[%s5558_s19 + $0x88] sm:$0x1] %vm1573_vm13, %v2862_v52 }
 0x92c   :  { %4795 = vmatpush3.msra.mxu1 %v3112_v1  ;;  %4772 = vmatprep.mubr.msk.f32.mxu1 %vm5401_vm14, %v5400_v21 }
 0x92d   :  { %4820 = vmatprep.subr.mxu1 %v5400_v21 }
 0x92f   :  { %4773 = vmatmul.mubr.msk.f32.gmra.mxu1 %vm1566_vm12, %v2862_v52 }
 0x930   :  { %4796 = vmatprep.mubr.msk.f32.mxu1 %vm5401_vm14, %v5400_v21 }
 0x947   :  { %v6427_v58 = vpop.f32.mrf.mxu1 }
 0x949   :  { %v4618_v46 = vpop.f32.mrf.mxu1 }
 0x94b   :  { %v6429_v49 = vpop.f32.mrf.mxu1 }
 0x94d   :  { %v4621_v7 = vpop.f32.mrf.mxu1 }
 0x94e   :  { %v3094_v2 = vpop.xlane.xlu1 %3093 }
 0x94f   :  { %v6431_v61 = vpop.f32.mrf.mxu1  ;;  %v3097_v34 = vpop.xlane.xlu0 %3096  ;;  %5004 = vrcp.f32 %v3094_v2 }
 0x950   :  { %5006 = vrcp.f32 %v3097_v34 }
 0x951   :  { %v4624_v37 = vpop.f32.mrf.mxu1 }
 0x952   :  { %v3100_v6 = vpop.xlane.xlu1 %3099 }
 0x953   :  { %v3341_v5 = vpop.xlane.xlu0 %3340  ;;  %5008 = vrcp.f32 %v3100_v6 }
 0x954   :  { %5010 = vrcp.f32 %v3341_v5 }
 0x956   :  { %v3338_v10 = vpop.xlane.xlu1 %3337 }
 0x957   :  { %5012 = vrcp.f32 %v3338_v10 }
 0x95a   :  { %v3344_v12 = vpop.xlane.xlu1 %3343 }
 0x95b   :  { %5014 = vrcp.f32 %v3344_v12 }
 0x95c   :  { %v5005_v14 = vpop.eup %5004 }
 0x95d   :  { %v5007_v13 = vpop.eup %5006  ;;  %v3102_v40 = vmul.f32 %v5005_v14, %v6272_v59  ;;  %v3358_v59 = vpop.permute.xlu0 %3357 }
 0x95e   :  { %v3104_v45 = vmul.f32 %v5007_v13, %v6274_v3  ;;  %v3356_v9 = vpop.permute.xlu1 %3355 }
 0x95f   :  { %4284 = vst.msk [vmem:[%s5558_s19 + $0x90] sm:$0xff] %vm1566_vm12, %v3102_v40  ;;  %4797 = vmatmul.mubr.msk.f32.vlgmr.msra.gmra.mxu1 %vm1566_vm12, %v3102_v40  ;;  %v3210_v50 = vadd.f32 %v3102_v40, %v2966_v56 }
 0x960   :  { %v5009_v22 = vpop.eup %5008  ;;  %4821 = vmatpush3.msk.msra.mxu1 %vm1133_vm8, %v3360_v33  ;;  %4799 = vmatprep.mubr.msk.f32.mxu1 %vm5401_vm14, %v5400_v21  ;;  %4285 = vst.msk [vmem:[%s5558_s19 + $0x98] sm:$0xff] %vm1566_vm12, %v3104_v45 }
 0x961   :  { %v5011_v28 = vpop.eup %5010  ;;  %4822 = vmatprep.subr.mxu1 %v5400_v21  ;;  %v3106_v3 = vmul.f32 %v5009_v22, %v6276_v62 }
 0x962   :  { %4823 = vmatpush3.msra.mxu1 %v3358_v59  ;;  %v3348_v18 = vmul.f32 %v5011_v28, %v6280_v4 }
 0x963   :  { %4824 = vmatprep.subr.mxu1 %v5400_v21  ;;  %4800 = vmatmul.mubr.msk.f32.gmra.mxu1 %vm1566_vm12, %v3104_v45  ;;  %4286 = vst.msk [vmem:[%s5558_s19 + $0xa0] sm:$0x1] %vm1573_vm13, %v3106_v3 }
 0x964   :  { %v5013_v23 = vpop.eup %5012  ;;  %4825 = vmatpush3.msra.mxu1 %v3356_v9  ;;  %4802 = vmatprep.mubr.msk.f32.mxu1 %vm5401_vm14, %v5400_v21  ;;  %4298 = vst.msk [vmem:[%s5558_s19 + $0xb0] sm:$0xff] %vm1566_vm12, %v3348_v18 }
 0x965   :  { %v3346_v62 = vmul.f32 %v5013_v23, %v6287_v8 }
 0x967   :  { %4297 = vst.msk [vmem:[%s5558_s19 + $0xa8] sm:$0xff] %vm1566_vm12, %v3346_v62  ;;  %4803 = vmatmul.mubr.msk.f32.gmra.mxu1 %vm1566_vm12, %v3106_v3  ;;  %v3454_v4 = vadd.f32 %v3346_v62, %v3210_v50 }
 0x968   :  { %v5015_v20 = vpop.eup %5014  ;;  %4826 = vmatprep.mubr.msk.f32.mxu1 %vm5401_vm14, %v5400_v21 }
 0x969   :  { %v3350_v26 = vmul.f32 %v5015_v20, %v6303_v16  ;;  %v4086_v15 = vrot.slane %v3454_v4, 7 }
 0x96b   :  { %4827 = vmatmul.mubr.msk.f32.vlgmr.msra.gmra.mxu1 %vm1566_vm12, %v3346_v62  ;;  %4299 = vst.msk [vmem:[%s5558_s19 + $0xb8] sm:$0x1] %vm1573_vm13, %v3350_v26  ;;  %v6466_v8 = vsel %vm1133_vm8, %v6352_v27, %v4086_v15  ;;  %v3512_v27 = vld [vmem:[%s6654_s25 + $0x10] sm:$0xff]  ;;  %s5405_s19 = smov 16  }
 0x96c   :  { %4829 = vmatprep.mubr.msk.f32.mxu1 %vm5401_vm14, %v5400_v21  ;;  %4838 = vmatpush3.msra.mxu0 %v3512_v27 }
 0x96d   :  { %4839 = vmatprep.subr.mxu0 %v5400_v21 }
 0x96e   :  { %4840 = vmatpush3.msra.mxu0 %v3511_v25 }
 0x96f   :  { %4830 = vmatmul.mubr.msk.f32.gmra.mxu1 %vm1566_vm12, %v3348_v18  ;;  %4841 = vmatprep.subr.mxu0 %v5400_v21 }
 0x970   :  { %4832 = vmatprep.mubr.msk.f32.mxu1 %vm5401_vm14, %v5400_v21  ;;  %4842 = vmatpush3.msra.mxu0 %v3510_v53 }
 0x973   :  { %4833 = vmatmul.mubr.msk.f32.gmra.mxu1 %vm1566_vm12, %v3350_v26 }
 0x989   :  { %v1927_v16 = vpop.f32.mrf.mxu1 }
 0x98a   :  { %2433 = vrot.lane.b32.xlu0 %v1927_v16, %s5392_s2 }
 0x98b   :  { %v4648_v19 = vpop.f32.mrf.mxu1 }
 0x98e   :  { %v1932_v48 = vpop.f32.mrf.mxu1 }
 0x98f   :  { %2435 = vrot.lane.b32.xlu1 %v1932_v48, %s5392_s2 }
 0x990   :  { %v4651_v51 = vpop.f32.mrf.mxu1 }
 0x992   :  { %v1937_v24 = vpop.f32.mrf.mxu1 }
 0x993   :  { %2437 = vrot.lane.b32.xlu0 %v1937_v24, %s5392_s2 }
 0x994   :  { %v4654_v32 = vpop.f32.mrf.mxu1 }
 0x996   :  { %v2171_v31 = vpop.f32.mrf.mxu1 }
 0x997   :  { %2445 = vrot.lane.b32.xlu1 %v2171_v31, %s5405_s19 }
 0x998   :  { %v4678_v55 = vpop.f32.mrf.mxu1 }
 0x99a   :  { %v2176_v30 = vpop.f32.mrf.mxu1 }
 0x99b   :  { %2447 = vrot.lane.b32.xlu0 %v2176_v30, %s5405_s19 }
 0x99c   :  { %v4681_v29 = vpop.f32.mrf.mxu1 }
 0x99e   :  { %v2181_v63 = vpop.f32.mrf.mxu1 }
 0x99f   :  { %2449 = vrot.lane.b32.xlu0 %v2181_v63, %s5405_s19 }
 0x9a0   :  { %v4684_v35 = vpop.f32.mrf.mxu1 }
 0x9a2   :  { %v2415_v41 = vpop.f32.mrf.mxu1 }
 0x9a3   :  { %2457 = vrot.lane.b32.xlu0 %v2415_v41, %s5406_s26 }
 0x9a4   :  { %v4708_v38 = vpop.f32.mrf.mxu1 }
 0x9a6   :  { %v2420_v17 = vpop.f32.mrf.mxu1 }
 0x9a7   :  { %2459 = vrot.lane.b32.xlu0 %v2420_v17, %s5406_s26 }
 0x9a8   :  { %v4711_v0 = vpop.f32.mrf.mxu1 }
 0x9aa   :  { %v2425_v57 = vpop.f32.mrf.mxu1 }
 0x9ab   :  { %2461 = vrot.lane.b32.xlu1 %v2425_v57, %s5406_s26 }
 0x9ac   :  { %v4714_v43 = vpop.f32.mrf.mxu1 }
 0x9da   :  { %v2709_v54 = vpop.f32.mrf.mxu1 }
 0x9dc   :  { %v4738_v60 = vpop.f32.mrf.mxu1 }
 0x9de   :  { %v6490_v11 = vpop.f32.mrf.mxu1 }
 0x9e0   :  { %v4741_v42 = vpop.f32.mrf.mxu1 }
 0x9e2   :  { %v6492_v56 = vpop.f32.mrf.mxu1 }
 0x9e4   :  { %v4744_v36 = vpop.f32.mrf.mxu1 }
 0x9e7   :  { %v2952_v39 = vpop.f32.mrf.mxu1 }
 0x9e8   :  { %3458 = vrot.lane.b32.xlu1 %v2952_v39, %s5392_s2 }
 0x9e9   :  { %v4768_v52 = vpop.f32.mrf.mxu1 }
 0x9eb   :  { %v2957_v1 = vpop.f32.mrf.mxu1 }
 0x9ec   :  { %3460 = vrot.lane.b32.xlu0 %v2957_v1, %s5392_s2  ;;  %v6544_v1 = vld [vmem:[%s5548_s9] ss:$0 sm:$0xff]  ;;  %s5409_s9 = smov [#allocation26]  }
 0x9ed   :  { %v4771_v46 = vpop.f32.mrf.mxu1 }
 0x9ef   :  { %v2962_v33 = vpop.f32.mrf.mxu1 }
 0x9f1   :  { %v4774_v7 = vpop.f32.mrf.mxu1 }
 0x9fc   :  { %v2434_v2 = vpop.permute.xlu0 %2433 }
 0x9fd   :  { %v2466_v13 = vsel %vm1464_vm10, %v6427_v58, %v2434_v2 }
 0xa01   :  { %v2436_v6 = vpop.permute.xlu1 %2435 }
 0xa02   :  { %v2467_v22 = vsel %vm1464_vm10, %v6429_v49, %v2436_v6 }
 0xa05   :  { %v2438_v34 = vpop.permute.xlu0 %2437 }
 0xa06   :  { %v2468_v5 = vsel %vm1464_vm10, %v6431_v61, %v2438_v34 }
 0xa09   :  { %v2446_v12 = vpop.permute.xlu1 %2445 }
 0xa0a   :  { %v2469_v40 = vsel %vm303_vm0, %v2466_v13, %v2446_v12 }
 0xa0d   :  { %v2448_v37 = vpop.permute.xlu0 %2447 }
 0xa0e   :  { %v2470_v61 = vsel %vm303_vm0, %v2467_v22, %v2448_v37 }
 0xa11   :  { %v2450_v10 = vpop.permute.xlu0 %2449 }
 0xa12   :  { %v2471_v14 = vsel %vm303_vm0, %v2468_v5, %v2450_v10 }
 0xa15   :  { %v2458_v45 = vpop.permute.xlu0 %2457 }
 0xa16   :  { %v2473_v50 = vsel %vm2472_vm15, %v2469_v40, %v2458_v45 }
 0xa17   :  { %4844 = vmatmul.mubr.msk.f32.vlgmr.msra.gmra.mxu0 %vm3521_vm1, %v2473_v50 }
 0xa18   :  { %4846 = vmatprep.mubr.msk.f32.mxu0 %vm5401_vm14, %v5400_v21 }
 0xa19   :  { %v2460_v28 = vpop.permute.xlu0 %2459 }
 0xa1a   :  { %v2474_v59 = vsel %vm2472_vm15, %v2470_v61, %v2460_v28 }
 0xa1b   :  { %4847 = vmatmul.mubr.msk.f32.gmra.mxu0 %vm3521_vm1, %v2474_v59 }
 0xa1c   :  { %4849 = vmatprep.mubr.msk.f32.mxu0 %vm5401_vm14, %v5400_v21 }
 0xa1d   :  { %v2462_v19 = vpop.permute.xlu1 %2461 }
 0xa1e   :  { %v2475_v53 = vsel %vm2472_vm15, %v2471_v14, %v2462_v19 }
 0xa1f   :  { %v3196_v58 = vpop.f32.mrf.mxu1 }
 0xa20   :  { %3470 = vrot.lane.b32.xlu1 %v3196_v58, %s5405_s19 }
 0xa21   :  { %v4798_v3 = vpop.f32.mrf.mxu1 }
 0xa23   :  { %v3201_v18 = vpop.f32.mrf.mxu1 }
 0xa25   :  { %v4801_v9 = vpop.f32.mrf.mxu1 }
 0xa27   :  { %v3206_v49 = vpop.f32.mrf.mxu1 }
 0xa29   :  { %v4804_v23 = vpop.f32.mrf.mxu1 }
 0xa2b   :  { %v3440_v62 = vpop.f32.mrf.mxu1 }
 0xa2c   :  { %3482 = vrot.lane.b32.xlu1 %v3440_v62, %s5406_s26 }
 0xa2d   :  { %v4828_v4 = vpop.f32.mrf.mxu1 }
 0xa2f   :  { %v3445_v20 = vpop.f32.mrf.mxu1 }
 0xa30   :  { %3472 = vrot.lane.b32.xlu1 %v3201_v18, %s5405_s19  ;;  %3484 = vrot.lane.b32.xlu0 %v3445_v20, %s5406_s26 }
 0xa31   :  { %v4831_v26 = vpop.f32.mrf.mxu1 }
 0xa33   :  { %v3450_v15 = vpop.f32.mrf.mxu1 }
 0xa34   :  { %3462 = vrot.lane.b32.xlu1 %v2962_v33, %s5392_s2  ;;  %3474 = vrot.lane.b32.xlu0 %v3206_v49, %s5405_s19  ;;  %s4105_s2 = sshll.u32 %s5409_s9, 4  ;;  %s4106_s2 = int_to_ptr.vmem [resolvable:$true] %s4105_s2 }
 0xa35   :  { %v4834_v16 = vpop.f32.mrf.mxu1  ;;  %s5316_s28 = scalar_lea.vmem %s4106_s2, 32  ;;  %p5321_p6 = scmp.lt.s32.totalorder %s4106_s2, %s4106_s2 }
 0xa36   :  { %p5317_p5 = scmp.ne.s32.totalorder %s4106_s2, %s5316_s28  ;;  %p5322_p7 = scmp.lt.s32.totalorder %s5316_s28, %s5316_s28 }
 0xa38   :  { %4090 = vrot.lane.b32.xlu0 %v6466_v8, %s5407_s8  ;;  %3486 = vrot.lane.b32.xlu1 %v3450_v15, %s5406_s26  ;;  %p5323_p8 = por %p5322_p7, %p5321_p6 }
 0xa3a   :  { %p5324_p9 = pnand %p5323_p8, %p5317_p5 }
 0xa5a   :  { %v3459_v48 = vpop.permute.xlu1 %3458 }
 0xa5b   :  { %v3491_v51 = vsel %vm1464_vm10, %v2709_v54, %v3459_v48 }
 0xa5e   :  { %v3461_v24 = vpop.permute.xlu0 %3460 }
 0xa5f   :  { %v3492_v55 = vsel %vm1464_vm10, %v6490_v11, %v3461_v24 }
 0xa92   :  { %v3471_v47 = vpop.permute.xlu1 %3470 }
 0xa93   :  { %v3494_v27 = vsel %vm303_vm0, %v3491_v51, %v3471_v47 }
 0xa9e   :  { %v3483_v25 = vpop.permute.xlu1 %3482 }
 0xa9f   :  { %v3497_v32 = vsel %vm2472_vm15, %v3494_v27, %v3483_v25 }
 0xaa0   :  { %v3503_v31 = vrot.slane %v3497_v32, 7 }
 0xaa2   :  { %v3485_v8 = vpop.permute.xlu0 %3484  ;;  %v3473_v30 = vpop.permute.xlu1 %3472  ;;  %v3509_v29 = vsel %vm1133_vm8, %v2475_v53, %v3503_v31 }
 0xaa3   :  { %v3495_v63 = vsel %vm303_vm0, %v3492_v55, %v3473_v30  ;;  %4850 = vmatmul.mubr.msk.f32.gmra.mxu0 %vm3521_vm1, %v3509_v29 }
 0xaa4   :  { %v3498_v35 = vsel %vm2472_vm15, %v3495_v63, %v3485_v8  ;;  %4852 = vmatprep.mubr.msk.f32.mxu0 %vm5401_vm14, %v5400_v21 }
 0xaa5   :  { %v3504_v41 = vrot.slane %v3498_v35, 7 }
 0xaa6   :  { %v3475_v38 = vpop.permute.xlu0 %3474  ;;  %v3463_v17 = vpop.permute.xlu1 %3462 }
 0xaa7   :  { %v3493_v0 = vsel %vm1464_vm10, %v6492_v56, %v3463_v17  ;;  %v3505_v57 = vsel %vm1133_vm8, %v3503_v31, %v3504_v41  ;;  %v5408_v56 = vmov 1966171168  }
 0xaa8   :  { %4853 = vmatmul.mubr.msk.f32.gmra.mxu0 %vm3521_vm1, %v3505_v57  ;;  %v3496_v54 = vsel %vm303_vm0, %v3493_v0, %v3475_v38  ;;  %v3632_v39 = vunpack.c.l.s4 %v5408_v56 }
 0xaa9   :  { %4855 = vmatprep.mubr.msk.f32.mxu0 %vm5401_vm14, %v5400_v21 }
 0xaaa   :  { %v4091_v43 = vpop.permute.xlu0 %4090  ;;  %v3487_v60 = vpop.permute.xlu1 %3486  ;;  %v3633_v52 = vunpack.c.0.s8 %v3632_v39 }
 0xaab   :  { %v3499_v11 = vsel %vm2472_vm15, %v3496_v54, %v3487_v60  ;;  %4094 = vst.msk [vmem:[#allocation26] sm:$0x3] %vm4093_vm2, %v4091_v43 }
 0xaac   :  { %v3506_v42 = vrot.slane %v3499_v11, 7  ;;  %v6547_v46 = vsub.s32 %v3633_v52, %v5696_v44 }
 0xaae   :  { %v3507_v36 = vsel %vm1133_vm8, %v3504_v41, %v3506_v42 }
 0xaaf   :  { %4856 = vmatmul.mubr.msk.f32.gmra.mxu0 %vm3521_vm1, %v3507_v36 }
 0xad7   :  { %v3601_v21 = vpop.f32.mrf.mxu0 }
 0xad8   :  { %v3602_v33 = vadd.f32 %v6544_v1, %v3601_v21 }
 0xad9   :  { %v4845_v7 = vpop.f32.mrf.mxu0 }
 0xada   :  { %v3630_v2 = vcombine.high %v3602_v33, %v3602_v33  ;;  %v3637_v34 = vrot.slane %v3602_v33, %v6547_v46 }
 0xadb   :  { %v3606_v37 = vpop.f32.mrf.mxu0 }
 0xadc   :  { %v3644_v6 = vrot.slane %v3630_v2, %v6547_v46  ;;  %v3645_v5 = vcombine.high %v3637_v34, %v3637_v34  ;;  %v3607_v10 = vadd.f32 %v6544_v1, %v3606_v37  ;;  %v3653_v13 = vrot.slane %v3637_v34, %v6547_v46 }
 0xadd   :  { %v4848_v12 = vpop.f32.mrf.mxu0 }
 0xade   :  { %v3646_v14 = vcombine.high %v3644_v6, %v3644_v6  ;;  %v3667_v44 = vrot.slane %v3645_v5, %v6547_v46  ;;  %v3679_v40 = vcombine.high %v3607_v10, %v3607_v10  ;;  %v3660_v45 = vrot.slane %v3644_v6, %v6547_v46 }
 0xadf   :  { %v3686_v50 = vrot.slane %v3607_v10, %v6547_v46 }
 0xae0   :  { %v3674_v22 = vrot.slane %v3646_v14, %v6547_v46  ;;  %v3848_v61 = vcombine.low %v3653_v13, %v3667_v44  ;;  %v4310_v28 = vcombine.high %v3653_v13, %v3667_v44  ;;  %v3693_v59 = vrot.slane %v3679_v40, %v6547_v46 }
 0xae1   :  { %v3694_v58 = vcombine.high %v3686_v50, %v3686_v50  ;;  %v3702_v62 = vrot.slane %v3686_v50, %v6547_v46 }
 0xae2   :  { %v3850_v3 = vcombine.low %v3660_v45, %v3674_v22  ;;  %v4311_v18 = vcombine.high %v3660_v45, %v3674_v22  ;;  %v3858_v9 = vrot.slane %v3848_v61, %v6547_v46  ;;  %v3865_v49 = vrot.slane %v4310_v28, %v6547_v46 }
 0xae3   :  { %v3695_v23 = vcombine.high %v3693_v59, %v3693_v59  ;;  %v3716_v4 = vrot.slane %v3694_v58, %v6547_v46  ;;  %v3709_v16 = vrot.slane %v3693_v59, %v6547_v46 }
 0xae4   :  { %v3872_v20 = vrot.slane %v3850_v3, %v6547_v46  ;;  %v3879_v26 = vrot.slane %v4311_v18, %v6547_v46  ;;  %v3880_v15 = vcombine.low %v3858_v9, %v3865_v49 }
 0xae5   :  { %v3723_v19 = vrot.slane %v3695_v23, %v6547_v46  ;;  %v3897_v48 = vcombine.low %v3702_v62, %v3716_v4  ;;  %v4312_v47 = vcombine.high %v3702_v62, %v3716_v4 }
 0xae6   :  { %v3881_v51 = vcombine.low %v3872_v20, %v3879_v26  ;;  %v3888_v31 = vrot.slane %v3880_v15, %v6547_v46 }
 0xae7   :  { %v3899_v24 = vcombine.low %v3709_v16, %v3723_v19  ;;  %v4313_v27 = vcombine.high %v3709_v16, %v3723_v19  ;;  %v3907_v25 = vrot.slane %v3897_v48, %v6547_v46  ;;  %v3914_v32 = vrot.slane %v4312_v47, %v6547_v46 }
 0xae8   :  { %v3895_v53 = vrot.slane %v3881_v51, %v6547_v46 }
 0xae9   :  { %v3921_v55 = vrot.slane %v3899_v24, %v6547_v46  ;;  %v3928_v8 = vrot.slane %v4313_v27, %v6547_v46  ;;  %v3929_v30 = vcombine.low %v3907_v25, %v3914_v32 }
 0xaea   :  { %v3896_v29 = vcombine.low %v3888_v31, %v3895_v53 }
 0xaeb   :  { %v3930_v63 = vcombine.low %v3921_v55, %v3928_v8  ;;  %v3937_v35 = vrot.slane %v3929_v30, %v6547_v46 }
 0xaec   :  { %4078 = vst.msk [vmem:[%s5553_s13] sm:$0xff] %vm303_vm0, %v3896_v29 }
 0xaed   :  { %v3944_v41 = vrot.slane %v3930_v63, %v6547_v46 }
 0xaef   :  { %v3945_v38 = vcombine.low %v3937_v35, %v3944_v41 }
 0xaf1   :  { %4079 = vst.msk [vmem:[%s5553_s13 + $0x8] sm:$0xff] %vm303_vm0, %v3945_v38 }
 0xaf2   :  { %5327 = shalt.err (!%p5324_p9)
}
 0xaf3   :  { %4108 = dma.vmem_to_hbm [thread:$0]  %s4106_s2, 32, %s5563_s5, [#allocation4]   ;;  %vm4080_vm14 = vcmask 122880  }
 0xb63   :  { %v3611_v17 = vpop.f32.mrf.mxu0 }
 0xb64   :  { %v3612_v0 = vadd.f32 %v6544_v1, %v3611_v17 }
 0xb65   :  { %v4851_v57 = vpop.f32.mrf.mxu0 }
 0xb66   :  { %v3728_v43 = vcombine.high %v3612_v0, %v3612_v0  ;;  %v3735_v54 = vrot.slane %v3612_v0, %v6547_v46 }
 0xb68   :  { %v3742_v60 = vrot.slane %v3728_v43, %v6547_v46  ;;  %v3743_v11 = vcombine.high %v3735_v54, %v3735_v54  ;;  %v3751_v42 = vrot.slane %v3735_v54, %v6547_v46  ;;  %v3616_v36 = vpop.f32.mrf.mxu0 }
 0xb69   :  { %v3617_v56 = vadd.f32 %v6544_v1, %v3616_v36 }
 0xb6a   :  { %v3744_v39 = vcombine.high %v3742_v60, %v3742_v60  ;;  %v3758_v52 = vrot.slane %v3742_v60, %v6547_v46  ;;  %v3765_v21 = vrot.slane %v3743_v11, %v6547_v46  ;;  %v3773_v33 = vcombine.high %v3751_v42, %v3751_v42  ;;  %v4854_v7 = vpop.f32.mrf.mxu0 }
 0xb6b   :  { %v3952_v2 = vrot.slane %v3751_v42, %v6547_v46  ;;  %v3777_v34 = vcombine.high %v3617_v56, %v3617_v56  ;;  %v3784_v37 = vrot.slane %v3617_v56, %v6547_v46 }
 0xb6c   :  { %v3772_v6 = vrot.slane %v3744_v39, %v6547_v46  ;;  %v3774_v5 = vcombine.high %v3758_v52, %v3758_v52  ;;  %v3775_v10 = vcombine.high %v3765_v21, %v3765_v21  ;;  %v3960_v12 = vcombine.low %v3765_v21, %v3773_v33 }
 0xb6d   :  { %v3959_v14 = vrot.slane %v3952_v2, %v6547_v46  ;;  %v3791_v13 = vrot.slane %v3777_v34, %v6547_v46  ;;  %v3792_v44 = vcombine.high %v3784_v37, %v3784_v37  ;;  %v3800_v40 = vrot.slane %v3784_v37, %v6547_v46 }
 0xb6e   :  { %v3961_v45 = vcombine.low %v3775_v10, %v3758_v52  ;;  %v3962_v50 = vcombine.low %v3772_v6, %v3774_v5  ;;  %v3776_v22 = vcombine.high %v3772_v6, %v3772_v6  ;;  %v3970_v18 = vrot.slane %v3960_v12, %v6547_v46 }
 0xb6f   :  { %4081 = vst.msk [vmem:[%s5553_s13 + $0x10] sm:$0x1] %vm4080_vm14, %v3959_v14  ;;  %v3793_v61 = vcombine.high %v3791_v13, %v3791_v13  ;;  %v3807_v28 = vrot.slane %v3791_v13, %v6547_v46  ;;  %v3814_v59 = vrot.slane %v3792_v44, %v6547_v46  ;;  %v3822_v58 = vcombine.high %v3800_v40, %v3800_v40  ;;  %v3621_v3 = vpop.f32.mrf.mxu0 }
 0xb70   :  { %v3977_v9 = vrot.slane %v3961_v45, %v6547_v46  ;;  %v3963_v49 = vcombine.low %v3776_v22, %v3800_v40  ;;  %v3622_v23 = vadd.f32 %v6544_v1, %v3621_v3  ;;  %v3984_v19 = vrot.slane %v3962_v50, %v6547_v46 }
 0xb71   :  { %v3821_v62 = vrot.slane %v3793_v61, %v6547_v46  ;;  %v3823_v4 = vcombine.high %v3807_v28, %v3807_v28  ;;  %v3824_v20 = vcombine.high %v3814_v59, %v3814_v59  ;;  %v4009_v26 = vcombine.low %v3814_v59, %v3822_v58  ;;  %v4857_v15 = vpop.f32.mrf.mxu0 }
 0xb72   :  { %v3992_v16 = vcombine.low %v3970_v18, %v3977_v9  ;;  %v3991_v48 = vrot.slane %v3963_v49, %v6547_v46  ;;  %v3832_v47 = vrot.slane %v3622_v23, %v6547_v46 }
 0xb73   :  { %v4010_v51 = vcombine.low %v3824_v20, %v3807_v28  ;;  %v4011_v24 = vcombine.low %v3821_v62, %v3823_v4  ;;  %v3825_v27 = vcombine.high %v3821_v62, %v3821_v62  ;;  %v4019_v31 = vrot.slane %v4009_v26, %v6547_v46 }
 0xb74   :  { %v3993_v25 = vcombine.low %v3984_v19, %v3991_v48  ;;  %v3833_v32 = vcombine.high %v3832_v47, %v3832_v47  ;;  %v3840_v1 = vrot.slane %v3832_v47, %v6547_v46  ;;  %v4000_v55 = vrot.slane %v3992_v16, %v6547_v46 }
 0xb75   :  { %v4026_v53 = vrot.slane %v4010_v51, %v6547_v46  ;;  %v4033_v63 = vrot.slane %v4011_v24, %v6547_v46 }
 0xb76   :  { %v4007_v8 = vrot.slane %v3993_v25, %v6547_v46  ;;  %v3847_v30 = vrot.slane %v3833_v32, %v6547_v46  ;;  %v4012_v29 = vcombine.low %v3825_v27, %v3840_v1 }
 0xb77   :  { %v4041_v41 = vcombine.low %v4019_v31, %v4026_v53 }
 0xb78   :  { %v4008_v35 = vcombine.low %v4000_v55, %v4007_v8  ;;  %v4040_v38 = vrot.slane %v4012_v29, %v6547_v46  ;;  %v4064_v17 = vrot.slane %v3847_v30, %v6547_v46 }
 0xb79   :  { %v4049_v43 = vrot.slane %v4041_v41, %v6547_v46 }
 0xb7a   :  { %4082 = vst.msk [vmem:[%s5553_s13 + $0x18] sm:$0xff] %vm303_vm0, %v4008_v35  ;;  %v4042_v0 = vcombine.low %v4033_v63, %v4040_v38  ;;  %v4071_v57 = vrot.slane %v4064_v17, %v6547_v46 }
 0xb7c   :  { %v4056_v54 = vrot.slane %v4042_v0, %v6547_v46  ;;  %4084 = vst.msk [vmem:[%s5553_s13 + $0x28] sm:$0x1] %vm4080_vm14, %v4071_v57 }
 0xb7e   :  { %v4057_v60 = vcombine.low %v4049_v43, %v4056_v54 }
 0xb80   :  { %4083 = vst.msk [vmem:[%s5553_s13 + $0x20] sm:$0xff] %vm303_vm0, %v4057_v60 }
 0xb81   :  { %5352 = dma.done.wait [#allocation4], 32  }
 0xb82   :  { %5353 = vsyncadd [#allocation4], 4294967264 }
 0xb83   :  { %4116 = vsyncpa [#allocation3], 1 }
 0xb84   :  { %4117 = vsyncpa [#allocation6], 1 }
 0xb85   :  { %4118 = vsyncpa [#allocation9], 1 }
 0xb86   :  { %4119 = vsyncpa [#allocation12], 1 }
 0xb87   :  { %4120 = vsyncpa [#allocation15], 1 }
 0xb88   :  { %4121 = vsyncpa [#allocation18], 1 }
 0xb89   :  { %4122 = vsyncpa [#allocation21], 1 }
 0xb8a   :  { %4123 = vsyncpa [#allocation24], 1 }
 0xb8b   :  { %4124 = vsyncpa [#allocation4], 1 }

</bundles_post_ra>
